<compile_context>
chip_gen: v7x
topology: tpu7x:2x2x1
jax: 0.10.0
libtpu: 0.0.40
codegen_flags: <defaults>
</compile_context>

<pallas_src>
import functools

import jax
import jax.numpy as jnp
from jax import lax
from jax.experimental import pallas as pl
from jax.experimental.pallas import tpu as pltpu


def _vmem_limit_bytes():
    # Generation-aware scoped-VMEM budget: ~85% of per-core VMEM
    # (~108 MiB on v5e/v6e's 128 MiB, ~54 MiB on v7x's 64 MiB).
    try:
        cap = pltpu.get_tpu_info().vmem_capacity_bytes
    except Exception:
        cap = 64 * 1024 * 1024
    return min(int(cap * 0.85), 112 * 1024 * 1024)


def _choose_tile(total, cap, multiple=128):
    """Largest tile <= cap that divides `total` (a multiple of `multiple` when tiling)."""
    if total <= cap:
        return total
    t = (cap // multiple) * multiple
    while t > multiple and total % t != 0:
        t -= multiple
    assert t >= multiple and total % t == 0, (total, cap)
    return t


def _layernorm(h, gamma, beta, eps):
    mu = jnp.mean(h, axis=-1, keepdims=True)
    var = jnp.mean((h - mu) ** 2, axis=-1, keepdims=True)
    return (h - mu) * lax.rsqrt(var + eps) * gamma + beta


def _gelu_tanh(x):
    # TODO(synk): FeedForward's exact activation isn't shown in the spec; using
    # GPT-2's tanh-approximate GELU.
    c = jnp.float32(0.7978845608028654)  # sqrt(2/pi)
    return 0.5 * x * (1.0 + jnp.tanh(c * (x + 0.044715 * x * x * x)))


# --------------------------------------------------------------------------
# Kernel A: LayerNorm1 + QKV projection (QKV output columns tiled / streamed)
# --------------------------------------------------------------------------
def ln_qkv_kernel(x_ref, g_ref, b_ref, wqkv_ref, bqkv_ref, qkv_ref, h_s, *, eps):
    oc = pl.program_id(2)

    # LayerNorm is computed once per (b, seq-tile) and cached across column tiles.
    @pl.when(oc == 0)
    def _ln():
        x = x_ref[0]                                     # (ts, D) f32
        h = _layernorm(x, g_ref[...], b_ref[...], jnp.float32(eps))
        h_s[...] = h.astype(jnp.bfloat16)

    qkv = jnp.dot(h_s[...], wqkv_ref[...],
                  preferred_element_type=jnp.float32) + bqkv_ref[...]
    qkv_ref[0] = qkv.astype(jnp.bfloat16)                # (ts, t_oc) bf16


# --------------------------------------------------------------------------
# Kernel B: flash-style causal attention (one head / q-tile per grid point,
#           kv-tile is the innermost reduction axis).
# --------------------------------------------------------------------------
def flash_attn_kernel(q_ref, k_ref, v_ref, o_ref, m_s, l_s, acc_s):
    qi = pl.program_id(2)
    ki = pl.program_id(3)
    n_kv = pl.num_programs(3)
    tq, dh = q_ref.shape[1], q_ref.shape[2]
    tkv = k_ref.shape[1]
    scale = 1.0 / (dh ** 0.5)

    @pl.when(ki == 0)
    def _init():
        m_s[...] = jnp.full_like(m_s, -1e30)
        l_s[...] = jnp.zeros_like(l_s)
        acc_s[...] = jnp.zeros_like(acc_s)

    def _step(masked):
        q = q_ref[0]                                     # (tq, dh)  bf16
        k = k_ref[0]                                     # (tkv, dh) bf16
        v = v_ref[0]                                     # (tkv, dh) bf16

        # scores = q @ k^T (contract head_dim), f32 accumulation on the MXU.
        s = lax.dot_general(q, k, (((1,), (1,)), ((), ())),
                            preferred_element_type=jnp.float32) * scale
        if masked:
            # Diagonal tile only (tq == tkv): intra-tile causal mask.
            row = lax.broadcasted_iota(jnp.int32, (tq, tkv), 0)
            col = lax.broadcasted_iota(jnp.int32, (tq, tkv), 1)
            s = jnp.where(col <= row, s, jnp.float32(-1e30))

        m_prev = m_s[...]
        m_new = jnp.maximum(m_prev, jnp.max(s, axis=-1, keepdims=True))
        alpha = jnp.exp(m_prev - m_new)
        p = jnp.exp(s - m_new)
        l_s[...] = alpha * l_s[...] + jnp.sum(p, axis=-1, keepdims=True)
        acc_s[...] = alpha * acc_s[...] + jnp.dot(
            p.astype(jnp.bfloat16), v, preferred_element_type=jnp.float32)
        m_s[...] = m_new

    # Strictly-past KV tiles: no causal masking needed.
    @pl.when(ki < qi)
    def _past():
        _step(masked=False)

    # Diagonal tile: apply the causal mask.
    @pl.when(ki == qi)
    def _diag():
        _step(masked=True)

    # ki > qi: causal future -> no compute, and the K/V index_map is clamped to
    # min(ki, qi) so no HBM DMA is issued for these steps either.

    @pl.when(ki == n_kv - 1)
    def _finalize():
        o_ref[0] = (acc_s[...] *
                    pl.reciprocal(l_s[...], approx=True)).astype(o_ref.dtype)


# --------------------------------------------------------------------------
# Kernel C: output projection + residual + LayerNorm2 + MLP (hidden dim tiled
#           as a reduction grid axis) + residual.
# --------------------------------------------------------------------------
def proj_mlp_kernel(attn_ref, x_ref, wproj_ref, bproj_ref, ln2_g_ref, ln2_b_ref,
                    w1_ref, b1_ref, w2_ref, b2_ref, o_ref,
                    x1_s, h2_s, acc_s, *, eps):
    hi = pl.program_id(2)
    n_hid = pl.num_programs(2)

    @pl.when(hi == 0)
    def _init():
        # TODO(synk): for very large D on v7x, wproj (D,D) should also be
        # column-tiled like wqkv; left whole here (fits comfortably at demo sizes).
        attn = jnp.dot(attn_ref[0], wproj_ref[...],
                       preferred_element_type=jnp.float32) + bproj_ref[...]
        x1 = x_ref[0] + attn                             # residual 1 (f32)
        x1_s[...] = x1
        h2 = _layernorm(x1, ln2_g_ref[...], ln2_b_ref[...], jnp.float32(eps))
        h2_s[...] = h2.astype(jnp.bfloat16)

    # Partial MLP over one hidden tile: gelu(h2 @ W1[:,k] + b1[k]) @ W2[k,:]
    m = jnp.dot(h2_s[...], w1_ref[...], preferred_element_type=jnp.float32)
    m = _gelu_tanh(m + b1_ref[...])
    part = jnp.dot(m.astype(jnp.bfloat16), w2_ref[...],
                   preferred_element_type=jnp.float32)

    # Direct assignment on the first hidden tile (no zero-fill / RMW).
    @pl.when(hi == 0)
    def _first():
        acc_s[...] = part

    @pl.when(hi > 0)
    def _accum():
        acc_s[...] += part

    @pl.when(hi == n_hid - 1)
    def _finalize():
        o_ref[0] = acc_s[...] + b2_ref[...] + x1_s[...]  # + residual 2


# --------------------------------------------------------------------------
# Wrapper
# --------------------------------------------------------------------------
def transformer_block(x, params, *, n_heads, eps=1e-5,
                      ts=None, tkv=None, thid=None, t_oc=None):
    B, S, D = x.shape
    (ln1_g, ln1_b, wqkv, bqkv, wproj, bproj,
     ln2_g, ln2_b, w1, b1, w2, b2) = params
    hidden = w1.shape[1]
    dh = D // n_heads
    assert D % n_heads == 0
    # TODO(synk): head_dim that is not a multiple of 128 needs an in-kernel
    # head relayout path; not implemented here.
    assert dh % 128 == 0, "head_dim must be a multiple of 128 (TPU lane width)"

    # Tile sizes: 256-wide M tiles fill the 256x256 MXU on v6e/v7x; wqkv output
    # columns and the MLP hidden dim are streamed in tiles.
    ts = _choose_tile(S, 256) if ts is None else ts
    assert S % ts == 0
    tq = ts
    tkv = ts if tkv is None else tkv
    assert tq == tkv, "diagonal-tile masking assumes tq == tkv"
    assert S % tkv == 0
    thid = _choose_tile(hidden, 1024) if thid is None else thid
    assert hidden % thid == 0
    t_oc = _choose_tile(3 * D, 1536) if t_oc is None else t_oc
    assert (3 * D) % t_oc == 0

    vmem_limit = _vmem_limit_bytes()
    bf16 = jnp.bfloat16
    # Weights in bf16 (halves HBM traffic / VMEM); biases & LN params stay f32.
    wqkv_b = wqkv.astype(bf16)
    wproj_b = wproj.astype(bf16)
    w1_b = w1.astype(bf16)
    w2_b = w2.astype(bf16)

    H = n_heads
    n_s = S // ts
    n_q = S // tq
    n_kv = S // tkv
    n_hid = hidden // thid
    n_oc = (3 * D) // t_oc

    # ---- Kernel A: LN1 + QKV projection (QKV columns streamed) ----
    qkv = pl.pallas_call(
        functools.partial(ln_qkv_kernel, eps=eps),
        out_shape=jax.ShapeDtypeStruct((B, S, 3 * D), bf16),
        grid_spec=pltpu.PrefetchScalarGridSpec(
            num_scalar_prefetch=0,
            grid=(B, n_s, n_oc),
            in_specs=[
                pl.BlockSpec((1, ts, D), lambda b, s, n: (b, s, 0)),
                pl.BlockSpec((1, D), lambda b, s, n: (0, 0)),
                pl.BlockSpec((1, D), lambda b, s, n: (0, 0)),
                pl.BlockSpec((D, t_oc), lambda b, s, n: (0, n)),
                pl.BlockSpec((1, t_oc), lambda b, s, n: (0, n)),
            ],
            out_specs=pl.BlockSpec((1, ts, t_oc), lambda b, s, n: (b, s, n)),
            scratch_shapes=[pltpu.VMEM((ts, D), bf16)],   # cached LN1 output
        ),
        compiler_params=pltpu.CompilerParams(
            dimension_semantics=("parallel", "parallel", "arbitrary"),
            vmem_limit_bytes=vmem_limit),
    )(x, ln1_g, ln1_b, wqkv_b, bqkv)

    # ---- Kernel B: flash attention over (batch, head, q-tile, kv-tile) ----
    # q head h -> column block h, k head h -> block H + h, v head h -> 2H + h.
    # K/V block index is clamped to min(ki, qi): causal-future KV tiles map to
    # the already-resident block, so their HBM DMA is elided.
    attn = pl.pallas_call(
        flash_attn_kernel,
        out_shape=jax.ShapeDtypeStruct((B, S, D), bf16),
        grid_spec=pltpu.PrefetchScalarGridSpec(
            num_scalar_prefetch=0,
            grid=(B, H, n_q, n_kv),
            in_specs=[
                pl.BlockSpec((1, tq, dh),
                             lambda b, h, qi, ki: (b, qi, h)),
                pl.BlockSpec((1, tkv, dh),
                             lambda b, h, qi, ki: (b, jnp.minimum(ki, qi), H + h)),
                pl.BlockSpec((1, tkv, dh),
                             lambda b, h, qi, ki: (b, jnp.minimum(ki, qi), 2 * H + h)),
            ],
            out_specs=pl.BlockSpec((1, tq, dh), lambda b, h, qi, ki: (b, qi, h)),
            scratch_shapes=[
                pltpu.VMEM((tq, 1), jnp.float32),   # running max
                pltpu.VMEM((tq, 1), jnp.float32),   # running denom
                pltpu.VMEM((tq, dh), jnp.float32),  # output accumulator
            ],
        ),
        compiler_params=pltpu.CompilerParams(
            dimension_semantics=("parallel", "parallel", "parallel", "arbitrary"),
            vmem_limit_bytes=vmem_limit),
    )(qkv, qkv, qkv)

    # ---- Kernel C: proj + residual + LN2 + MLP (hidden tiled) + residual ----
    out = pl.pallas_call(
        functools.partial(proj_mlp_kernel, eps=eps),
        out_shape=jax.ShapeDtypeStruct((B, S, D), jnp.float32),
        grid_spec=pltpu.PrefetchScalarGridSpec(
            num_scalar_prefetch=0,
            grid=(B, n_s, n_hid),
            in_specs=[
                pl.BlockSpec((1, ts, D), lambda b, s, k: (b, s, 0)),   # attn
                pl.BlockSpec((1, ts, D), lambda b, s, k: (b, s, 0)),   # x (residual)
                pl.BlockSpec((D, D), lambda b, s, k: (0, 0)),          # wproj
                pl.BlockSpec((1, D), lambda b, s, k: (0, 0)),          # bproj
                pl.BlockSpec((1, D), lambda b, s, k: (0, 0)),          # ln2_g
                pl.BlockSpec((1, D), lambda b, s, k: (0, 0)),          # ln2_b
                pl.BlockSpec((D, thid), lambda b, s, k: (0, k)),       # w1 tile
                pl.BlockSpec((1, thid), lambda b, s, k: (0, k)),       # b1 tile
                pl.BlockSpec((thid, D), lambda b, s, k: (k, 0)),       # w2 tile
                pl.BlockSpec((1, D), lambda b, s, k: (0, 0)),          # b2
            ],
            out_specs=pl.BlockSpec((1, ts, D), lambda b, s, k: (b, s, 0)),
            scratch_shapes=[
                pltpu.VMEM((ts, D), jnp.float32),    # x1 (post-attention residual)
                pltpu.VMEM((ts, D), jnp.bfloat16),   # LN2(x1) as matmul input
                pltpu.VMEM((ts, D), jnp.float32),    # MLP accumulator
            ],
        ),
        compiler_params=pltpu.CompilerParams(
            dimension_semantics=("parallel", "parallel", "arbitrary"),
            vmem_limit_bytes=vmem_limit),
    )(attn, x, wproj_b, bproj, ln2_g, ln2_b, w1_b, b1, w2_b, b2)

    return out


# --------------------------------------------------------------------------
# Parameters + pure-JAX reference (for a loose numerical sanity check)
# --------------------------------------------------------------------------
def init_params(key, dim):
    hidden = 4 * dim
    keys = jax.random.split(key, 4)
    std = 0.02
    ln1_g = jnp.ones((1, dim), jnp.float32)
    ln1_b = jnp.zeros((1, dim), jnp.float32)
    wqkv = (std * jax.random.normal(keys[0], (dim, 3 * dim))).astype(jnp.float32)
    bqkv = jnp.zeros((1, 3 * dim), jnp.float32)
    wproj = (std * jax.random.normal(keys[1], (dim, dim))).astype(jnp.float32)
    bproj = jnp.zeros((1, dim), jnp.float32)
    ln2_g = jnp.ones((1, dim), jnp.float32)
    ln2_b = jnp.zeros((1, dim), jnp.float32)
    w1 = (std * jax.random.normal(keys[2], (dim, hidden))).astype(jnp.float32)
    b1 = jnp.zeros((1, hidden), jnp.float32)
    w2 = (std * jax.random.normal(keys[3], (hidden, dim))).astype(jnp.float32)
    b2 = jnp.zeros((1, dim), jnp.float32)
    return (ln1_g, ln1_b, wqkv, bqkv, wproj, bproj,
            ln2_g, ln2_b, w1, b1, w2, b2)


def transformer_block_reference(x, params, *, n_heads, eps=1e-5):
    (ln1_g, ln1_b, wqkv, bqkv, wproj, bproj,
     ln2_g, ln2_b, w1, b1, w2, b2) = params
    B, S, D = x.shape
    dh = D // n_heads

    def ln(h, g, b):
        mu = jnp.mean(h, -1, keepdims=True)
        var = jnp.mean((h - mu) ** 2, -1, keepdims=True)
        return (h - mu) * lax.rsqrt(var + eps) * g + b

    h = ln(x, ln1_g, ln1_b)
    qkv = h @ wqkv + bqkv
    q, k, v = jnp.split(qkv, 3, axis=-1)
    q = q.reshape(B, S, n_heads, dh).transpose(0, 2, 1, 3)
    k = k.reshape(B, S, n_heads, dh).transpose(0, 2, 1, 3)
    v = v.reshape(B, S, n_heads, dh).transpose(0, 2, 1, 3)
    s = jnp.einsum("bhqd,bhkd->bhqk", q, k) / jnp.sqrt(jnp.float32(dh))
    mask = jnp.tril(jnp.ones((S, S), bool))
    s = jnp.where(mask, s, jnp.float32(-1e30))
    p = jax.nn.softmax(s, axis=-1)
    o = jnp.einsum("bhqk,bhkd->bhqd", p, v).transpose(0, 2, 1, 3).reshape(B, S, D)
    x1 = x + o @ wproj + bproj
    h2 = ln(x1, ln2_g, ln2_b)
    m = _gelu_tanh(h2 @ w1 + b1)
    return m @ w2 + b2 + x1


if __name__ == "__main__":
    # head_dim = 128 (lane-aligned); S=512 with ts=256 exercises 2 q-tiles x
    # 2 kv-tiles (past/diagonal/skipped-future paths) and thid=512 exercises
    # the 2-step MLP hidden reduction.
    B, S, D, H = 2, 512, 256, 2
    key = jax.random.PRNGKey(0)
    kx, kp = jax.random.split(key)
    x = jax.random.normal(kx, (B, S, D), dtype=jnp.float32)
    params = init_params(kp, D)

    out = transformer_block(x, params, n_heads=H, eps=1e-5, thid=512)
    out = jax.block_until_ready(out)
    assert out.shape == (B, S, D) and out.dtype == jnp.float32

    # Loose check against a pure-JAX f32 reference (kernel uses bf16 matmuls).
    ref = transformer_block_reference(x, params, n_heads=H, eps=1e-5)
    rel_err = jnp.max(jnp.abs(out - ref)) / (jnp.max(jnp.abs(ref)) + 1e-6)
    assert float(rel_err) < 5e-2, f"relative error too large: {float(rel_err)}"

    print("KERNEL_OK")
</pallas_src>

<mosaic_0001>
module attributes {stable_mosaic.version = 11 : i64} {
  func.func @ln_qkv_kernel(%arg0: i32, %arg1: i32, %arg2: i32, %arg3: memref<1x256x256xf32, #tpu.memory_space<vmem>>, %arg4: memref<1x256xf32, #tpu.memory_space<vmem>>, %arg5: memref<1x256xf32, #tpu.memory_space<vmem>>, %arg6: memref<256x768xbf16, #tpu.memory_space<vmem>>, %arg7: memref<1x768xf32, #tpu.memory_space<vmem>>, %arg8: memref<1x256x768xbf16, #tpu.memory_space<vmem>>, %arg9: memref<256x256xbf16, #tpu.memory_space<vmem>>) attributes {dimension_semantics = [#tpu.dimension_semantics<parallel>, #tpu.dimension_semantics<parallel>, #tpu.dimension_semantics<arbitrary>], iteration_bounds = array<i64: 2, 2, 1>, scalar_prefetch = 0 : i64, scratch_operands = 1 : i64, tpu.core_type = #tpu.core_type<tc>, window_params = [{transform_indices = @transform_0, window_bounds = array<i64: 1, 256, 256>}, {pipeline_mode = #tpu.pipeline_mode<synchronous>, transform_indices = @transform_1, window_bounds = array<i64: 1, 256>}, {pipeline_mode = #tpu.pipeline_mode<synchronous>, transform_indices = @transform_2, window_bounds = array<i64: 1, 256>}, {transform_indices = @transform_3, window_bounds = array<i64: 256, 768>}, {transform_indices = @transform_4, window_bounds = array<i64: 1, 768>}, {transform_indices = @transform_5, window_bounds = array<i64: 1, 256, 768>}]} {
    %c0_i32 = arith.constant 0 : i32
    %0 = arith.cmpi eq, %arg2, %c0_i32 : i32
    %1 = arith.extui %0 : i1 to i32
    %c0_i32_0 = arith.constant 0 : i32
    %2 = arith.cmpi ne, %1, %c0_i32_0 : i32
    scf.if %2 {
      %c0_9 = arith.constant 0 : index
      %c0_10 = arith.constant 0 : index
      %c0_11 = arith.constant 0 : index
      %13 = vector.load %arg3[%c0_9, %c0_10, %c0_11] : memref<1x256x256xf32, #tpu.memory_space<vmem>>, vector<1x256x256xf32>
      %14 = vector.shape_cast %13 : vector<1x256x256xf32> to vector<256x256xf32>
      %c0_12 = arith.constant 0 : index
      %c0_13 = arith.constant 0 : index
      %15 = vector.load %arg4[%c0_12, %c0_13] : memref<1x256xf32, #tpu.memory_space<vmem>>, vector<1x256xf32>
      %c0_14 = arith.constant 0 : index
      %c0_15 = arith.constant 0 : index
      %16 = vector.load %arg5[%c0_14, %c0_15] : memref<1x256xf32, #tpu.memory_space<vmem>>, vector<1x256xf32>
      %cst_16 = arith.constant dense<0.000000e+00> : vector<256xf32>
      %17 = vector.multi_reduction <add>, %14, %cst_16 [1] : vector<256x256xf32> to vector<256xf32>
      %18 = vector.shape_cast %17 : vector<256xf32> to vector<256x1xf32>
      %cst_17 = arith.constant 2.560000e+02 : f32
      %19 = vector.broadcast %cst_17 : f32 to vector<256x1xf32>
      %20 = arith.divf %18, %19 : vector<256x1xf32>
      %21 = vector.broadcast %20 : vector<256x1xf32> to vector<256x256xf32>
      %22 = arith.subf %14, %21 : vector<256x256xf32>
      %23 = arith.mulf %22, %22 : vector<256x256xf32>
      %cst_18 = arith.constant dense<0.000000e+00> : vector<256xf32>
      %24 = vector.multi_reduction <add>, %23, %cst_18 [1] : vector<256x256xf32> to vector<256xf32>
      %25 = vector.shape_cast %24 : vector<256xf32> to vector<256x1xf32>
      %cst_19 = arith.constant 2.560000e+02 : f32
      %26 = vector.broadcast %cst_19 : f32 to vector<256x1xf32>
      %27 = arith.divf %25, %26 : vector<256x1xf32>
      %28 = vector.broadcast %20 : vector<256x1xf32> to vector<256x256xf32>
      %29 = arith.subf %14, %28 : vector<256x256xf32>
      %cst_20 = arith.constant 9.99999974E-6 : f32
      %30 = vector.broadcast %cst_20 : f32 to vector<256x1xf32>
      %31 = arith.addf %27, %30 : vector<256x1xf32>
      %32 = math.rsqrt %31 : vector<256x1xf32>
      %33 = vector.broadcast %32 : vector<256x1xf32> to vector<256x256xf32>
      %34 = arith.mulf %29, %33 : vector<256x256xf32>
      %35 = vector.broadcast %15 : vector<1x256xf32> to vector<256x256xf32>
      %36 = arith.mulf %34, %35 : vector<256x256xf32>
      %37 = vector.broadcast %16 : vector<1x256xf32> to vector<256x256xf32>
      %38 = arith.addf %36, %37 : vector<256x256xf32>
      %39 = arith.truncf %38 : vector<256x256xf32> to vector<256x256xbf16>
      %c0_21 = arith.constant 0 : index
      %c0_22 = arith.constant 0 : index
      %40 = vector.load %arg9[%c0_21, %c0_22] : memref<256x256xbf16, #tpu.memory_space<vmem>>, vector<256x256xbf16>
      tpu.vector_store %arg9[%c0_21, %c0_22], %39 {strides = array<i32>} : memref<256x256xbf16, #tpu.memory_space<vmem>>, vector<256x256xbf16>,
    } else {
    }
    %c0 = arith.constant 0 : index
    %c0_1 = arith.constant 0 : index
    %3 = vector.load %arg9[%c0, %c0_1] : memref<256x256xbf16, #tpu.memory_space<vmem>>, vector<256x256xbf16>
    %c0_2 = arith.constant 0 : index
    %c0_3 = arith.constant 0 : index
    %4 = vector.load %arg6[%c0_2, %c0_3] : memref<256x768xbf16, #tpu.memory_space<vmem>>, vector<256x768xbf16>
    %cst = arith.constant dense<0.000000e+00> : vector<256x768xf32>
    %5 = tpu.matmul %3, %4, %cst {dimension_numbers = #tpu.dot_dimension_numbers<[1], [0], [0], [1], [0, 0, 1, 1], [], []>} : vector<256x256xbf16>, vector<256x768xbf16>, vector<256x768xf32> -> vector<256x768xf32>
    %c0_4 = arith.constant 0 : index
    %c0_5 = arith.constant 0 : index
    %6 = vector.load %arg7[%c0_4, %c0_5] : memref<1x768xf32, #tpu.memory_space<vmem>>, vector<1x768xf32>
    %7 = vector.broadcast %6 : vector<1x768xf32> to vector<256x768xf32>
    %8 = arith.addf %5, %7 : vector<256x768xf32>
    %9 = arith.truncf %8 : vector<256x768xf32> to vector<256x768xbf16>
    %c0_6 = arith.constant 0 : index
    %c0_7 = arith.constant 0 : index
    %c0_8 = arith.constant 0 : index
    %10 = vector.load %arg8[%c0_6, %c0_7, %c0_8] : memref<1x256x768xbf16, #tpu.memory_space<vmem>>, vector<1x256x768xbf16>
    %11 = vector.shape_cast %10 : vector<1x256x768xbf16> to vector<256x768xbf16>
    %12 = vector.shape_cast %9 : vector<256x768xbf16> to vector<1x256x768xbf16>
    tpu.vector_store %arg8[%c0_6, %c0_7, %c0_8], %12 {strides = array<i32>} : memref<1x256x768xbf16, #tpu.memory_space<vmem>>, vector<1x256x768xbf16>,
    return
  }
  func.func @transform_0(%arg0: i32, %arg1: i32, %arg2: i32) -> (i32, i32, i32) {
    %c0_i32 = arith.constant 0 : i32
    %c0_i32_0 = arith.constant 0 : i32
    return %arg0, %arg1, %c0_i32 : i32, i32, i32
  }
  func.func @transform_1(%arg0: i32, %arg1: i32, %arg2: i32) -> (i32, i32) {
    %c0_i32 = arith.constant 0 : i32
    %c0_i32_0 = arith.constant 0 : i32
    %c0_i32_1 = arith.constant 0 : i32
    return %c0_i32, %c0_i32_0 : i32, i32
  }
  func.func @transform_2(%arg0: i32, %arg1: i32, %arg2: i32) -> (i32, i32) {
    %c0_i32 = arith.constant 0 : i32
    %c0_i32_0 = arith.constant 0 : i32
    %c0_i32_1 = arith.constant 0 : i32
    return %c0_i32, %c0_i32_0 : i32, i32
  }
  func.func @transform_3(%arg0: i32, %arg1: i32, %arg2: i32) -> (i32, i32) {
    %c0_i32 = arith.constant 0 : i32
    %c0_i32_0 = arith.constant 0 : i32
    return %c0_i32, %arg2 : i32, i32
  }
  func.func @transform_4(%arg0: i32, %arg1: i32, %arg2: i32) -> (i32, i32) {
    %c0_i32 = arith.constant 0 : i32
    %c0_i32_0 = arith.constant 0 : i32
    return %c0_i32, %arg2 : i32, i32
  }
  func.func @transform_5(%arg0: i32, %arg1: i32, %arg2: i32) -> (i32, i32, i32) {
    %c0_i32 = arith.constant 0 : i32
    return %arg0, %arg1, %arg2 : i32, i32, i32
  }
}

</mosaic_0001>

<bundles_post_ra>
// kernel: tpu_custom_call.1
= control target key start
LH: loop header
LB: loop body
LE: loop exit
PB: predicated region body
PF: predicated region fallthrough
CT: control target
= control target key end

     0   :  { %s5826_s0 = inlined_call_operand.hbm [shape: f32[2,512,256], index: 0, kind: input, shape index: {}]   ;;  %s5827_s1 = inlined_call_operand.hbm [shape: f32[1,256], index: 1, kind: input, shape index: {}]   ;;  %s5828_s2 = inlined_call_operand.hbm [shape: f32[1,256], index: 2, kind: input, shape index: {}]   ;;  %s5829_s3 = inlined_call_operand.hbm [shape: bf16[256,768], index: 3, kind: input, shape index: {}]   ;;  %s5830_s4 = inlined_call_operand.hbm [shape: f32[1,768], index: 4, kind: input, shape index: {}]   ;;  %s5831_s5 = inlined_call_operand.hbm [shape: bf16[2,512,768], index: 5, kind: output, shape index: {}]  }
   0x1   :  { %5883 = sst [smem:[#allocation49_spill]] %s5827_s1 }
   0x2   :  { %5884 = sst [smem:[#allocation50_spill]] %s5828_s2 }
   0x3   :  { %5885 = sst [smem:[#allocation51_spill]] %s5829_s3 }
   0x4   :  { %5886 = sst [smem:[#allocation52_spill]] %s5830_s4 }
   0x5   :  { %10 = vsyncpa [#allocation4], 0 }
   0x6   :  { %12 = vsyncpa [#allocation4 + $0x1], 0 }
   0x7   :  { %13 = vsyncpa [#allocation7], 0 }
   0x8   :  { %14 = vsyncpa [#allocation10], 0 }
   0x9   :  { %15 = vsyncpa [#allocation5], 0 }
   0xa   :  { %17 = vsyncpa [#allocation5 + $0x1], 0  ;;  %s4161_s18 = smov 0   ;;  %s4163_s19 = smov 0  }
   0xb   :  { %s4165_s20 = smov 0   ;;  %s4167_s21 = smov 0  }
   0xc   :  { %s4169_s22 = smov 0   ;;  %s4171_s23 = smov 0  }
   0xd   :  { %s4173_s24 = smov 0   ;;  %s4175_s25 = smov 0  }
   0xe LB: > { %5887 = sst [smem:[#allocation17_spill]] %s4089_s18  ;;  %s3188_s26 = sadd.s32 4294967295, %s4117_s25   ;;  %s4117_s25 = sphi %s4175_s25, %s23_s25   ;;  %s4113_s24 = sphi %s4173_s24, %s6002_s24   ;;  %s4109_s23 = sphi %s4171_s23, %s6001_s23   ;;  %s4105_s22 = sphi %s4169_s22, %s6000_s22   ;;  %s4101_s21 = sphi %s4167_s21, %s5999_s21   ;;  %s4097_s20 = sphi %s4165_s20, %s5998_s20   ;;  %s4093_s19 = sphi %s4163_s19, %s5997_s19   ;;  %s4089_s18 = sphi %s4161_s18, %s5996_s18  }
   0xf   : > { %s3189_s27 = sadd.s32 4294967294, %s4117_s25   ;;  %p64_p0 = scmp.ne.s32.totalorder %s4093_s19, %s4089_s18 }
  0x10   : > { %p4205_p1 = scmp.eq.s32.totalorder %s3188_s26, 0  ;;  %p4209_p2 = scmp.eq.s32.totalorder %s3188_s26, 3 }
  0x11   : > { %p192_p3 = scmp.eq.s32.totalorder %s3189_s27, 3  ;;  %p3190_p5 = scmp.ge.s32.totalorder %s4117_s25, 1 }
  0x12   : > { %s5888_s28 = scalar_select %p4205_p1, 1, 0 }
  0x13   : > { %s5889_s29 = scalar_select %p4209_p2, 1, 0 }
  0x14   : > { %p4215_p4 = por %p4205_p1, %p64_p0  ;;  %p4220_p6 = por %p192_p3, %p64_p0 }
  0x15   : > { %p199_p7 = scmp.lt.s32.totalorder %s4117_s25, 5  ;;  %s4119_s8 = smov [#allocation6]  }
  0x16   : > { %s5890_s30 = scalar_select %p4215_p4, 1, 0 }
  0x17   : > { %s5891_s6 = scalar_select %p4220_p6, 1, 0 }
  0x18   : > { %p4225_p8 = pnand %p3190_p5, %p199_p7  ;;  %s212_s9 = sshll.u32 %s4119_s8, 4  ;;  %s213_s9 = int_to_ptr.vmem [resolvable:$true] %s212_s9 }
  0x19   : > { %5892 = sst [smem:[#allocation18_spill]] %s5891_s6  ;;  %s4120_s10 = smov [#allocation9]  }
  0x1a   : > { %s5893_s7 = scalar_select %p4225_p8, 1, 0 }
  0x1b   : > { %p3556_p9 = pneg %p4225_p8  ;;  %s236_s11 = sshll.u32 %s4120_s10, 4  ;;  %s4237_s11 = int_to_ptr.vmem [resolvable:$true] %s236_s11 }
  0x1c   : > { %s4121_s13 = smov [#allocation8]   ;;  %s5895_s1 = sld [smem:[#allocation49_spill]] }
  0x1d   : > { %p4233_p10 = pnand %p3556_p9, %p4205_p1  ;;  %s4239_s14 = sshll.u32 %s4121_s13, 4  ;;  %s224_s14 = int_to_ptr.vmem [resolvable:$true] %s4239_s14 }
  0x1f   : > { %p4249_p12 = pneg %p4233_p10 }
  0x22   : > { %s3869_s17 = scalar_lea.hbm %s5895_s1, 32 }
  0x23   : > { %p3870_p11 = scmp.ne.s32.totalorder %s5895_s1, %s3869_s17  ;;  %p3876_p3 = scmp.lt.u32.totalorder %s3869_s17, %s5895_s1 }
  0x25   : > { %p3872_p13 = pnand %p4249_p12, %p3870_p11 }
  0x27   : > { %p3873_p0 = pneg %p3872_p13 }
  0x29   : > { %p3878_p5 = pnand %p3876_p3, %p3873_p0 }
  0x2b   : > { %3881 = shalt.err (!%p3878_p5)
}
  0x2c   : > { %s3882_s15 = scalar_lea.vmem %s213_s9, 32  ;;  %p3890_p1 = scmp.lt.s32.totalorder %s213_s9, %s213_s9 }
  0x2d   : > { %p3883_p7 = scmp.ne.s32.totalorder %s213_s9, %s3882_s15  ;;  %p3891_p4 = scmp.lt.s32.totalorder %s3882_s15, %s3882_s15 }
  0x2f   : > { %p3885_p9 = pnand %p3883_p7, %p4249_p12  ;;  %p3892_p8 = por %p3891_p4, %p3890_p1 }
  0x31   : > { %p3886_p6 = pneg %p3885_p9 }
  0x33   : > { %p3893_p2 = pnand %p3892_p8, %p3886_p6 }
  0x35   : > { %3896 = shalt.err (!%p3893_p2)
}
  0x36   : > { %3559 = dma.hbm_to_vmem [thread:$0]  (!%p4233_p10), %s5895_s1, 32, %s213_s9, [#allocation7]  }
  0x37   : > { %s5897_s3 = sld [smem:[#allocation51_spill]] }
  0x3d   : > { %s3897_s10 = scalar_lea.hbm %s5897_s3, 12288 }
  0x3e   : > { %p3898_p11 = scmp.ne.s32.totalorder %s5897_s3, %s3897_s10  ;;  %p3904_p2 = scmp.lt.u32.totalorder %s3897_s10, %s5897_s3 }
  0x40   : > { %p3900_p13 = pnand %p3898_p11, %p4249_p12 }
  0x42   : > { %p3901_p1 = pneg %p3900_p13 }
  0x44   : > { %p3906_p4 = pnand %p3904_p2, %p3901_p1 }
  0x46   : > { %3909 = shalt.err (!%p3906_p4)
}
  0x47   : > { %s3910_s9 = scalar_lea.vmem %s4237_s11, 12288  ;;  %p3918_p3 = scmp.lt.s32.totalorder %s4237_s11, %s4237_s11 }
  0x48   : > { %p3911_p6 = scmp.ne.s32.totalorder %s4237_s11, %s3910_s9  ;;  %p3919_p5 = scmp.lt.s32.totalorder %s3910_s9, %s3910_s9 }
  0x4a   : > { %p3913_p8 = pnand %p3911_p6, %p4249_p12  ;;  %p3920_p7 = por %p3919_p5, %p3918_p3 }
  0x4c   : > { %p3914_p0 = pneg %p3913_p8 }
  0x4e   : > { %p3921_p9 = pnand %p3920_p7, %p3914_p0 }
  0x50   : > { %3924 = shalt.err (!%p3921_p9)
}
  0x51   : > { %s4122_s6 = smov 384   ;;  %s4123_s18 = smov 24  }
  0x52   : > { %3565 = dma.hbm_to_vmem [thread:$0]  (!%p4233_p10), %s5897_s3, 12288, %s4237_s11, [#allocation10], %s4122_s6, %s4122_s6, %s4123_s18  }
  0x53   : > { %s5898_s2 = sld [smem:[#allocation50_spill]] }
  0x59   : > { %s3925_s10 = scalar_lea.hbm %s5898_s2, 32 }
  0x5a   : > { %p3926_p11 = scmp.ne.s32.totalorder %s5898_s2, %s3925_s10  ;;  %p3932_p2 = scmp.lt.u32.totalorder %s3925_s10, %s5898_s2 }
  0x5c   : > { %p3928_p13 = pnand %p3926_p11, %p4249_p12 }
  0x5e   : > { %p3929_p1 = pneg %p3928_p13 }
  0x60   : > { %p3934_p4 = pnand %p3932_p2, %p3929_p1 }
  0x62   : > { %3937 = shalt.err (!%p3934_p4)
}
  0x63   : > { %s3938_s16 = scalar_lea.vmem %s224_s14, 32  ;;  %p3946_p3 = scmp.lt.s32.totalorder %s224_s14, %s224_s14 }
  0x64   : > { %p3939_p6 = scmp.ne.s32.totalorder %s224_s14, %s3938_s16  ;;  %p3947_p5 = scmp.lt.s32.totalorder %s3938_s16, %s3938_s16 }
  0x66   : > { %p3941_p8 = pnand %p3939_p6, %p4249_p12  ;;  %p3948_p7 = por %p3947_p5, %p3946_p3 }
  0x68   : > { %p3942_p0 = pneg %p3941_p8 }
  0x6a   : > { %p3949_p9 = pnand %p3948_p7, %p3942_p0 }
  0x6c   : > { %3952 = shalt.err (!%p3949_p9)
}
  0x6d   : > { %3562 = dma.hbm_to_vmem [thread:$0]  (!%p4233_p10), %s5898_s2, 32, %s224_s14, [#allocation7]  }
  0x6e   : > { %s4124_s1 = smov [#allocation11]   ;;  %s5899_s4 = sld [smem:[#allocation52_spill]] }
  0x6f   : > { %s253_s18 = sshll.u32 %s4124_s1, 4  ;;  %s254_s18 = int_to_ptr.vmem [resolvable:$true] %s253_s18 }
  0x74   : > { %s3953_s27 = scalar_lea.hbm %s5899_s4, 96 }
  0x75   : > { %p3954_p11 = scmp.ne.s32.totalorder %s5899_s4, %s3953_s27  ;;  %p3960_p2 = scmp.lt.u32.totalorder %s3953_s27, %s5899_s4 }
  0x77   : > { %p3956_p13 = pnand %p3954_p11, %p4249_p12 }
  0x79   : > { %p3957_p1 = pneg %p3956_p13 }
  0x7b   : > { %p3962_p4 = pnand %p3960_p2, %p3957_p1 }
  0x7d   : > { %3965 = shalt.err (!%p3962_p4)
}
  0x7e   : > { %s3966_s14 = scalar_lea.vmem %s254_s18, 96  ;;  %p3974_p3 = scmp.lt.s32.totalorder %s254_s18, %s254_s18 }
  0x7f   : > { %p3967_p6 = scmp.ne.s32.totalorder %s254_s18, %s3966_s14  ;;  %p3975_p5 = scmp.lt.s32.totalorder %s3966_s14, %s3966_s14 }
  0x81   : > { %p3969_p8 = pnand %p3967_p6, %p4249_p12  ;;  %p3976_p7 = por %p3975_p5, %p3974_p3 }
  0x83   : > { %p3970_p0 = pneg %p3969_p8 }
  0x85   : > { %p3977_p9 = pnand %p3976_p7, %p3970_p0 }
  0x87   : > { %3980 = shalt.err (!%p3977_p9)
}
  0x88   : > { %3568 = dma.hbm_to_vmem [thread:$0]  (!%p4233_p10), %s5899_s4, 96, %s254_s18, [#allocation10]  }
  0x89   : > { %s38_s8 = sadd.s32 1, %s4109_s23  ;;  %s42_s6 = sadd.s32 1, %s4113_s24 }
  0x8a   : > { %p40_p12 = scmp.ge.s32.totalorder %s38_s8, 2  ;;  %s51_s12 = sadd.s32 1, %s4097_s20 }
  0x8b   : > { %p58_p11 = scmp.ne.s32.totalorder %s4097_s20, %s4093_s19  ;;  %p59_p13 = scmp.eq.s32.totalorder %s4117_s25, 0 }
  0x8c   : > { %s6004_s8 = smov (%p40_p12, %s38_s8), 0  ;;  %s6006_s6 = smov (!%p40_p12, %s42_s6), %s4113_s24 }
  0x8d   : > { %5900 = sst [smem:[#allocation19_spill]] %s6004_s8  ;;  %s47_s1 = ssub.s32 %s4109_s23, %s6004_s8 }
  0x8e   : > { %p4336_p1 = por %p59_p13, %p58_p11  ;;  %p44_p10 = scmp.ge.s32.totalorder %s6006_s6, 2 }
  0x8f   : > { %p5902_p2 = scmp.ne.s32.totalorder %s5889_s29, 0  ;;  %p3581_p6 = scmp.lt.s32.totalorder %s4117_s25, 4 }
  0x90   : > { %s264_s17 = sand.u32 1, %s4097_s20   ;;  %s6008_s6 = smov (%p44_p10, %s6006_s6), 0 }
  0x91   : > { %p4342_p4 = por %p5902_p2, %p58_p11  ;;  %s3196_s27 = sshll.u32 %s264_s17, 9 }
  0x92   : > { %s46_s10 = ssub.s32 %s4113_s24, %s6008_s6  ;;  %s3404_s15 = sshll.u32 %s4109_s23, 6 }
  0x93   : > { %s48_s13 = sor.u32 %s47_s1, %s46_s10  ;;  %s3199_s9 = sshll.u32 %s4113_s24, 7 }
  0x94   : > { %p49_p8 = scmp.eq.s32.totalorder %s48_s13, 0  ;;  %s275_s14 = sadd.s32 %s3404_s15, %s3199_s9 }
  0x95   : > { %s268_s16 = scalar_lea.vmem [#allocation3], %s3196_s27  ;;  %s3200_s2 = sshll.u32 %s275_s14, 7 }
  0x96   : > { %s278_s29 = sshll.u32 %s268_s16, 4  ;;  %s4362_s8 = scalar_lea.hbm %s5826_s0, %s3200_s2  ;;  %s4357_s29 = int_to_ptr.vmem [resolvable:$true] %s278_s29 }
  0x97   : > { %s4355_s11 = scalar_select %p49_p8, %s4097_s20, %s51_s12  }
  0x98   : > { %p4368_p0 = pnand %p3581_p6, %p4336_p1  ;;  %s4372_s12 = scalar_lea.sflag [#allocation4], %s264_s17 }
  0x99   : > { %s3981_s27 = scalar_lea.hbm %s4362_s8, 8192  ;;  %s3986_s4 = scalar_lea.hbm %s5826_s0, 32768 }
  0x9a   : > { %p3982_p3 = scmp.ne.s32.totalorder %s4362_s8, %s3981_s27  ;;  %p3983_p5 = pneg %p4368_p0 }
  0x9b   : > { %p3987_p12 = scmp.lt.u32.totalorder %s4362_s8, %s5826_s0  ;;  %p3988_p11 = scmp.lt.u32.totalorder %s3986_s4, %s3981_s27 }
  0x9c   : > { %p3984_p7 = pnand %p3983_p5, %p3982_p3  ;;  %p3990_p1 = scmp.lt.u32.totalorder %s3981_s27, %s4362_s8 }
  0x9d   : > { %p3989_p13 = por %p3988_p11, %p3987_p12 }
  0x9e   : > { %p3985_p9 = pneg %p3984_p7 }
  0x9f   : > { %p3991_p10 = por %p3990_p1, %p3989_p13 }
  0xa1   : > { %p3992_p2 = pnand %p3991_p10, %p3985_p9 }
  0xa3   : > { %3995 = shalt.err (!%p3992_p2)
}
  0xa4   : > { %s3996_s17 = scalar_lea.vmem %s4357_s29, 8192  ;;  %s4125_s13 = smov [#allocation3]  }
  0xa5   : > { %p3997_p6 = scmp.ne.s32.totalorder %s4357_s29, %s3996_s17  ;;  %s4001_s15 = sshll.u32 %s4125_s13, 4  ;;  %s4002_s15 = int_to_ptr.vmem [resolvable:$false] %s4001_s15 }
  0xa6   : > { %s4003_s9 = scalar_lea.vmem %s4002_s15, 16384  ;;  %p4004_p7 = scmp.lt.s32.totalorder %s4357_s29, %s4002_s15 }
  0xa7   : > { %p3999_p8 = pnand %p3997_p6, %p3983_p5  ;;  %p4005_p12 = scmp.lt.s32.totalorder %s4003_s9, %s3996_s17 }
  0xa9   : > { %p4000_p3 = pneg %p3999_p8  ;;  %p4006_p11 = por %p4005_p12, %p4004_p7 }
  0xab   : > { %p4007_p13 = pnand %p4006_p11, %p4000_p3 }
  0xad   : > { %4010 = shalt.err (!%p4007_p13)
}
  0xae   : > { %s4126_s14 = smov 256   ;;  %s4127_s16 = smov 16  }
  0xaf   : > { %3572 = dma.hbm_to_vmem [thread:$0]  (!%p4368_p0), %s4362_s8, 8192, %s4357_s29, %s4372_s12, %s4126_s14, %s4126_s14, %s4127_s16  }
  0xb0   : > { %p5905_p5 = scmp.ne.s32.totalorder %s5893_s7, 0 }
  0xb2   : > { %290 = sbr.rel (%p5905_p5) target bundleno = 951 (0x3b7), region = 40 }
  0xb9   : > { %s4403_s27 = sand.u32 1, %s4093_s19   ;;  %p5906_p9 = scmp.ne.s32.totalorder %s5890_s30, 0 }
  0xba   : > { %s3202_s2 = sshll.u32 %s4403_s27, 9  ;;  %s293_s3 = scalar_lea.sflag [#allocation4], %s4403_s27 }
  0xbb   : > { %s4407_s4 = scalar_lea.vmem [#allocation3], %s3202_s2 }
  0xbc   : > { %4072 = dma.done.wait (%p5906_p9), %s293_s3, 8192  }
  0xbd   : > { %4074 = vsyncadd (%p5906_p9), %s293_s3, 4294959104  ;;  %p5907_p0 = scmp.ne.s32.totalorder %s5888_s28, 0 }
  0xbf   : > { %4076 = dma.done.wait (%p5907_p0), [#allocation7], 64  }
  0xc0   : > { %4078 = vsyncadd (%p5907_p0), [#allocation7], 4294967232 }
  0xc1   : > { %4080 = dma.done.wait (%p5907_p0), [#allocation10], 12384  }
  0xc2   : > { %4082 = vsyncadd (%p5907_p0), [#allocation10], 4294954912  ;;  %v4422_v0 = vld [vmem:[%s4407_s4] sm:$0xff]  ;;  %v4425_v1 = vld [vmem:[%s4407_s4 + $0x8] sm:$0xff]  ;;  %s3533_s28 = smul.u32 768, %s4403_s27  ;;  %s3033_s10 = scalar_lea.sflag [#allocation5], %s4403_s27 }
  0xc3   : > { %v4428_v2 = vld [vmem:[%s4407_s4 + $0x100] sm:$0xff]  ;;  %v414_v3 = vadd.f32 %v4425_v1, %v4422_v0  ;;  %v4433_v4 = vld [vmem:[%s4407_s4 + $0x108] sm:$0xff]  ;;  %v4436_v5 = vld [vmem:[%s4407_s4 + $0x10] sm:$0xff]  ;;  %s3534_s7 = smul.u32 192, %s4101_s21  ;;  %s4128_s13 = smov [#allocation12]  }
  0xc4   : > { %v4439_v6 = vld [vmem:[%s4407_s4 + $0x18] sm:$0xff]  ;;  %v462_v7 = vadd.f32 %v4433_v4, %v4428_v2  ;;  %v4444_v8 = vld [vmem:[%s4407_s4 + $0x110] sm:$0xff]  ;;  %v4454_v12 = vld [vmem:[%s4407_s4 + $0x20] sm:$0xff]  ;;  %s5462_s30 = scalar_lea.vmem [#allocation12], %s3533_s28  ;;  %s3535_s8 = smul.u32 384, %s4105_s22 }
  0xc5   : > { %v4447_v9 = vld [vmem:[%s4407_s4 + $0x118] sm:$0xff]  ;;  %415 = vadd.xlane.f32.xlu0 %v414_v3  ;;  %v417_v10 = vadd.f32 %v4439_v6, %v4436_v5  ;;  %v4457_v13 = vld [vmem:[%s4407_s4 + $0x28] sm:$0xff]  ;;  %v4460_v14 = vld [vmem:[%s4407_s4 + $0x30] sm:$0xff]  ;;  %s3051_s22 = sshll.u32 %s5462_s30, 4  ;;  %s4015_s15 = sshll.u32 %s4128_s13, 4  ;;  %s5765_s22 = int_to_ptr.vmem [resolvable:$true] %s3051_s22  ;;  %s4016_s15 = int_to_ptr.vmem [resolvable:$false] %s4015_s15 }
  0xc6   : > { %463 = vadd.xlane.f32.xlu1 %v462_v7  ;;  %v465_v11 = vadd.f32 %v4447_v9, %v4444_v8  ;;  %v4463_v15 = vld [vmem:[%s4407_s4 + $0x38] sm:$0xff]  ;;  %v420_v16 = vadd.f32 %v4457_v13, %v4454_v12  ;;  %v4470_v18 = vld [vmem:[%s4407_s4 + $0x120] sm:$0xff]  ;;  %v4473_v19 = vld [vmem:[%s4407_s4 + $0x128] sm:$0xff]  ;;  %s3048_s21 = sadd.s32 %s3535_s8, %s3534_s7  ;;  %s4011_s17 = scalar_lea.vmem %s5765_s22, 12288 }
  0xc7   : > { %v423_v17 = vadd.f32 %v4463_v15, %v4460_v14  ;;  %v4476_v20 = vld [vmem:[%s4407_s4 + $0x130] sm:$0xff]  ;;  %v4479_v21 = vld [vmem:[%s4407_s4 + $0x138] sm:$0xff]  ;;  %v468_v22 = vadd.f32 %v4473_v19, %v4470_v18  ;;  %v4486_v24 = vld [vmem:[%s4407_s4 + $0x40] sm:$0xff]  ;;  %s3401_s29 = sshll.u32 %s3048_s21, 6  ;;  %p4012_p1 = scmp.ne.s32.totalorder %s5765_s22, %s4011_s17 }
  0xc8   : > { %v471_v23 = vadd.f32 %v4479_v21, %v4476_v20  ;;  %v4489_v25 = vld [vmem:[%s4407_s4 + $0x48] sm:$0xff]  ;;  %v4492_v26 = vld [vmem:[%s4407_s4 + $0x50] sm:$0xff]  ;;  %v4495_v27 = vld [vmem:[%s4407_s4 + $0x58] sm:$0xff]  ;;  %s5771_s26 = scalar_lea.hbm %s5831_s5, %s3401_s29  ;;  %s4017_s9 = scalar_lea.vmem %s4016_s15, 24576 }
  0xc9   : > { %418 = vadd.xlane.f32.xlu0 %v417_v10  ;;  %v426_v28 = vadd.f32 %v4489_v25, %v4486_v24  ;;  %v429_v29 = vadd.f32 %v4495_v27, %v4492_v26  ;;  %v4502_v30 = vld [vmem:[%s4407_s4 + $0x140] sm:$0xff]  ;;  %v4505_v31 = vld [vmem:[%s4407_s4 + $0x148] sm:$0xff]  ;;  %v4508_v32 = vld [vmem:[%s4407_s4 + $0x150] sm:$0xff]  ;;  %p4013_p10 = pnand %p4012_p1, %p4342_p4  ;;  %p4018_p6 = scmp.lt.s32.totalorder %s5765_s22, %s4016_s15 }
  0xca   : > { %466 = vadd.xlane.f32.xlu1 %v465_v11  ;;  %v4511_v33 = vld [vmem:[%s4407_s4 + $0x158] sm:$0xff]  ;;  %v474_v34 = vadd.f32 %v4505_v31, %v4502_v30  ;;  %v4518_v36 = vld [vmem:[%s4407_s4 + $0x60] sm:$0xff]  ;;  %v4521_v37 = vld [vmem:[%s4407_s4 + $0x68] sm:$0xff]  ;;  %p4019_p8 = scmp.lt.s32.totalorder %s4017_s9, %s4011_s17 }
  0xcb   : > { %v477_v35 = vadd.f32 %v4511_v33, %v4508_v32  ;;  %v4524_v38 = vld [vmem:[%s4407_s4 + $0x70] sm:$0xff]  ;;  %v4527_v39 = vld [vmem:[%s4407_s4 + $0x78] sm:$0xff]  ;;  %v4530_v40 = vld [vmem:[%s4407_s4 + $0x160] sm:$0xff]  ;;  %v432_v42 = vadd.f32 %v4521_v37, %v4518_v36  ;;  %p4014_p2 = pneg %p4013_p10 }
  0xcc   : > { %v4533_v41 = vld [vmem:[%s4407_s4 + $0x168] sm:$0xff]  ;;  %v4538_v43 = vld [vmem:[%s4407_s4 + $0x170] sm:$0xff]  ;;  %v4541_v44 = vld [vmem:[%s4407_s4 + $0x178] sm:$0xff]  ;;  %v435_v45 = vadd.f32 %v4527_v39, %v4524_v38  ;;  %p4020_p3 = por %p4019_p8, %p4018_p6 }
  0xcd   : > { %421 = vadd.xlane.f32.xlu0 %v420_v16  ;;  %v4546_v46 = vld [vmem:[%s4407_s4 + $0x80] sm:$0xff]  ;;  %v4549_v47 = vld [vmem:[%s4407_s4 + $0x88] sm:$0xff]  ;;  %v480_v48 = vadd.f32 %v4533_v41, %v4530_v40  ;;  %v4554_v49 = vld [vmem:[%s4407_s4 + $0x90] sm:$0xff]  ;;  %v483_v51 = vadd.f32 %v4541_v44, %v4538_v43 }
  0xce   : > { %424 = vadd.xlane.f32.xlu1 %v423_v17  ;;  %v4557_v50 = vld [vmem:[%s4407_s4 + $0x98] sm:$0xff]  ;;  %v4562_v52 = vld [vmem:[%s4407_s4 + $0x180] sm:$0xff]  ;;  %v4565_v53 = vld [vmem:[%s4407_s4 + $0x188] sm:$0xff]  ;;  %v438_v54 = vadd.f32 %v4549_v47, %v4546_v46  ;;  %p4021_p7 = pnand %p4020_p3, %p4014_p2 }
  0xcf   : > { %v4570_v55 = vld [vmem:[%s4407_s4 + $0x190] sm:$0xff]  ;;  %v4573_v56 = vld [vmem:[%s4407_s4 + $0x198] sm:$0xff]  ;;  %v441_v57 = vadd.f32 %v4557_v50, %v4554_v49  ;;  %v4578_v58 = vld [vmem:[%s4407_s4 + $0xa0] sm:$0xff]  ;;  %v486_v60 = vadd.f32 %v4565_v53, %v4562_v52 }
  0xd0   : > { %v4581_v59 = vld [vmem:[%s4407_s4 + $0xa8] sm:$0xff]  ;;  %v4586_v61 = vld [vmem:[%s4407_s4 + $0xb0] sm:$0xff]  ;;  %v4589_v62 = vld [vmem:[%s4407_s4 + $0xb8] sm:$0xff]  ;;  %v489_v63 = vadd.f32 %v4573_v56, %v4570_v55 }
  0xd1   : > { %469 = vadd.xlane.f32.xlu0 %v468_v22  ;;  %v4594_v3 = vld [vmem:[%s4407_s4 + $0x1a0] sm:$0xff]  ;;  %v4597_v7 = vld [vmem:[%s4407_s4 + $0x1a8] sm:$0xff]  ;;  %v444_v10 = vadd.f32 %v4581_v59, %v4578_v58  ;;  %v4602_v11 = vld [vmem:[%s4407_s4 + $0x1b0] sm:$0xff]  ;;  %v447_v17 = vadd.f32 %v4589_v62, %v4586_v61 }
  0xd2   : > { %472 = vadd.xlane.f32.xlu1 %v471_v23  ;;  %v4605_v16 = vld [vmem:[%s4407_s4 + $0x1b8] sm:$0xff]  ;;  %v4610_v22 = vld [vmem:[%s4407_s4 + $0xc0] sm:$0xff]  ;;  %v4613_v23 = vld [vmem:[%s4407_s4 + $0xc8] sm:$0xff] }
  0xd3   : > { %5908 = vst [vmem:[#allocation20_spill] sm:$0xff] %v4613_v23 }
  0xd5   : > { %427 = vadd.xlane.f32.xlu0 %v426_v28  ;;  %v492_v28 = vadd.f32 %v4597_v7, %v4594_v3 }
  0xd6   : > { %430 = vadd.xlane.f32.xlu1 %v429_v29  ;;  %v4618_v29 = vld [vmem:[%s4407_s4 + $0xd0] sm:$0xff] }
  0xd7   : > { %5909 = vst [vmem:[#allocation21_spill] sm:$0xff] %v4618_v29 }
  0xd9   : > { %475 = vadd.xlane.f32.xlu0 %v474_v34  ;;  %v4621_v34 = vld [vmem:[%s4407_s4 + $0xd8] sm:$0xff] }
  0xda   : > { %478 = vadd.xlane.f32.xlu1 %v477_v35  ;;  %5910 = vst [vmem:[#allocation22_spill] sm:$0xff] %v4621_v34  ;;  %v495_v35 = vadd.f32 %v4605_v16, %v4602_v11 }
  0xdd   : > { %433 = vadd.xlane.f32.xlu0 %v432_v42  ;;  %v4626_v42 = vld [vmem:[%s4407_s4 + $0x1c0] sm:$0xff] }
  0xde   : > { %436 = vadd.xlane.f32.xlu1 %v435_v45  ;;  %v4629_v45 = vld [vmem:[%s4407_s4 + $0x1c8] sm:$0xff] }
  0xdf   : > { %5911 = vst [vmem:[#allocation23_spill] sm:$0xff] %v4629_v45 }
  0xe1   : > { %481 = vadd.xlane.f32.xlu0 %v480_v48  ;;  %v450_v48 = vadd.f32 %v4613_v23, %v4610_v22  ;;  %v4665_v23 = vld [vmem:[%s4407_s4 + $0x1e8] sm:$0xff] }
  0xe2   : > { %484 = vadd.xlane.f32.xlu1 %v483_v51  ;;  %v4634_v51 = vld [vmem:[%s4407_s4 + $0x1d0] sm:$0xff]  ;;  %5917 = vst [vmem:[#allocation29_spill] sm:$0xff] %v4665_v23 }
  0xe5   : > { %439 = vadd.xlane.f32.xlu0 %v438_v54  ;;  %v4637_v54 = vld [vmem:[%s4407_s4 + $0x1d8] sm:$0xff] }
  0xe6   : > { %442 = vadd.xlane.f32.xlu1 %v441_v57  ;;  %5912 = vst [vmem:[#allocation24_spill] sm:$0xff] %v4637_v54  ;;  %v453_v57 = vadd.f32 %v4621_v34, %v4618_v29 }
  0xe9   : > { %487 = vadd.xlane.f32.xlu0 %v486_v60  ;;  %v4642_v60 = vld [vmem:[%s4407_s4 + $0xe0] sm:$0xff] }
  0xea   : > { %490 = vadd.xlane.f32.xlu1 %v489_v63  ;;  %v4645_v63 = vld [vmem:[%s4407_s4 + $0xe8] sm:$0xff] }
  0xeb   : > { %5913 = vst [vmem:[#allocation25_spill] sm:$0xff] %v4645_v63  ;;  %v456_v34 = vadd.f32 %v4645_v63, %v4642_v60  ;;  %v3666_v63 = vld [vmem:[#allocation9 + $0x30] ss:$24 sps:$4 sm:$0xff]  }
  0xed   : > { %445 = vadd.xlane.f32.xlu0 %v444_v10  ;;  %v498_v10 = vadd.f32 %v4629_v45, %v4626_v42  ;;  %v4671_v45 = vld [vmem:[%s4407_s4 + $0x1f8] sm:$0xff] }
  0xee   : > { %448 = vadd.xlane.f32.xlu1 %v447_v17  ;;  %v501_v17 = vadd.f32 %v4637_v54, %v4634_v51  ;;  %5919 = vst [vmem:[#allocation31_spill] sm:$0xff] %v4671_v45 }
  0xf1   : > { %493 = vadd.xlane.f32.xlu0 %v492_v28  ;;  %v4652_v28 = vld [vmem:[%s4407_s4 + $0xf0] sm:$0xff] }
  0xf2   : > { %496 = vadd.xlane.f32.xlu1 %v495_v35  ;;  %5914 = vst [vmem:[#allocation26_spill] sm:$0xff] %v4652_v28  ;;  %v4655_v35 = vld [vmem:[%s4407_s4 + $0xf8] sm:$0xff] }
  0xf3   : > { %5915 = vst [vmem:[#allocation27_spill] sm:$0xff] %v4655_v35  ;;  %v459_v29 = vadd.f32 %v4655_v35, %v4652_v28  ;;  %v3663_v35 = vld [vmem:[#allocation9] ss:$24 sps:$4 sm:$0xff]   ;;  %v3664_v28 = vld [vmem:[#allocation9 + $0x34] ss:$24 sps:$4 sm:$0xff]  }
  0xf5   : > { %451 = vadd.xlane.f32.xlu0 %v450_v48  ;;  %v4662_v48 = vld [vmem:[%s4407_s4 + $0x1e0] sm:$0xff] }
  0xf6   : > { %454 = vadd.xlane.f32.xlu1 %v453_v57  ;;  %5916 = vst [vmem:[#allocation28_spill] sm:$0xff] %v4662_v48  ;;  %v4668_v57 = vld [vmem:[%s4407_s4 + $0x1f0] sm:$0xff]  ;;  %v504_v54 = vadd.f32 %v4665_v23, %v4662_v48  ;;  %v3669_v23 = vld [vmem:[#allocation9 + $0x60] ss:$24 sps:$4 sm:$0xff]  }
  0xf7   : > { %5918 = vst [vmem:[#allocation30_spill] sm:$0xff] %v4668_v57 }
  0xf9   : > { %499 = vadd.xlane.f32.xlu0 %v498_v10  ;;  %v507_v10 = vadd.f32 %v4671_v45, %v4668_v57 }
  0xfa   : > { %502 = vadd.xlane.f32.xlu1 %v501_v17  ;;  %v3661_v17 = vld [vmem:[#allocation9 + $0x4] ss:$24 sps:$4 sm:$0xff]  }
  0xfb   : > { %1781 = vmatprep.subr.bf16.mxu0 %v3661_v17  ;;  %3501 = vmatprep.subr.bf16.mxu1 %v3661_v17  ;;  %v3675_v17 = vld [vmem:[#allocation9 + $0xc0] ss:$24 sps:$4 sm:$0xff]  }
  0xfc   : > { %1782 = vmatpush1.bf16.msra.mxu0 %v3663_v35  ;;  %3517 = vmatpush1.bf16.msra.mxu1 %v3663_v35  ;;  %v3676_v35 = vld [vmem:[#allocation9 + $0xf4] ss:$24 sps:$4 sm:$0xff]  }
  0xfd   : > { %457 = vadd.xlane.f32.xlu0 %v456_v34  ;;  %1783 = vmatprep.subr.bf16.mxu0 %v3664_v28  ;;  %v3667_v34 = vld [vmem:[#allocation9 + $0x64] ss:$24 sps:$4 sm:$0xff]  }
  0xfe   : > { %460 = vadd.xlane.f32.xlu1 %v459_v29  ;;  %3502 = vmatprep.subr.bf16.mxu1 %v3664_v28  ;;  %v3670_v29 = vld [vmem:[#allocation9 + $0x94] ss:$24 sps:$4 sm:$0xff]   ;;  %v3678_v28 = vld [vmem:[#allocation9 + $0xf0] ss:$24 sps:$4 sm:$0xff]  }
 0x100   : > { %1784 = vmatpush1.bf16.msra.mxu0 %v3666_v63  ;;  %3518 = vmatpush1.bf16.msra.mxu1 %v3666_v63  ;;  %v3679_v63 = vld [vmem:[#allocation9 + $0x124] ss:$24 sps:$4 sm:$0xff]  }
 0x101   : > { %505 = vadd.xlane.f32.xlu0 %v504_v54  ;;  %1785 = vmatprep.subr.bf16.mxu0 %v3667_v34  ;;  %v3672_v54 = vld [vmem:[#allocation9 + $0x90] ss:$24 sps:$4 sm:$0xff]  }
 0x102   : > { %508 = vadd.xlane.f32.xlu1 %v507_v10  ;;  %3503 = vmatprep.subr.bf16.mxu1 %v3667_v34  ;;  %v3673_v10 = vld [vmem:[#allocation9 + $0xc4] ss:$24 sps:$4 sm:$0xff]   ;;  %v3681_v34 = vld [vmem:[#allocation9 + $0x120] ss:$24 sps:$4 sm:$0xff]  }
 0x104   : > { %1786 = vmatpush1.bf16.msra.mxu0 %v3669_v23  ;;  %3519 = vmatpush1.bf16.msra.mxu1 %v3669_v23  ;;  %v3682_v23 = vld [vmem:[#allocation9 + $0x154] ss:$24 sps:$4 sm:$0xff]  }
 0x105   : > { %1787 = vmatprep.subr.bf16.mxu0 %v3670_v29  ;;  %3504 = vmatprep.subr.bf16.mxu1 %v3670_v29  ;;  %v3684_v29 = vld [vmem:[#allocation9 + $0x150] ss:$24 sps:$4 sm:$0xff]  }
 0x108   : > { %1788 = vmatpush1.bf16.msra.mxu0 %v3672_v54  ;;  %3520 = vmatpush1.bf16.msra.mxu1 %v3672_v54  ;;  %v3685_v54 = vld [vmem:[#allocation9 + $0x184] ss:$24 sps:$4 sm:$0xff]  }
 0x109   : > { %1789 = vmatprep.subr.bf16.mxu0 %v3673_v10  ;;  %3505 = vmatprep.subr.bf16.mxu1 %v3673_v10  ;;  %v3687_v10 = vld [vmem:[#allocation9 + $0x180] ss:$24 sps:$4 sm:$0xff]  }
 0x10c   : > { %1790 = vmatpush1.bf16.msra.mxu0 %v3675_v17  ;;  %3521 = vmatpush1.bf16.msra.mxu1 %v3675_v17 }
 0x10d   : > { %1791 = vmatprep.subr.bf16.mxu0 %v3676_v35  ;;  %3506 = vmatprep.subr.bf16.mxu1 %v3676_v35 }
 0x110   : > { %1792 = vmatpush1.bf16.msra.mxu0 %v3678_v28  ;;  %3522 = vmatpush1.bf16.msra.mxu1 %v3678_v28 }
 0x111   : > { %1793 = vmatprep.subr.bf16.mxu0 %v3679_v63  ;;  %3507 = vmatprep.subr.bf16.mxu1 %v3679_v63 }
 0x114   : > { %1794 = vmatpush1.bf16.msra.mxu0 %v3681_v34  ;;  %3523 = vmatpush1.bf16.msra.mxu1 %v3681_v34 }
 0x115   : > { %1795 = vmatprep.subr.bf16.mxu0 %v3682_v23  ;;  %3508 = vmatprep.subr.bf16.mxu1 %v3682_v23 }
 0x118   : > { %1796 = vmatpush1.bf16.msra.mxu0 %v3684_v29  ;;  %3524 = vmatpush1.bf16.msra.mxu1 %v3684_v29 }
 0x119   : > { %1797 = vmatprep.subr.bf16.mxu0 %v3685_v54  ;;  %3509 = vmatprep.subr.bf16.mxu1 %v3685_v54 }
 0x11c   : > { %1798 = vmatpush1.bf16.msra.mxu0 %v3687_v10  ;;  %3525 = vmatpush1.bf16.msra.mxu1 %v3687_v10 }
 0x152   : > { %v416_v17 = vpop.xlane.xlu0 %415 }
 0x153   : > { %v511_v35 = vmul.f32 0.00390625, %v416_v17  ;;  %v464_v28 = vpop.xlane.xlu1 %463 }
 0x154   : > { %v527_v45 = vmul.f32 0.00390625, %v464_v28 }
 0x155   : > { %v4678_v63 = vsub.f32 %v4422_v0, %v511_v35  ;;  %v4681_v34 = vsub.f32 %v4425_v1, %v511_v35 }
 0x156   : > { %v4684_v23 = vsub.f32 %v4428_v2, %v527_v45  ;;  %v4687_v29 = vsub.f32 %v4433_v4, %v527_v45  ;;  %v419_v57 = vpop.xlane.xlu0 %418 }
 0x157   : > { %5920 = vst [vmem:[#allocation32_spill] sm:$0xff] %v4678_v63  ;;  %5921 = vst [vmem:[#allocation33_spill] sm:$0xff] %v4681_v34  ;;  %v512_v54 = vmul.f32 0.00390625, %v419_v57  ;;  %v467_v48 = vpop.xlane.xlu1 %466  ;;  %v607_v10 = vmul.f32 %v4678_v63, %v4678_v63  ;;  %v608_v17 = vmul.f32 %v4681_v34, %v4681_v34 }
 0x158   : > { %5922 = vst [vmem:[#allocation34_spill] sm:$0xff] %v4684_v23  ;;  %5923 = vst [vmem:[#allocation35_spill] sm:$0xff] %v4687_v29  ;;  %v528_v0 = vmul.f32 0.00390625, %v467_v48  ;;  %v639_v1 = vmul.f32 %v4684_v23, %v4684_v23  ;;  %v640_v2 = vmul.f32 %v4687_v29, %v4687_v29 }
 0x159   : > { %v4698_v35 = vsub.f32 %v4436_v5, %v512_v54  ;;  %v4701_v4 = vsub.f32 %v4439_v6, %v512_v54  ;;  %v671_v45 = vadd.f32 %v608_v17, %v607_v10 }
 0x15a   : > { %v4704_v57 = vsub.f32 %v4444_v8, %v528_v0  ;;  %v4707_v28 = vsub.f32 %v4447_v9, %v528_v0  ;;  %v422_v48 = vpop.xlane.xlu0 %421  ;;  %v719_v34 = vadd.f32 %v640_v2, %v639_v1 }
 0x15b   : > { %v513_v63 = vmul.f32 0.00390625, %v422_v48  ;;  %672 = vadd.xlane.f32.xlu0 %v671_v45  ;;  %v425_v23 = vpop.xlane.xlu1 %424  ;;  %v609_v29 = vmul.f32 %v4698_v35, %v4698_v35  ;;  %v610_v5 = vmul.f32 %v4701_v4, %v4701_v4 }
 0x15c   : > { %v514_v6 = vmul.f32 0.00390625, %v425_v23  ;;  %v641_v54 = vmul.f32 %v4704_v57, %v4704_v57  ;;  %v642_v8 = vmul.f32 %v4707_v28, %v4707_v28 }
 0x15d   : > { %v4718_v9 = vsub.f32 %v4454_v12, %v513_v63  ;;  %v4721_v10 = vsub.f32 %v4457_v13, %v513_v63  ;;  %v674_v17 = vadd.f32 %v610_v5, %v609_v29 }
 0x15e   : > { %v4724_v0 = vsub.f32 %v4460_v14, %v514_v6  ;;  %v4727_v1 = vsub.f32 %v4463_v15, %v514_v6  ;;  %v470_v23 = vpop.xlane.xlu0 %469  ;;  %v722_v48 = vadd.f32 %v642_v8, %v641_v54 }
 0x15f   : > { %v529_v2 = vmul.f32 0.00390625, %v470_v23  ;;  %720 = vadd.xlane.f32.xlu0 %v719_v34  ;;  %675 = vadd.xlane.f32.xlu1 %v674_v17  ;;  %v473_v45 = vpop.xlane.xlu1 %472  ;;  %v611_v12 = vmul.f32 %v4718_v9, %v4718_v9  ;;  %v612_v13 = vmul.f32 %v4721_v10, %v4721_v10 }
 0x160   : > { %v530_v63 = vmul.f32 0.00390625, %v473_v45  ;;  %v613_v14 = vmul.f32 %v4724_v0, %v4724_v0  ;;  %v614_v15 = vmul.f32 %v4727_v1, %v4727_v1 }
 0x161   : > { %v4738_v29 = vsub.f32 %v4470_v18, %v529_v2  ;;  %v4741_v34 = vsub.f32 %v4473_v19, %v529_v2  ;;  %v677_v5 = vadd.f32 %v612_v13, %v611_v12 }
 0x162   : > { %v4744_v6 = vsub.f32 %v4476_v20, %v530_v63  ;;  %v4747_v54 = vsub.f32 %v4479_v21, %v530_v63  ;;  %v428_v8 = vpop.xlane.xlu0 %427  ;;  %v680_v45 = vadd.f32 %v614_v15, %v613_v14 }
 0x163   : > { %v515_v17 = vmul.f32 0.00390625, %v428_v8  ;;  %723 = vadd.xlane.f32.xlu1 %v722_v48  ;;  %678 = vadd.xlane.f32.xlu0 %v677_v5  ;;  %v431_v23 = vpop.xlane.xlu1 %430  ;;  %v643_v18 = vmul.f32 %v4738_v29, %v4738_v29  ;;  %v644_v19 = vmul.f32 %v4741_v34, %v4741_v34 }
 0x164   : > { %v516_v2 = vmul.f32 0.00390625, %v431_v23  ;;  %v645_v20 = vmul.f32 %v4744_v6, %v4744_v6  ;;  %v646_v21 = vmul.f32 %v4747_v54, %v4747_v54 }
 0x165   : > { %v4758_v12 = vsub.f32 %v4486_v24, %v515_v17  ;;  %v4761_v48 = vsub.f32 %v4489_v25, %v515_v17  ;;  %v725_v13 = vadd.f32 %v644_v19, %v643_v18  ;;  %v3688_v17 = vld [vmem:[#allocation9 + $0x1b4] ss:$24 sps:$4 sm:$0xff]   ;;  %v3690_v19 = vld [vmem:[#allocation9 + $0x1b0] ss:$24 sps:$4 sm:$0xff]  }
 0x166   : > { %v4764_v63 = vsub.f32 %v4492_v26, %v516_v2  ;;  %v4767_v14 = vsub.f32 %v4495_v27, %v516_v2  ;;  %v476_v15 = vpop.xlane.xlu0 %475  ;;  %v728_v23 = vadd.f32 %v646_v21, %v645_v20  ;;  %1799 = vmatprep.subr.bf16.mxu0 %v3688_v17  ;;  %3510 = vmatprep.subr.bf16.mxu1 %v3688_v17 }
 0x167   : > { %v531_v5 = vmul.f32 0.00390625, %v476_v15  ;;  %681 = vadd.xlane.f32.xlu1 %v680_v45  ;;  %726 = vadd.xlane.f32.xlu0 %v725_v13  ;;  %v479_v8 = vpop.xlane.xlu1 %478  ;;  %v615_v24 = vmul.f32 %v4758_v12, %v4758_v12  ;;  %v616_v25 = vmul.f32 %v4761_v48, %v4761_v48 }
 0x168   : > { %5924 = vst [vmem:[#allocation36_spill] sm:$0xff] %v4764_v63  ;;  %v532_v18 = vmul.f32 0.00390625, %v479_v8  ;;  %v617_v26 = vmul.f32 %v4764_v63, %v4764_v63  ;;  %v618_v27 = vmul.f32 %v4767_v14, %v4767_v14  ;;  %1800 = vmatpush1.bf16.msra.mxu0 %v3690_v19  ;;  %3526 = vmatpush1.bf16.msra.mxu1 %v3690_v19 }
 0x169   : > { %v4778_v45 = vsub.f32 %v4502_v30, %v531_v5  ;;  %v4781_v2 = vsub.f32 %v4505_v31, %v531_v5  ;;  %v683_v20 = vadd.f32 %v616_v25, %v615_v24  ;;  %v3691_v25 = vld [vmem:[#allocation9 + $0x1e4] ss:$24 sps:$4 sm:$0xff]  }
 0x16a   : > { %v4784_v21 = vsub.f32 %v4508_v32, %v532_v18  ;;  %v4787_v13 = vsub.f32 %v4511_v33, %v532_v18  ;;  %v434_v15 = vpop.xlane.xlu0 %433  ;;  %v686_v63 = vadd.f32 %v618_v27, %v617_v26  ;;  %v3693_v26 = vld [vmem:[#allocation9 + $0x1e0] ss:$24 sps:$4 sm:$0xff]   ;;  %1801 = vmatprep.subr.bf16.mxu0 %v3691_v25  ;;  %3511 = vmatprep.subr.bf16.mxu1 %v3691_v25 }
 0x16b   : > { %v517_v8 = vmul.f32 0.00390625, %v434_v15  ;;  %729 = vadd.xlane.f32.xlu1 %v728_v23  ;;  %684 = vadd.xlane.f32.xlu0 %v683_v20  ;;  %v437_v30 = vpop.xlane.xlu1 %436  ;;  %v647_v31 = vmul.f32 %v4778_v45, %v4778_v45  ;;  %v648_v5 = vmul.f32 %v4781_v2, %v4781_v2 }
 0x16c   : > { %v518_v24 = vmul.f32 0.00390625, %v437_v30  ;;  %v649_v32 = vmul.f32 %v4784_v21, %v4784_v21  ;;  %v650_v33 = vmul.f32 %v4787_v13, %v4787_v13  ;;  %1802 = vmatpush1.bf16.msra.mxu0 %v3693_v26  ;;  %3527 = vmatpush1.bf16.msra.mxu1 %v3693_v26 }
 0x16d   : > { %v4798_v17 = vsub.f32 %v4518_v36, %v517_v8  ;;  %v4801_v23 = vsub.f32 %v4521_v37, %v517_v8  ;;  %v731_v18 = vadd.f32 %v648_v5, %v647_v31  ;;  %v3694_v5 = vld [vmem:[#allocation9 + $0x214] ss:$24 sps:$4 sm:$0xff]  }
 0x16e   : > { %v4804_v27 = vsub.f32 %v4524_v38, %v518_v24  ;;  %v4807_v19 = vsub.f32 %v4527_v39, %v518_v24  ;;  %v482_v20 = vpop.xlane.xlu0 %481  ;;  %v734_v36 = vadd.f32 %v650_v33, %v649_v32  ;;  %v3696_v33 = vld [vmem:[#allocation9 + $0x210] ss:$24 sps:$4 sm:$0xff]   ;;  %1803 = vmatprep.subr.bf16.mxu0 %v3694_v5  ;;  %3512 = vmatprep.subr.bf16.mxu1 %v3694_v5 }
 0x16f   : > { %v533_v15 = vmul.f32 0.00390625, %v482_v20  ;;  %687 = vadd.xlane.f32.xlu1 %v686_v63  ;;  %732 = vadd.xlane.f32.xlu0 %v731_v18  ;;  %v485_v30 = vpop.xlane.xlu1 %484  ;;  %v619_v37 = vmul.f32 %v4798_v17, %v4798_v17  ;;  %v620_v8 = vmul.f32 %v4801_v23, %v4801_v23 }
 0x170   : > { %v534_v31 = vmul.f32 0.00390625, %v485_v30  ;;  %v621_v38 = vmul.f32 %v4804_v27, %v4804_v27  ;;  %v622_v39 = vmul.f32 %v4807_v19, %v4807_v19  ;;  %1804 = vmatpush1.bf16.msra.mxu0 %v3696_v33  ;;  %3528 = vmatpush1.bf16.msra.mxu1 %v3696_v33 }
 0x171   : > { %v4818_v63 = vsub.f32 %v4530_v40, %v533_v15  ;;  %v4821_v24 = vsub.f32 %v4533_v41, %v533_v15  ;;  %v689_v32 = vadd.f32 %v620_v8, %v619_v37  ;;  %v3697_v8 = vld [vmem:[#allocation9 + $0x244] ss:$24 sps:$4 sm:$0xff]  }
 0x172   : > { %v4824_v25 = vsub.f32 %v4538_v43, %v534_v31  ;;  %v4827_v18 = vsub.f32 %v4541_v44, %v534_v31  ;;  %v440_v20 = vpop.xlane.xlu0 %439  ;;  %v692_v40 = vadd.f32 %v622_v39, %v621_v38  ;;  %v3699_v39 = vld [vmem:[#allocation9 + $0x240] ss:$24 sps:$4 sm:$0xff]   ;;  %1805 = vmatprep.subr.bf16.mxu0 %v3697_v8  ;;  %3513 = vmatprep.subr.bf16.mxu1 %v3697_v8 }
 0x173   : > { %v519_v30 = vmul.f32 0.00390625, %v440_v20  ;;  %735 = vadd.xlane.f32.xlu1 %v734_v36  ;;  %690 = vadd.xlane.f32.xlu0 %v689_v32  ;;  %v443_v26 = vpop.xlane.xlu1 %442  ;;  %v651_v41 = vmul.f32 %v4818_v63, %v4818_v63  ;;  %v652_v15 = vmul.f32 %v4821_v24, %v4821_v24 }
 0x174   : > { %v520_v37 = vmul.f32 0.00390625, %v443_v26  ;;  %v653_v43 = vmul.f32 %v4824_v25, %v4824_v25  ;;  %v654_v44 = vmul.f32 %v4827_v18, %v4827_v18  ;;  %1806 = vmatpush1.bf16.msra.mxu0 %v3699_v39  ;;  %3529 = vmatpush1.bf16.msra.mxu1 %v3699_v39 }
 0x175   : > { %v4838_v36 = vsub.f32 %v4546_v46, %v519_v30  ;;  %v4841_v31 = vsub.f32 %v4549_v47, %v519_v30  ;;  %v737_v38 = vadd.f32 %v652_v15, %v651_v41  ;;  %v3700_v15 = vld [vmem:[#allocation9 + $0x274] ss:$24 sps:$4 sm:$0xff]  }
 0x176   : > { %v4844_v5 = vsub.f32 %v4554_v49, %v520_v37  ;;  %v4847_v32 = vsub.f32 %v4557_v50, %v520_v37  ;;  %v488_v20 = vpop.xlane.xlu0 %487  ;;  %v740_v46 = vadd.f32 %v654_v44, %v653_v43  ;;  %v3702_v44 = vld [vmem:[#allocation9 + $0x270] ss:$24 sps:$4 sm:$0xff]   ;;  %1807 = vmatprep.subr.bf16.mxu0 %v3700_v15  ;;  %3514 = vmatprep.subr.bf16.mxu1 %v3700_v15 }
 0x177   : > { %v535_v26 = vmul.f32 0.00390625, %v488_v20  ;;  %693 = vadd.xlane.f32.xlu1 %v692_v40  ;;  %738 = vadd.xlane.f32.xlu0 %v737_v38  ;;  %v491_v33 = vpop.xlane.xlu1 %490  ;;  %v623_v47 = vmul.f32 %v4838_v36, %v4838_v36  ;;  %v624_v30 = vmul.f32 %v4841_v31, %v4841_v31 }
 0x178   : > { %v536_v41 = vmul.f32 0.00390625, %v491_v33  ;;  %v625_v49 = vmul.f32 %v4844_v5, %v4844_v5  ;;  %v626_v50 = vmul.f32 %v4847_v32, %v4847_v32  ;;  %1808 = vmatpush1.bf16.msra.mxu0 %v3702_v44  ;;  %3530 = vmatpush1.bf16.msra.mxu1 %v3702_v44 }
 0x179   : > { %v4858_v40 = vsub.f32 %v4562_v52, %v535_v26  ;;  %v4861_v37 = vsub.f32 %v4565_v53, %v535_v26  ;;  %v695_v43 = vadd.f32 %v624_v30, %v623_v47  ;;  %v3703_v30 = vld [vmem:[#allocation9 + $0x2a4] ss:$24 sps:$4 sm:$0xff]  }
 0x17a   : > { %v4864_v8 = vsub.f32 %v4570_v55, %v536_v41  ;;  %v4867_v38 = vsub.f32 %v4573_v56, %v536_v41  ;;  %v446_v20 = vpop.xlane.xlu0 %445  ;;  %v698_v52 = vadd.f32 %v626_v50, %v625_v49  ;;  %v3705_v50 = vld [vmem:[#allocation9 + $0x2a0] ss:$24 sps:$4 sm:$0xff]   ;;  %1809 = vmatprep.subr.bf16.mxu0 %v3703_v30  ;;  %3515 = vmatprep.subr.bf16.mxu1 %v3703_v30 }
 0x17b   : > { %v521_v33 = vmul.f32 0.00390625, %v446_v20  ;;  %741 = vadd.xlane.f32.xlu1 %v740_v46  ;;  %696 = vadd.xlane.f32.xlu0 %v695_v43  ;;  %v449_v39 = vpop.xlane.xlu1 %448  ;;  %v655_v53 = vmul.f32 %v4858_v40, %v4858_v40  ;;  %v656_v26 = vmul.f32 %v4861_v37, %v4861_v37 }
 0x17c   : > { %v522_v47 = vmul.f32 0.00390625, %v449_v39  ;;  %v657_v55 = vmul.f32 %v4864_v8, %v4864_v8  ;;  %v658_v56 = vmul.f32 %v4867_v38, %v4867_v38  ;;  %1810 = vmatpush1.bf16.msra.mxu0 %v3705_v50  ;;  %3531 = vmatpush1.bf16.msra.mxu1 %v3705_v50 }
 0x17d   : > { %v4878_v46 = vsub.f32 %v4578_v58, %v521_v33  ;;  %v4881_v41 = vsub.f32 %v4581_v59, %v521_v33  ;;  %v743_v49 = vadd.f32 %v656_v26, %v655_v53  ;;  %v3706_v26 = vld [vmem:[#allocation9 + $0x2d4] ss:$24 sps:$4 sm:$0xff]  }
 0x17e   : > { %v4884_v15 = vsub.f32 %v4586_v61, %v522_v47  ;;  %v4887_v43 = vsub.f32 %v4589_v62, %v522_v47  ;;  %v494_v20 = vpop.xlane.xlu0 %493  ;;  %v746_v58 = vadd.f32 %v658_v56, %v657_v55  ;;  %v3708_v56 = vld [vmem:[#allocation9 + $0x2d0] ss:$24 sps:$4 sm:$0xff]   ;;  %1811 = vmatprep.subr.bf16.mxu0 %v3706_v26  ;;  %3516 = vmatprep.subr.bf16.mxu1 %v3706_v26 }
 0x17f   : > { %v537_v39 = vmul.f32 0.00390625, %v494_v20  ;;  %699 = vadd.xlane.f32.xlu1 %v698_v52  ;;  %744 = vadd.xlane.f32.xlu0 %v743_v49  ;;  %v497_v44 = vpop.xlane.xlu1 %496  ;;  %v627_v59 = vmul.f32 %v4878_v46, %v4878_v46  ;;  %v628_v33 = vmul.f32 %v4881_v41, %v4881_v41  ;;  %v5933_v26 = vld [vmem:[#allocation21_spill] sm:$0xff] }
 0x180   : > { %5925 = vst [vmem:[#allocation37_spill] sm:$0xff] %v4884_v15  ;;  %v538_v53 = vmul.f32 0.00390625, %v497_v44  ;;  %v629_v61 = vmul.f32 %v4884_v15, %v4884_v15  ;;  %v630_v62 = vmul.f32 %v4887_v43, %v4887_v43  ;;  %1812 = vmatpush1.bf16.msra.mxu0 %v3708_v56  ;;  %3532 = vmatpush1.bf16.msra.mxu1 %v3708_v56 }
 0x181   : > { %v4898_v52 = vsub.f32 %v4594_v3, %v537_v39  ;;  %v4901_v47 = vsub.f32 %v4597_v7, %v537_v39  ;;  %v701_v55 = vadd.f32 %v628_v33, %v627_v59  ;;  %v3711_v33 = vld [vmem:[#allocation9 + $0x14] ss:$24 sps:$4 sm:$0xff]  }
 0x182   : > { %v4904_v30 = vsub.f32 %v4602_v11, %v538_v53  ;;  %v4907_v49 = vsub.f32 %v4605_v16, %v538_v53  ;;  %v452_v20 = vpop.xlane.xlu0 %451  ;;  %v704_v3 = vadd.f32 %v630_v62, %v629_v61  ;;  %v5931_v53 = vld [vmem:[#allocation20_spill] sm:$0xff]  ;;  %2167 = vmatprep.subr.bf16.mxu0 %v3711_v33 }
 0x183   : > { %5926 = vst [vmem:[#allocation38_spill] sm:$0xff] %v4898_v52  ;;  %5927 = vst [vmem:[#allocation39_spill] sm:$0xff] %v4901_v47  ;;  %v523_v44 = vmul.f32 0.00390625, %v452_v20  ;;  %747 = vadd.xlane.f32.xlu1 %v746_v58  ;;  %702 = vadd.xlane.f32.xlu0 %v701_v55  ;;  %v455_v50 = vpop.xlane.xlu1 %454  ;;  %v659_v7 = vmul.f32 %v4898_v52, %v4898_v52  ;;  %v660_v39 = vmul.f32 %v4901_v47, %v4901_v47  ;;  %v5935_v20 = vld [vmem:[#allocation22_spill] sm:$0xff] }
 0x184   : > { %5928 = vst [vmem:[#allocation40_spill] sm:$0xff] %v4904_v30  ;;  %5929 = vst [vmem:[#allocation41_spill] sm:$0xff] %v4907_v49  ;;  %v524_v59 = vmul.f32 0.00390625, %v455_v50  ;;  %v661_v11 = vmul.f32 %v4904_v30, %v4904_v30  ;;  %v662_v16 = vmul.f32 %v4907_v49, %v4907_v49 }
 0x185   : > { %v4918_v58 = vsub.f32 %v4610_v22, %v523_v44  ;;  %v4921_v61 = vsub.f32 %v5931_v53, %v523_v44  ;;  %v749_v62 = vadd.f32 %v660_v39, %v659_v7  ;;  %v3714_v53 = vld [vmem:[#allocation9 + $0xc] ss:$24 sps:$4 sm:$0xff]  }
 0x186   : > { %v4924_v55 = vsub.f32 %v5933_v26, %v524_v59  ;;  %v4927_v50 = vsub.f32 %v5935_v20, %v524_v59  ;;  %v500_v30 = vpop.xlane.xlu0 %499  ;;  %v752_v49 = vadd.f32 %v662_v16, %v661_v11  ;;  %1974 = vmatprep.subr.bf16.mxu1 %v3714_v53 }
 0x187   : > { %5930 = vst [vmem:[#allocation42_spill] sm:$0xff] %v4918_v58  ;;  %5932 = vst [vmem:[#allocation20_spill] sm:$0xff] %v4921_v61  ;;  %v539_v52 = vmul.f32 0.00390625, %v500_v30  ;;  %705 = vadd.xlane.f32.xlu1 %v704_v3  ;;  %750 = vadd.xlane.f32.xlu0 %v749_v62  ;;  %v503_v56 = vpop.xlane.xlu1 %502  ;;  %v631_v22 = vmul.f32 %v4918_v58, %v4918_v58  ;;  %v632_v44 = vmul.f32 %v4921_v61, %v4921_v61  ;;  %v5938_v3 = vld [vmem:[#allocation23_spill] sm:$0xff]  ;;  %v5941_v62 = vld [vmem:[#allocation24_spill] sm:$0xff] }
 0x188   : > { %5934 = vst [vmem:[#allocation21_spill] sm:$0xff] %v4924_v55  ;;  %5936 = vst [vmem:[#allocation22_spill] sm:$0xff] %v4927_v50  ;;  %v540_v7 = vmul.f32 0.00390625, %v503_v56  ;;  %v633_v39 = vmul.f32 %v4924_v55, %v4924_v55  ;;  %v634_v59 = vmul.f32 %v4927_v50, %v4927_v50 }
 0x189   : > { %v4938_v30 = vsub.f32 %v4626_v42, %v539_v52  ;;  %v4941_v33 = vsub.f32 %v5938_v3, %v539_v52  ;;  %v707_v11 = vadd.f32 %v632_v44, %v631_v22 }
 0x18a   : > { %v4944_v16 = vsub.f32 %v4634_v51, %v540_v7  ;;  %v4947_v26 = vsub.f32 %v5941_v62, %v540_v7  ;;  %v458_v20 = vpop.xlane.xlu0 %457  ;;  %v710_v58 = vadd.f32 %v634_v59, %v633_v39  ;;  %v5946_v59 = vld [vmem:[#allocation26_spill] sm:$0xff] }
 0x18b   : > { %5937 = vst [vmem:[#allocation43_spill] sm:$0xff] %v4938_v30  ;;  %5939 = vst [vmem:[#allocation23_spill] sm:$0xff] %v4941_v33  ;;  %v525_v56 = vmul.f32 0.00390625, %v458_v20  ;;  %753 = vadd.xlane.f32.xlu1 %v752_v49  ;;  %708 = vadd.xlane.f32.xlu0 %v707_v11  ;;  %v461_v55 = vpop.xlane.xlu1 %460  ;;  %v663_v42 = vmul.f32 %v4938_v30, %v4938_v30  ;;  %v664_v52 = vmul.f32 %v4941_v33, %v4941_v33  ;;  %v5944_v49 = vld [vmem:[#allocation25_spill] sm:$0xff]  ;;  %v5948_v11 = vld [vmem:[#allocation27_spill] sm:$0xff] }
 0x18c   : > { %5940 = vst [vmem:[#allocation44_spill] sm:$0xff] %v4944_v16  ;;  %5942 = vst [vmem:[#allocation24_spill] sm:$0xff] %v4947_v26  ;;  %v526_v22 = vmul.f32 0.00390625, %v461_v55  ;;  %v665_v51 = vmul.f32 %v4944_v16, %v4944_v16  ;;  %v666_v44 = vmul.f32 %v4947_v26, %v4947_v26 }
 0x18d   : > { %v4958_v7 = vsub.f32 %v4642_v60, %v525_v56  ;;  %v4961_v53 = vsub.f32 %v5944_v49, %v525_v56  ;;  %v755_v39 = vadd.f32 %v664_v52, %v663_v42 }
 0x18e   : > { %v4964_v3 = vsub.f32 %v5946_v59, %v526_v22  ;;  %v4967_v62 = vsub.f32 %v5948_v11, %v526_v22  ;;  %v506_v55 = vpop.xlane.xlu0 %505  ;;  %v758_v30 = vadd.f32 %v666_v44, %v665_v51  ;;  %v5950_v22 = vld [vmem:[#allocation28_spill] sm:$0xff]  ;;  %v5954_v44 = vld [vmem:[#allocation30_spill] sm:$0xff] }
 0x18f   : > { %5943 = vst [vmem:[#allocation45_spill] sm:$0xff] %v4958_v7  ;;  %5945 = vst [vmem:[#allocation25_spill] sm:$0xff] %v4961_v53  ;;  %v541_v20 = vmul.f32 0.00390625, %v506_v55  ;;  %711 = vadd.xlane.f32.xlu1 %v710_v58  ;;  %756 = vadd.xlane.f32.xlu0 %v755_v39  ;;  %v509_v16 = vpop.xlane.xlu1 %508  ;;  %v635_v60 = vmul.f32 %v4958_v7, %v4958_v7  ;;  %v636_v56 = vmul.f32 %v4961_v53, %v4961_v53  ;;  %v5952_v58 = vld [vmem:[#allocation29_spill] sm:$0xff]  ;;  %v5956_v55 = vld [vmem:[#allocation31_spill] sm:$0xff] }
 0x190   : > { %5947 = vst [vmem:[#allocation26_spill] sm:$0xff] %v4964_v3  ;;  %5949 = vst [vmem:[#allocation27_spill] sm:$0xff] %v4967_v62  ;;  %v542_v49 = vmul.f32 0.00390625, %v509_v16  ;;  %v637_v42 = vmul.f32 %v4964_v3, %v4964_v3  ;;  %v638_v52 = vmul.f32 %v4967_v62, %v4967_v62 }
 0x191   : > { %v4978_v59 = vsub.f32 %v5950_v22, %v541_v20  ;;  %v4981_v39 = vsub.f32 %v5952_v58, %v541_v20  ;;  %v713_v51 = vadd.f32 %v636_v56, %v635_v60 }
 0x192   : > { %v4984_v11 = vsub.f32 %v5954_v44, %v542_v49  ;;  %v4987_v7 = vsub.f32 %v5956_v55, %v542_v49  ;;  %v716_v16 = vadd.f32 %v638_v52, %v637_v42  ;;  %v928_v42 = vlaneseq }
 0x193   : > { %5951 = vst [vmem:[#allocation28_spill] sm:$0xff] %v4978_v59  ;;  %5953 = vst [vmem:[#allocation29_spill] sm:$0xff] %v4981_v39  ;;  %759 = vadd.xlane.f32.xlu1 %v758_v30  ;;  %714 = vadd.xlane.f32.xlu0 %v713_v51  ;;  %v667_v3 = vmul.f32 %v4978_v59, %v4978_v59  ;;  %v668_v22 = vmul.f32 %v4981_v39, %v4981_v39 }
 0x194   : > { %5955 = vst [vmem:[#allocation30_spill] sm:$0xff] %v4984_v11  ;;  %5957 = vst [vmem:[#allocation31_spill] sm:$0xff] %v4987_v7  ;;  %v669_v20 = vmul.f32 %v4984_v11, %v4984_v11  ;;  %v670_v60 = vmul.f32 %v4987_v7, %v4987_v7  ;;  %v4997_v39 = vshrl.u32 %v928_v42, 7 }
 0x195   : > { %v761_v56 = vadd.f32 %v668_v22, %v667_v3 }
 0x196   : > { %v764_v49 = vadd.f32 %v670_v60, %v669_v20  ;;  %5958 = vst [vmem:[#allocation46_spill] sm:$0xff] %v4997_v39  ;;  %v5000_v22 = vsub.s32 1, %v4997_v39  ;;  %v5003_v20 = vsub.s32 0, %v4997_v39 }
 0x197   : > { %717 = vadd.xlane.f32.xlu1 %v716_v16  ;;  %762 = vadd.xlane.f32.xlu0 %v761_v56 }
 0x198   : > { %5959 = vst [vmem:[#allocation47_spill] sm:$0xff] %v5000_v22  ;;  %5960 = vst [vmem:[#allocation48_spill] sm:$0xff] %v5003_v20 }
 0x19b   : > { %765 = vadd.xlane.f32.xlu1 %v764_v49  ;;  %v412_v49 = vld [vmem:[#allocation6] sm:$0x3] }
 0x1e8   : > { %v673_v30 = vpop.xlane.xlu0 %672 }
 0x1e9   : > { %v767_v58 = vmul.f32 0.00390625, %v673_v30 }
 0x1eb   : > { %v799_v52 = vadd.f32 1e-05, %v767_v58 }
 0x1ec   : > { %v676_v51 = vpop.xlane.xlu1 %675  ;;  %v721_v44 = vpop.xlane.xlu0 %720 }
 0x1ed   : > { %3805 = vrsqrt.f32 %v799_v52  ;;  %v768_v55 = vmul.f32 0.00390625, %v676_v51  ;;  %v783_v59 = vmul.f32 0.00390625, %v721_v44  ;;  %v413_v52 = vld [vmem:[#allocation8] sm:$0x3] }
 0x1ee   : > { %v5013_v39 = vrot.slane %v413_v52, %v5000_v22 }
 0x1ef   : > { %v800_v11 = vadd.f32 1e-05, %v768_v55  ;;  %v815_v62 = vadd.f32 1e-05, %v783_v59 }
 0x1f0   : > { %v724_v53 = vpop.xlane.xlu1 %723  ;;  %v679_v7 = vpop.xlane.xlu0 %678 }
 0x1f1   : > { %3807 = vrsqrt.f32 %v800_v11  ;;  %v784_v3 = vmul.f32 0.00390625, %v724_v53  ;;  %v769_v16 = vmul.f32 0.00390625, %v679_v7  ;;  %v5006_v11 = vrot.slane %v412_v49, %v5000_v22 }
 0x1f2   : > { %3809 = vrsqrt.f32 %v815_v62  ;;  %v5009_v7 = vrot.slane %v412_v49, %v5003_v20 }
 0x1f3   : > { %v816_v60 = vadd.f32 1e-05, %v784_v3  ;;  %v801_v56 = vadd.f32 1e-05, %v769_v16  ;;  %v5961_v3 = vld [vmem:[#allocation33_spill] sm:$0xff] }
 0x1f4   : > { %v682_v30 = vpop.xlane.xlu1 %681  ;;  %v727_v58 = vpop.xlane.xlu0 %726 }
 0x1f5   : > { %3811 = vrsqrt.f32 %v816_v60  ;;  %v770_v42 = vmul.f32 0.00390625, %v682_v30  ;;  %v785_v59 = vmul.f32 0.00390625, %v727_v58  ;;  %v5962_v60 = vld [vmem:[#allocation32_spill] sm:$0xff] }
 0x1f6   : > { %3813 = vrsqrt.f32 %v801_v56  ;;  %v5019_v56 = vrot.slane %v413_v52, %v5003_v20 }
 0x1f7   : > { %v3806_v53 = vpop.eup %3805  ;;  %v802_v62 = vadd.f32 1e-05, %v770_v42  ;;  %v817_v51 = vadd.f32 1e-05, %v785_v59 }
 0x1f8   : > { %v730_v44 = vpop.xlane.xlu1 %729  ;;  %v685_v55 = vpop.xlane.xlu0 %684  ;;  %v864_v16 = vmul.f32 %v3806_v53, %v5961_v3  ;;  %v863_v30 = vmul.f32 %v3806_v53, %v5962_v60 }
 0x1f9   : > { %3815 = vrsqrt.f32 %v802_v62  ;;  %v786_v58 = vmul.f32 0.00390625, %v730_v44  ;;  %v771_v26 = vmul.f32 0.00390625, %v685_v55 }
 0x1fa   : > { %v939_v33 = vmul.f32 %v5006_v11, %v864_v16  ;;  %v938_v49 = vmul.f32 %v5009_v7, %v863_v30  ;;  %3817 = vrsqrt.f32 %v817_v51  ;;  %v5963_v16 = vld [vmem:[#allocation35_spill] sm:$0xff] }
 0x1fb   : > { %v3808_v42 = vpop.eup %3807  ;;  %v818_v59 = vadd.f32 1e-05, %v786_v58  ;;  %v803_v50 = vadd.f32 1e-05, %v771_v26 }
 0x1fc   : > { %v3810_v3 = vpop.eup %3809  ;;  %v688_v61 = vpop.xlane.xlu1 %687  ;;  %v866_v47 = vmul.f32 %v3808_v42, %v4701_v4  ;;  %v1014_v53 = vadd.f32 %v5013_v39, %v939_v33  ;;  %v865_v62 = vmul.f32 %v3808_v42, %v4698_v35  ;;  %v1013_v26 = vadd.f32 %v5019_v56, %v938_v49  ;;  %v5964_v33 = vld [vmem:[#allocation34_spill] sm:$0xff] }
 0x1fd   : > { %v733_v22 = vpop.xlane.xlu0 %732  ;;  %3819 = vrsqrt.f32 %v818_v59  ;;  %v772_v44 = vmul.f32 0.00390625, %v688_v61  ;;  %v896_v60 = vmul.f32 %v3810_v3, %v5963_v16  ;;  %v895_v15 = vmul.f32 %v3810_v3, %v5964_v33  ;;  %v3709_v16 = vld [vmem:[#allocation9 + $0x10] ss:$24 sps:$4 sm:$0xff]  }
 0x1fe   : > { %v787_v55 = vmul.f32 0.00390625, %v733_v22  ;;  %3821 = vrsqrt.f32 %v803_v50  ;;  %v941_v52 = vmul.f32 %v5006_v11, %v866_v47  ;;  %v940_v51 = vmul.f32 %v5009_v7, %v865_v62 }
 0x1ff   : > { %v3812_v30 = vpop.eup %3811  ;;  %v804_v58 = vadd.f32 1e-05, %v772_v44  ;;  %v971_v4 = vmul.f32 %v5006_v11, %v896_v60 }
 0x200   : > { %v819_v20 = vadd.f32 1e-05, %v787_v55  ;;  %v736_v35 = vpop.xlane.xlu1 %735  ;;  %v1016_v61 = vadd.f32 %v5013_v39, %v941_v52  ;;  %v1015_v22 = vadd.f32 %v5019_v56, %v940_v51  ;;  %v898_v50 = vmul.f32 %v3812_v30, %v4707_v28  ;;  %v3814_v59 = vpop.eup %3813 }
 0x201   : > { %v691_v42 = vpop.xlane.xlu0 %690  ;;  %v897_v47 = vmul.f32 %v3812_v30, %v4704_v57  ;;  %3823 = vrsqrt.f32 %v804_v58  ;;  %v788_v49 = vmul.f32 0.00390625, %v736_v35  ;;  %v1046_v44 = vadd.f32 %v5013_v39, %v971_v4  ;;  %v3717_v30 = vld [vmem:[#allocation9 + $0x44] ss:$24 sps:$4 sm:$0xff]  }
 0x202   : > { %v773_v62 = vmul.f32 0.00390625, %v691_v42  ;;  %3825 = vrsqrt.f32 %v819_v20  ;;  %v5035_v55 = vpack.c.bf16 %v1016_v61, %v1014_v53  ;;  %v5037_v3 = vpack.c.bf16 %v1015_v22, %v1013_v26 }
 0x203   : > { %v973_v60 = vmul.f32 %v5006_v11, %v898_v50  ;;  %v3816_v52 = vpop.eup %3815  ;;  %v820_v51 = vadd.f32 1e-05, %v788_v49  ;;  %v970_v28 = vmul.f32 %v5009_v7, %v895_v15  ;;  %v972_v57 = vmul.f32 %v5009_v7, %v897_v47  ;;  %v3715_v49 = vld [vmem:[#allocation9 + $0x40] ss:$24 sps:$4 sm:$0xff]  }
 0x204   : > { %v805_v33 = vadd.f32 1e-05, %v773_v62  ;;  %v694_v58 = vpop.xlane.xlu1 %693  ;;  %1813 = vmatprep.mubr.bf16.mxu0 %v5035_v55  ;;  %v868_v53 = vmul.f32 %v3814_v59, %v4721_v10  ;;  %v870_v26 = vmul.f32 %v3816_v52, %v4727_v1  ;;  %v867_v35 = vmul.f32 %v3814_v59, %v4718_v9  ;;  %v3818_v42 = vpop.eup %3817  ;;  %v3712_v9 = vld [vmem:[#allocation9 + $0x8] ss:$24 sps:$4 sm:$0xff]  }
 0x205   : > { %v739_v4 = vpop.xlane.xlu0 %738  ;;  %v1048_v20 = vadd.f32 %v5013_v39, %v973_v60  ;;  %3827 = vrsqrt.f32 %v820_v51  ;;  %v774_v61 = vmul.f32 0.00390625, %v694_v58  ;;  %1814 = vmatmul.mubr.bf16.vlgmr.msra.gmra.mrb[0].mxu0 %v5037_v3  ;;  %v1045_v50 = vadd.f32 %v5019_v56, %v970_v28  ;;  %v3723_v51 = vld [vmem:[#allocation9 + $0x74] ss:$24 sps:$4 sm:$0xff]  }
 0x206   : > { %v789_v22 = vmul.f32 0.00390625, %v739_v4  ;;  %2168 = vmatpush1.bf16.msra.mxu0 %v3709_v16  ;;  %v1047_v47 = vadd.f32 %v5019_v56, %v972_v57  ;;  %v943_v10 = vmul.f32 %v5006_v11, %v868_v53  ;;  %3829 = vrsqrt.f32 %v805_v33  ;;  %v3720_v4 = vld [vmem:[#allocation9 + $0x3c] ss:$24 sps:$4 sm:$0xff]  }
 0x207   : > { %v5048_v15 = vpack.c.bf16 %v1048_v20, %v1046_v44  ;;  %v3820_v62 = vpop.eup %3819  ;;  %v806_v1 = vadd.f32 1e-05, %v774_v61  ;;  %2169 = vmatprep.subr.bf16.mxu0 %v3717_v30  ;;  %v945_v59 = vmul.f32 %v5006_v11, %v870_v26  ;;  %v869_v60 = vmul.f32 %v3816_v52, %v4724_v0  ;;  %v3718_v52 = vld [vmem:[#allocation9 + $0x38] ss:$24 sps:$4 sm:$0xff]  }
 0x208   : > { %v5055_v16 = vpop.eup %3821  ;;  %v821_v44 = vadd.f32 1e-05, %v789_v22  ;;  %v742_v58 = vpop.xlane.xlu1 %741  ;;  %v5058_v57 = vpack.c.bf16 %v1047_v47, %v1045_v50  ;;  %v942_v33 = vmul.f32 %v5009_v7, %v867_v35  ;;  %v900_v20 = vmul.f32 %v3818_v42, %v4741_v34  ;;  %v3721_v50 = vld [vmem:[#allocation9 + $0x70] ss:$24 sps:$4 sm:$0xff]  }
 0x209   : > { %1893 = vmatprep.mubr.bf16.mxu1 %v5048_v15  ;;  %v697_v28 = vpop.xlane.xlu0 %696  ;;  %v790_v30 = vmul.f32 0.00390625, %v742_v58  ;;  %v1018_v26 = vadd.f32 %v5013_v39, %v943_v10  ;;  %v1020_v0 = vadd.f32 %v5013_v39, %v945_v59  ;;  %3831 = vrsqrt.f32 %v806_v1  ;;  %v3729_v1 = vld [vmem:[#allocation9 + $0xa4] ss:$24 sps:$4 sm:$0xff]  }
 0x20a   : > { %5965 = vst [vmem:[#allocation33_spill] sm:$0xff] %v5058_v57  ;;  %v775_v53 = vmul.f32 0.00390625, %v697_v28  ;;  %1894 = vmatmul.mubr.bf16.vlgmr.msra.gmra.mrb[0].mxu1 %v5058_v57  ;;  %2170 = vmatpush1.bf16.msra.mxu0 %v3715_v49  ;;  %v944_v61 = vmul.f32 %v5009_v7, %v869_v60  ;;  %v1017_v22 = vadd.f32 %v5019_v56, %v942_v33  ;;  %3833 = vrsqrt.f32 %v821_v44  ;;  %v3735_v44 = vld [vmem:[#allocation9 + $0xd4] ss:$24 sps:$4 sm:$0xff]  }
 0x20b   : > { %v902_v35 = vmul.f32 %v3820_v62, %v4747_v54  ;;  %v3824_v47 = vpop.eup %3823  ;;  %v822_v34 = vadd.f32 1e-05, %v790_v30  ;;  %1975 = vmatpush1.bf16.msra.mxu1 %v3712_v9  ;;  %v5068_v28 = vpack.c.bf16 %v1020_v0, %v1018_v26  ;;  %2171 = vmatprep.subr.bf16.mxu0 %v3723_v51  ;;  %v975_v10 = vmul.f32 %v5006_v11, %v900_v20  ;;  %v3726_v54 = vld [vmem:[#allocation9 + $0x6c] ss:$24 sps:$4 sm:$0xff]  }
 0x20c   : > { %v807_v58 = vadd.f32 1e-05, %v775_v53  ;;  %v5071_v59 = vpop.eup %3825  ;;  %v700_v49 = vpop.xlane.xlu1 %699  ;;  %1976 = vmatprep.subr.bf16.mxu1 %v3720_v4  ;;  %v1019_v33 = vadd.f32 %v5019_v56, %v944_v61  ;;  %v899_v30 = vmul.f32 %v3818_v42, %v4738_v29  ;;  %v901_v9 = vmul.f32 %v3820_v62, %v4744_v6  ;;  %v3727_v61 = vld [vmem:[#allocation9 + $0xa0] ss:$24 sps:$4 sm:$0xff]  }
 0x20d   : > { %v745_v60 = vpop.xlane.xlu0 %744  ;;  %v977_v57 = vmul.f32 %v5006_v11, %v902_v35  ;;  %v776_v53 = vmul.f32 0.00390625, %v700_v49  ;;  %1823 = vmatprep.mubr.bf16.mxu0 %v5068_v28  ;;  %v1050_v4 = vadd.f32 %v5013_v39, %v975_v10  ;;  %3835 = vrsqrt.f32 %v822_v34  ;;  %v3724_v6 = vld [vmem:[#allocation9 + $0x68] ss:$24 sps:$4 sm:$0xff]  }
 0x20e   : > { %v791_v51 = vmul.f32 0.00390625, %v745_v60  ;;  %v5078_v20 = vpack.c.bf16 %v1019_v33, %v1017_v22  ;;  %2172 = vmatpush1.bf16.msra.mxu0 %v3721_v50  ;;  %v974_v0 = vmul.f32 %v5009_v7, %v899_v30  ;;  %v976_v42 = vmul.f32 %v5009_v7, %v901_v9  ;;  %v3730_v30 = vld [vmem:[#allocation9 + $0x98] ss:$24 sps:$4 sm:$0xff]  }
 0x20f   : > { %v1052_v26 = vadd.f32 %v5013_v39, %v977_v57  ;;  %v5083_v35 = vpop.eup %3827  ;;  %v808_v29 = vadd.f32 1e-05, %v776_v53  ;;  %1977 = vmatpush1.bf16.msra.mxu1 %v3718_v52  ;;  %2173 = vmatprep.subr.bf16.mxu0 %v3729_v1  ;;  %v872_v62 = vmul.f32 %v5055_v16, %v4761_v48  ;;  %3837 = vrsqrt.f32 %v807_v58  ;;  %v3732_v52 = vld [vmem:[#allocation9 + $0x9c] ss:$24 sps:$4 sm:$0xff]   ;;  %v3733_v9 = vld [vmem:[#allocation9 + $0xd0] ss:$24 sps:$4 sm:$0xff]  }
 0x210   : > { %v823_v22 = vadd.f32 1e-05, %v791_v51  ;;  %1824 = vmatmul.mubr.bf16.gmra.mrb[4].mxu0 %v5078_v20  ;;  %v748_v57 = vpop.xlane.xlu1 %747  ;;  %1978 = vmatprep.subr.bf16.mxu1 %v3726_v54  ;;  %v874_v34 = vmul.f32 %v3824_v47, %v4767_v14  ;;  %v5092_v49 = vpop.eup %3829  ;;  %v1049_v33 = vadd.f32 %v5019_v56, %v974_v0  ;;  %v1051_v48 = vadd.f32 %v5019_v56, %v976_v42 }
 0x211   : > { %v5089_v50 = vpack.c.bf16 %v1052_v26, %v1050_v4  ;;  %v703_v10 = vpop.xlane.xlu0 %702  ;;  %v792_v60 = vmul.f32 0.00390625, %v748_v57  ;;  %3839 = vrsqrt.f32 %v808_v29  ;;  %v947_v58 = vmul.f32 %v5006_v11, %v872_v62  ;;  %v5966_v26 = vld [vmem:[#allocation36_spill] sm:$0xff] }
 0x212   : > { %v777_v1 = vmul.f32 0.00390625, %v703_v10  ;;  %2174 = vmatpush1.bf16.msra.mxu0 %v3727_v61  ;;  %v949_v54 = vmul.f32 %v5006_v11, %v874_v34  ;;  %v871_v14 = vmul.f32 %v5055_v16, %v4758_v12  ;;  %v5101_v4 = vpack.c.bf16 %v1051_v48, %v1049_v33  ;;  %v3741_v29 = vld [vmem:[#allocation9 + $0x104] ss:$24 sps:$4 sm:$0xff]   ;;  %v3739_v33 = vld [vmem:[#allocation9 + $0x100] ss:$24 sps:$4 sm:$0xff]  }
 0x213   : > { %1903 = vmatprep.mubr.bf16.mxu1 %v5089_v50  ;;  %v824_v53 = vadd.f32 1e-05, %v792_v60  ;;  %1979 = vmatpush1.bf16.msra.mxu1 %v3724_v6  ;;  %v873_v0 = vmul.f32 %v3824_v47, %v5966_v26  ;;  %v5104_v42 = vpop.eup %3831  ;;  %v1022_v62 = vadd.f32 %v5013_v39, %v947_v58  ;;  %v904_v16 = vmul.f32 %v5071_v59, %v4781_v2  ;;  %v3738_v34 = vld [vmem:[#allocation9 + $0xcc] ss:$24 sps:$4 sm:$0xff]  }
 0x214   : > { %v809_v51 = vadd.f32 1e-05, %v777_v1  ;;  %2175 = vmatprep.subr.bf16.mxu0 %v3735_v44  ;;  %v706_v61 = vpop.xlane.xlu1 %705  ;;  %v1024_v57 = vadd.f32 %v5013_v39, %v949_v54  ;;  %1980 = vmatprep.subr.bf16.mxu1 %v3732_v52  ;;  %v946_v12 = vmul.f32 %v5009_v7, %v871_v14  ;;  %3841 = vrsqrt.f32 %v823_v22  ;;  %v5118_v48 = vpop.eup %3833  ;;  %v3736_v14 = vld [vmem:[#allocation9 + $0xc8] ss:$24 sps:$4 sm:$0xff]  }
 0x215   : > { %v751_v10 = vpop.xlane.xlu0 %750  ;;  %1904 = vmatmul.mubr.bf16.gmra.mrb[4].mxu1 %v5101_v4  ;;  %v778_v47 = vmul.f32 0.00390625, %v706_v61  ;;  %v948_v44 = vmul.f32 %v5009_v7, %v873_v0  ;;  %3843 = vrsqrt.f32 %v824_v53  ;;  %v906_v52 = vmul.f32 %v5083_v35, %v4787_v13  ;;  %v3744_v61 = vld [vmem:[#allocation9 + $0xfc] ss:$24 sps:$4 sm:$0xff]  }
 0x216   : > { %v793_v6 = vmul.f32 0.00390625, %v751_v10  ;;  %v5113_v60 = vpack.c.bf16 %v1024_v57, %v1022_v62  ;;  %v1021_v1 = vadd.f32 %v5019_v56, %v946_v12  ;;  %2176 = vmatpush1.bf16.msra.mxu0 %v3733_v9  ;;  %v979_v54 = vmul.f32 %v5006_v11, %v904_v16 }
 0x217   : > { %v810_v2 = vadd.f32 1e-05, %v778_v47  ;;  %v1023_v58 = vadd.f32 %v5019_v56, %v948_v44  ;;  %1981 = vmatpush1.bf16.msra.mxu1 %v3730_v30  ;;  %2177 = vmatprep.subr.bf16.mxu0 %v3741_v29  ;;  %3845 = vrsqrt.f32 %v809_v51  ;;  %v981_v9 = vmul.f32 %v5006_v11, %v906_v52  ;;  %v3747_v30 = vld [vmem:[#allocation9 + $0x134] ss:$24 sps:$4 sm:$0xff]   ;;  %v5128_v62 = vpop.eup %3835  ;;  %v3753_v44 = vld [vmem:[#allocation9 + $0x164] ss:$24 sps:$4 sm:$0xff]  }
 0x218   : > { %v825_v22 = vadd.f32 1e-05, %v793_v6  ;;  %1833 = vmatprep.mubr.bf16.mxu0 %v5113_v60  ;;  %v754_v53 = vpop.xlane.xlu1 %753  ;;  %1982 = vmatprep.subr.bf16.mxu1 %v3738_v34  ;;  %v903_v26 = vmul.f32 %v5071_v59, %v4778_v45  ;;  %v905_v0 = vmul.f32 %v5083_v35, %v4784_v21  ;;  %v1054_v57 = vadd.f32 %v5013_v39, %v979_v54  ;;  %v3745_v21 = vld [vmem:[#allocation9 + $0x130] ss:$24 sps:$4 sm:$0xff]  }
 0x219   : > { %v709_v13 = vpop.xlane.xlu0 %708  ;;  %3847 = vrsqrt.f32 %v810_v2  ;;  %v5130_v29 = vpack.c.bf16 %v1023_v58, %v1021_v1  ;;  %v794_v51 = vmul.f32 0.00390625, %v754_v53  ;;  %v5133_v10 = vpop.eup %3837  ;;  %v1056_v12 = vadd.f32 %v5013_v39, %v981_v9  ;;  %v3742_v6 = vld [vmem:[#allocation9 + $0xf8] ss:$24 sps:$4 sm:$0xff]  }
 0x21a   : > { %3849 = vrsqrt.f32 %v825_v22  ;;  %v779_v16 = vmul.f32 0.00390625, %v709_v13  ;;  %v978_v45 = vmul.f32 %v5009_v7, %v903_v26  ;;  %2178 = vmatpush1.bf16.msra.mxu0 %v3739_v33  ;;  %v980_v35 = vmul.f32 %v5009_v7, %v905_v0  ;;  %v3751_v0 = vld [vmem:[#allocation9 + $0x160] ss:$24 sps:$4 sm:$0xff]  }
 0x21b   : > { %1834 = vmatmul.mubr.bf16.gmra.mrb[8].mxu0 %v5130_v29  ;;  %v826_v59 = vadd.f32 1e-05, %v794_v51  ;;  %1983 = vmatpush1.bf16.msra.mxu1 %v3736_v14  ;;  %v876_v34 = vmul.f32 %v5092_v49, %v4801_v23  ;;  %v878_v47 = vmul.f32 %v5104_v42, %v4807_v19  ;;  %v5143_v1 = vpop.eup %3839  ;;  %v5145_v52 = vpack.c.bf16 %v1056_v12, %v1054_v57  ;;  %v3750_v23 = vld [vmem:[#allocation9 + $0x12c] ss:$24 sps:$4 sm:$0xff]   ;;  %v3748_v57 = vld [vmem:[#allocation9 + $0x128] ss:$24 sps:$4 sm:$0xff]  }
 0x21c   : > { %v811_v33 = vadd.f32 1e-05, %v779_v16  ;;  %v1053_v2 = vadd.f32 %v5019_v56, %v978_v45  ;;  %v712_v22 = vpop.xlane.xlu1 %711  ;;  %1984 = vmatprep.subr.bf16.mxu1 %v3744_v61  ;;  %v875_v54 = vmul.f32 %v5092_v49, %v4798_v17  ;;  %2179 = vmatprep.subr.bf16.mxu0 %v3747_v30  ;;  %v1055_v19 = vadd.f32 %v5019_v56, %v980_v35  ;;  %v3759_v12 = vld [vmem:[#allocation9 + $0x194] ss:$24 sps:$4 sm:$0xff]  }
 0x21d   : > { %v757_v58 = vpop.xlane.xlu0 %756  ;;  %3851 = vrsqrt.f32 %v826_v59  ;;  %v780_v14 = vmul.f32 0.00390625, %v712_v22  ;;  %v951_v53 = vmul.f32 %v5006_v11, %v876_v34  ;;  %1913 = vmatprep.mubr.bf16.mxu1 %v5145_v52  ;;  %v953_v9 = vmul.f32 %v5006_v11, %v878_v47 }
 0x21e   : > { %3853 = vrsqrt.f32 %v811_v33  ;;  %v795_v13 = vmul.f32 0.00390625, %v757_v58  ;;  %v877_v26 = vmul.f32 %v5104_v42, %v4804_v27  ;;  %2180 = vmatpush1.bf16.msra.mxu0 %v3745_v21  ;;  %v5156_v17 = vpop.eup %3841  ;;  %v5158_v49 = vpack.c.bf16 %v1055_v19, %v1053_v2  ;;  %v3754_v58 = vld [vmem:[#allocation9 + $0x158] ss:$24 sps:$4 sm:$0xff]  }
 0x21f   : > { %v812_v61 = vadd.f32 1e-05, %v780_v14  ;;  %v1026_v30 = vadd.f32 %v5013_v39, %v951_v53  ;;  %v950_v51 = vmul.f32 %v5009_v7, %v875_v54  ;;  %1985 = vmatpush1.bf16.msra.mxu1 %v3742_v6  ;;  %2181 = vmatprep.subr.bf16.mxu0 %v3753_v44  ;;  %v5162_v16 = vpop.eup %3843  ;;  %v1028_v45 = vadd.f32 %v5013_v39, %v953_v9  ;;  %v3756_v44 = vld [vmem:[#allocation9 + $0x15c] ss:$24 sps:$4 sm:$0xff]   ;;  %v3757_v53 = vld [vmem:[#allocation9 + $0x190] ss:$24 sps:$4 sm:$0xff]  }
 0x220   : > { %v827_v27 = vadd.f32 1e-05, %v795_v13  ;;  %v952_v42 = vmul.f32 %v5009_v7, %v877_v26  ;;  %v760_v21 = vpop.xlane.xlu1 %759  ;;  %v908_v59 = vmul.f32 %v5118_v48, %v4821_v24  ;;  %1986 = vmatprep.subr.bf16.mxu1 %v3750_v23  ;;  %1914 = vmatmul.mubr.bf16.gmra.mrb[8].mxu1 %v5158_v49  ;;  %v910_v6 = vmul.f32 %v5128_v62, %v4827_v18 }
 0x221   : > { %v715_v35 = vpop.xlane.xlu0 %714  ;;  %3855 = vrsqrt.f32 %v812_v61  ;;  %v1025_v34 = vadd.f32 %v5019_v56, %v950_v51  ;;  %v796_v47 = vmul.f32 0.00390625, %v760_v21  ;;  %v5172_v33 = vpop.eup %3845  ;;  %v5174_v2 = vpack.c.bf16 %v1028_v45, %v1026_v30 }
 0x222   : > { %3857 = vrsqrt.f32 %v827_v27  ;;  %v1027_v22 = vadd.f32 %v5019_v56, %v952_v42  ;;  %v983_v24 = vmul.f32 %v5006_v11, %v908_v59  ;;  %2182 = vmatpush1.bf16.msra.mxu0 %v3751_v0  ;;  %v985_v19 = vmul.f32 %v5006_v11, %v910_v6 }
 0x223   : > { %v5178_v54 = vpop.eup %3847  ;;  %v828_v23 = vadd.f32 1e-05, %v796_v47  ;;  %v781_v14 = vmul.f32 0.00390625, %v715_v35  ;;  %v907_v18 = vmul.f32 %v5118_v48, %v4818_v63  ;;  %1987 = vmatpush1.bf16.msra.mxu1 %v3748_v57  ;;  %2183 = vmatprep.subr.bf16.mxu0 %v3759_v12  ;;  %v909_v0 = vmul.f32 %v5128_v62, %v4824_v25  ;;  %v3762_v63 = vld [vmem:[#allocation9 + $0x18c] ss:$24 sps:$4 sm:$0xff]  }
 0x224   : > { %v5183_v9 = vpop.eup %3849  ;;  %1843 = vmatprep.mubr.bf16.mxu0 %v5174_v2  ;;  %v5186_v13 = vpack.c.bf16 %v1027_v22, %v1025_v34  ;;  %v1058_v26 = vadd.f32 %v5013_v39, %v983_v24  ;;  %v718_v61 = vpop.xlane.xlu1 %717  ;;  %v880_v30 = vmul.f32 %v5133_v10, %v4841_v31  ;;  %v3765_v48 = vld [vmem:[#allocation9 + $0x1c4] ss:$24 sps:$4 sm:$0xff]   ;;  %v1060_v57 = vadd.f32 %v5013_v39, %v985_v19  ;;  %v3760_v34 = vld [vmem:[#allocation9 + $0x188] ss:$24 sps:$4 sm:$0xff]  }
 0x225   : > { %v763_v51 = vpop.xlane.xlu0 %762  ;;  %3859 = vrsqrt.f32 %v828_v23  ;;  %v813_v12 = vadd.f32 1e-05, %v781_v14  ;;  %v982_v45 = vmul.f32 %v5009_v7, %v907_v18  ;;  %1988 = vmatprep.subr.bf16.mxu1 %v3756_v44  ;;  %v984_v27 = vmul.f32 %v5009_v7, %v909_v0  ;;  %v3763_v47 = vld [vmem:[#allocation9 + $0x1c0] ss:$24 sps:$4 sm:$0xff]   ;;  %v3768_v19 = vld [vmem:[#allocation9 + $0x1bc] ss:$24 sps:$4 sm:$0xff]  }
 0x226   : > { %1844 = vmatmul.mubr.bf16.gmra.mrb[12].mxu0 %v5186_v13  ;;  %v782_v42 = vmul.f32 0.00390625, %v718_v61  ;;  %v882_v25 = vmul.f32 %v5143_v1, %v4847_v32  ;;  %v955_v31 = vmul.f32 %v5006_v11, %v880_v30  ;;  %v5202_v21 = vpack.c.bf16 %v1060_v57, %v1058_v26  ;;  %v3771_v26 = vld [vmem:[#allocation9 + $0x1f4] ss:$24 sps:$4 sm:$0xff]  }
 0x227   : > { %v5200_v62 = vpop.eup %3851  ;;  %3861 = vrsqrt.f32 %v813_v12  ;;  %v1057_v59 = vadd.f32 %v5019_v56, %v982_v45  ;;  %v797_v35 = vmul.f32 0.00390625, %v763_v51  ;;  %1989 = vmatpush1.bf16.msra.mxu1 %v3754_v58  ;;  %2184 = vmatpush1.bf16.msra.mxu0 %v3757_v53  ;;  %v1059_v44 = vadd.f32 %v5019_v56, %v984_v27  ;;  %v3769_v12 = vld [vmem:[#allocation9 + $0x1f0] ss:$24 sps:$4 sm:$0xff]  }
 0x228   : > { %v5205_v6 = vpop.eup %3853  ;;  %v814_v22 = vadd.f32 1e-05, %v782_v42  ;;  %v957_v32 = vmul.f32 %v5006_v11, %v882_v25  ;;  %v1030_v24 = vadd.f32 %v5013_v39, %v955_v31  ;;  %v766_v23 = vpop.xlane.xlu1 %765  ;;  %1990 = vmatprep.subr.bf16.mxu1 %v3762_v63  ;;  %2185 = vmatprep.subr.bf16.mxu0 %v3765_v48  ;;  %v879_v58 = vmul.f32 %v5133_v10, %v4838_v36 }
 0x229   : > { %1923 = vmatprep.mubr.bf16.mxu1 %v5202_v21  ;;  %v829_v14 = vadd.f32 1e-05, %v797_v35  ;;  %v881_v18 = vmul.f32 %v5143_v1, %v4844_v5  ;;  %v798_v53 = vmul.f32 0.00390625, %v766_v23  ;;  %v5215_v0 = vpack.c.bf16 %v1059_v44, %v1057_v59  ;;  %v3766_v5 = vld [vmem:[#allocation9 + $0x1b8] ss:$24 sps:$4 sm:$0xff]  }
 0x22a   : > { %3863 = vrsqrt.f32 %v814_v22  ;;  %v1032_v61 = vadd.f32 %v5013_v39, %v957_v32  ;;  %v912_v30 = vmul.f32 %v5156_v17, %v4861_v37  ;;  %v954_v63 = vmul.f32 %v5009_v7, %v879_v58  ;;  %v3772_v44 = vld [vmem:[#allocation9 + $0x1e8] ss:$24 sps:$4 sm:$0xff]  }
 0x22b   : > { %v5220_v51 = vpop.eup %3855  ;;  %3865 = vrsqrt.f32 %v829_v14  ;;  %v956_v36 = vmul.f32 %v5009_v7, %v881_v18  ;;  %1991 = vmatpush1.bf16.msra.mxu1 %v3760_v34  ;;  %2186 = vmatpush1.bf16.msra.mxu0 %v3763_v47  ;;  %v914_v48 = vmul.f32 %v5162_v16, %v4867_v38  ;;  %v911_v57 = vmul.f32 %v5156_v17, %v4858_v40  ;;  %v3774_v17 = vld [vmem:[#allocation9 + $0x1ec] ss:$24 sps:$4 sm:$0xff]  }
 0x22c   : > { %v5224_v10 = vpop.eup %3857  ;;  %1924 = vmatmul.mubr.bf16.gmra.mrb[12].mxu1 %v5215_v0  ;;  %v5227_v1 = vpack.c.bf16 %v1032_v61, %v1030_v24  ;;  %v987_v37 = vmul.f32 %v5006_v11, %v912_v30  ;;  %v1029_v45 = vadd.f32 %v5019_v56, %v954_v63  ;;  %v830_v42 = vadd.f32 1e-05, %v798_v53  ;;  %1992 = vmatprep.subr.bf16.mxu1 %v3768_v19  ;;  %v5967_v24 = vld [vmem:[#allocation37_spill] sm:$0xff]  ;;  %v5968_v14 = vld [vmem:[#allocation39_spill] sm:$0xff] }
 0x22d   : > { %v1031_v27 = vadd.f32 %v5019_v56, %v956_v36  ;;  %v913_v25 = vmul.f32 %v5162_v16, %v4864_v8  ;;  %2187 = vmatprep.subr.bf16.mxu0 %v3771_v26  ;;  %v989_v38 = vmul.f32 %v5006_v11, %v914_v48  ;;  %v986_v59 = vmul.f32 %v5009_v7, %v911_v57  ;;  %v3777_v18 = vld [vmem:[#allocation9 + $0x224] ss:$24 sps:$4 sm:$0xff]   ;;  %v5969_v61 = vld [vmem:[#allocation41_spill] sm:$0xff]  ;;  %v3775_v63 = vld [vmem:[#allocation9 + $0x220] ss:$24 sps:$4 sm:$0xff]  }
 0x22e   : > { %1853 = vmatprep.mubr.bf16.mxu0 %v5227_v1  ;;  %v1062_v31 = vadd.f32 %v5013_v39, %v987_v37  ;;  %v884_v40 = vmul.f32 %v5172_v33, %v4881_v41  ;;  %v886_v16 = vmul.f32 %v5178_v54, %v4887_v43  ;;  %v883_v47 = vmul.f32 %v5172_v33, %v4878_v46  ;;  %v3780_v57 = vld [vmem:[#allocation9 + $0x21c] ss:$24 sps:$4 sm:$0xff]  }
 0x22f   : > { %v5244_v35 = vpop.eup %3859  ;;  %v5246_v34 = vpack.c.bf16 %v1031_v27, %v1029_v45  ;;  %v988_v8 = vmul.f32 %v5009_v7, %v913_v25  ;;  %1993 = vmatpush1.bf16.msra.mxu1 %v3766_v5  ;;  %v1064_v22 = vadd.f32 %v5013_v39, %v989_v38  ;;  %v1061_v32 = vadd.f32 %v5019_v56, %v986_v59  ;;  %v5970_v25 = vld [vmem:[#allocation38_spill] sm:$0xff] }
 0x230   : > { %v959_v41 = vmul.f32 %v5006_v11, %v884_v40  ;;  %v885_v23 = vmul.f32 %v5178_v54, %v5967_v24  ;;  %2188 = vmatpush1.bf16.msra.mxu0 %v3769_v12  ;;  %v961_v46 = vmul.f32 %v5006_v11, %v886_v16  ;;  %v958_v33 = vmul.f32 %v5009_v7, %v883_v47  ;;  %v3778_v40 = vld [vmem:[#allocation9 + $0x218] ss:$24 sps:$4 sm:$0xff]   ;;  %v5972_v47 = vld [vmem:[#allocation20_spill] sm:$0xff] }
 0x231   : > { %v5258_v19 = vpop.eup %3861  ;;  %1854 = vmatmul.mubr.bf16.gmra.mrb[16].mxu0 %v5246_v34  ;;  %v1063_v43 = vadd.f32 %v5019_v56, %v988_v8  ;;  %v916_v58 = vmul.f32 %v5183_v9, %v5968_v14  ;;  %v5266_v53 = vpack.c.bf16 %v1064_v22, %v1062_v31  ;;  %v918_v30 = vmul.f32 %v5200_v62, %v5969_v61  ;;  %v5971_v31 = vld [vmem:[#allocation40_spill] sm:$0xff]  ;;  %v5973_v24 = vld [vmem:[#allocation22_spill] sm:$0xff] }
 0x232   : > { %v1034_v26 = vadd.f32 %v5013_v39, %v959_v41  ;;  %v960_v54 = vmul.f32 %v5009_v7, %v885_v23  ;;  %1994 = vmatprep.subr.bf16.mxu1 %v3774_v17  ;;  %v1036_v5 = vadd.f32 %v5013_v39, %v961_v46  ;;  %v1033_v48 = vadd.f32 %v5019_v56, %v958_v33  ;;  %v3783_v22 = vld [vmem:[#allocation9 + $0x254] ss:$24 sps:$4 sm:$0xff]  }
 0x233   : > { %v5272_v36 = vpack.c.bf16 %v1063_v43, %v1061_v32  ;;  %v991_v37 = vmul.f32 %v5006_v11, %v916_v58  ;;  %1995 = vmatpush1.bf16.msra.mxu1 %v3772_v44  ;;  %1933 = vmatprep.mubr.bf16.mxu1 %v5266_v53  ;;  %v993_v27 = vmul.f32 %v5006_v11, %v918_v30  ;;  %3867 = vrsqrt.f32 %v830_v42  ;;  %v3781_v42 = vld [vmem:[#allocation9 + $0x250] ss:$24 sps:$4 sm:$0xff]   ;;  %v5974_v46 = vld [vmem:[#allocation42_spill] sm:$0xff]  ;;  %v3786_v14 = vld [vmem:[#allocation9 + $0x24c] ss:$24 sps:$4 sm:$0xff]  }
 0x234   : > { %v5277_v12 = vpop.eup %3863  ;;  %v1035_v45 = vadd.f32 %v5019_v56, %v960_v54  ;;  %v915_v38 = vmul.f32 %v5183_v9, %v5970_v25  ;;  %v917_v59 = vmul.f32 %v5200_v62, %v5971_v31  ;;  %v5289_v8 = vpack.c.bf16 %v1036_v5, %v1034_v26  ;;  %2189 = vmatprep.subr.bf16.mxu0 %v3777_v18  ;;  %v5975_v54 = vld [vmem:[#allocation21_spill] sm:$0xff]  ;;  %v3784_v30 = vld [vmem:[#allocation9 + $0x248] ss:$24 sps:$4 sm:$0xff]  }
 0x235   : > { %v5286_v17 = vpop.eup %3865  ;;  %1934 = vmatmul.mubr.bf16.gmra.mrb[16].mxu1 %v5272_v36  ;;  %v1066_v16 = vadd.f32 %v5013_v39, %v991_v37  ;;  %v888_v44 = vmul.f32 %v5205_v6, %v5972_v47  ;;  %v1068_v9 = vadd.f32 %v5013_v39, %v993_v27  ;;  %2190 = vmatpush1.bf16.msra.mxu0 %v3775_v63  ;;  %v3789_v63 = vld [vmem:[#allocation9 + $0x284] ss:$24 sps:$4 sm:$0xff]   ;;  %v3787_v27 = vld [vmem:[#allocation9 + $0x280] ss:$24 sps:$4 sm:$0xff]  }
 0x236   : > { %v5294_v32 = vpack.c.bf16 %v1035_v45, %v1033_v48  ;;  %v990_v62 = vmul.f32 %v5009_v7, %v915_v38  ;;  %v992_v41 = vmul.f32 %v5009_v7, %v917_v59  ;;  %1863 = vmatprep.mubr.bf16.mxu0 %v5289_v8  ;;  %v890_v23 = vmul.f32 %v5220_v51, %v5973_v24  ;;  %v5977_v31 = vld [vmem:[#allocation24_spill] sm:$0xff]  ;;  %v3792_v47 = vld [vmem:[#allocation9 + $0x27c] ss:$24 sps:$4 sm:$0xff]  }
 0x237   : > { %v963_v43 = vmul.f32 %v5006_v11, %v888_v44  ;;  %1996 = vmatprep.subr.bf16.mxu1 %v3780_v57  ;;  %v887_v33 = vmul.f32 %v5205_v6, %v5974_v46  ;;  %v5305_v58 = vpack.c.bf16 %v1068_v9, %v1066_v16  ;;  %v889_v61 = vmul.f32 %v5220_v51, %v5975_v54  ;;  %v5976_v51 = vld [vmem:[#allocation23_spill] sm:$0xff]  ;;  %v5979_v9 = vld [vmem:[#allocation44_spill] sm:$0xff] }
 0x238   : > { %v1065_v18 = vadd.f32 %v5019_v56, %v990_v62  ;;  %v1067_v26 = vadd.f32 %v5019_v56, %v992_v41  ;;  %1997 = vmatpush1.bf16.msra.mxu1 %v3778_v40  ;;  %v965_v5 = vmul.f32 %v5006_v11, %v890_v23  ;;  %2191 = vmatprep.subr.bf16.mxu0 %v3783_v22  ;;  %v5978_v40 = vld [vmem:[#allocation43_spill] sm:$0xff]  ;;  %v3790_v41 = vld [vmem:[#allocation9 + $0x278] ss:$24 sps:$4 sm:$0xff]   ;;  %v3795_v46 = vld [vmem:[#allocation9 + $0x2b4] ss:$24 sps:$4 sm:$0xff]  }
 0x239   : > { %1864 = vmatmul.mubr.bf16.gmra.mrb[20].mxu0 %v5294_v32  ;;  %v1038_v48 = vadd.f32 %v5013_v39, %v963_v43  ;;  %v962_v6 = vmul.f32 %v5009_v7, %v887_v33  ;;  %1943 = vmatprep.mubr.bf16.mxu1 %v5305_v58  ;;  %v964_v57 = vmul.f32 %v5009_v7, %v889_v61  ;;  %v3793_v54 = vld [vmem:[#allocation9 + $0x2b0] ss:$24 sps:$4 sm:$0xff]  }
 0x23a   : > { %v5316_v37 = vpack.c.bf16 %v1067_v26, %v1065_v18  ;;  %2192 = vmatpush1.bf16.msra.mxu0 %v3781_v42  ;;  %v920_v45 = vmul.f32 %v5224_v10, %v5976_v51  ;;  %v1040_v25 = vadd.f32 %v5013_v39, %v965_v5  ;;  %v922_v59 = vmul.f32 %v5244_v35, %v5977_v31  ;;  %v5981_v18 = vld [vmem:[#allocation27_spill] sm:$0xff]  ;;  %v5982_v51 = vld [vmem:[#allocation45_spill] sm:$0xff] }
 0x23b   : > { %v1037_v38 = vadd.f32 %v5019_v56, %v962_v6  ;;  %1998 = vmatprep.subr.bf16.mxu1 %v3786_v14  ;;  %v919_v16 = vmul.f32 %v5224_v10, %v5978_v40  ;;  %v1039_v44 = vadd.f32 %v5019_v56, %v964_v57  ;;  %v921_v62 = vmul.f32 %v5244_v35, %v5979_v9  ;;  %v5980_v10 = vld [vmem:[#allocation25_spill] sm:$0xff]  ;;  %v3799_v9 = vld [vmem:[#allocation9 + $0x2e0] ss:$24 sps:$4 sm:$0xff]  }
 0x23c   : > { %v995_v22 = vmul.f32 %v5006_v11, %v920_v45  ;;  %1999 = vmatpush1.bf16.msra.mxu1 %v3784_v30  ;;  %2193 = vmatprep.subr.bf16.mxu0 %v3789_v63  ;;  %v5332_v42 = vpack.c.bf16 %v1040_v25, %v1038_v48  ;;  %v997_v24 = vmul.f32 %v5006_v11, %v922_v59  ;;  %v3798_v48 = vld [vmem:[#allocation9 + $0x2ac] ss:$24 sps:$4 sm:$0xff]  }
 0x23d   : > { %1944 = vmatmul.mubr.bf16.gmra.mrb[20].mxu1 %v5316_v37  ;;  %v994_v23 = vmul.f32 %v5009_v7, %v919_v16  ;;  %v892_v43 = vmul.f32 %v5258_v19, %v5980_v10  ;;  %v5338_v33 = vpack.c.bf16 %v1039_v44, %v1037_v38  ;;  %v996_v35 = vmul.f32 %v5009_v7, %v921_v62  ;;  %v3868_v61 = vpop.eup %3867  ;;  %v3796_v38 = vld [vmem:[#allocation9 + $0x2a8] ss:$24 sps:$4 sm:$0xff]   ;;  %v5984_v40 = vld [vmem:[#allocation29_spill] sm:$0xff] }
 0x23e   : > { %v1070_v14 = vadd.f32 %v5013_v39, %v995_v22  ;;  %2194 = vmatpush1.bf16.msra.mxu0 %v3787_v27  ;;  %v894_v26 = vmul.f32 %v5277_v12, %v5981_v18  ;;  %1873 = vmatprep.mubr.bf16.mxu0 %v5332_v42  ;;  %v1072_v30 = vadd.f32 %v5013_v39, %v997_v24  ;;  %v5983_v27 = vld [vmem:[#allocation26_spill] sm:$0xff]  ;;  %v5985_v62 = vld [vmem:[#allocation31_spill] sm:$0xff] }
 0x23f   : > { %v1069_v63 = vadd.f32 %v5019_v56, %v994_v23  ;;  %v967_v5 = vmul.f32 %v5006_v11, %v892_v43  ;;  %2000 = vmatprep.subr.bf16.mxu1 %v3792_v47  ;;  %v1071_v6 = vadd.f32 %v5019_v56, %v996_v35  ;;  %v891_v45 = vmul.f32 %v5258_v19, %v5982_v51  ;;  %v3801_v47 = vld [vmem:[#allocation9 + $0x2e4] ss:$24 sps:$4 sm:$0xff]  }
 0x240   : > { %v969_v57 = vmul.f32 %v5006_v11, %v894_v26  ;;  %v893_v25 = vmul.f32 %v5277_v12, %v5983_v27  ;;  %2001 = vmatpush1.bf16.msra.mxu1 %v3790_v41  ;;  %v5355_v31 = vpack.c.bf16 %v1072_v30, %v1070_v14  ;;  %2195 = vmatprep.subr.bf16.mxu0 %v3795_v46  ;;  %v5986_v23 = vld [vmem:[#allocation28_spill] sm:$0xff]  ;;  %v3804_v43 = vld [vmem:[#allocation9 + $0x2dc] ss:$24 sps:$4 sm:$0xff]  }
 0x241   : > { %1874 = vmatmul.mubr.bf16.gmra.mrb[24].mxu0 %v5338_v33  ;;  %v1042_v59 = vadd.f32 %v5013_v39, %v967_v5  ;;  %v924_v16 = vmul.f32 %v5286_v17, %v5984_v40  ;;  %v5360_v44 = vpack.c.bf16 %v1071_v6, %v1069_v63  ;;  %v966_v22 = vmul.f32 %v5009_v7, %v891_v45  ;;  %v5987_v18 = vld [vmem:[#allocation30_spill] sm:$0xff] }
 0x242   : > { %v1044_v19 = vadd.f32 %v5013_v39, %v969_v57  ;;  %v968_v12 = vmul.f32 %v5009_v7, %v893_v25  ;;  %2196 = vmatpush1.bf16.msra.mxu0 %v3793_v54  ;;  %1953 = vmatprep.mubr.bf16.mxu1 %v5355_v31  ;;  %v926_v41 = vmul.f32 %v3868_v61, %v5985_v62  ;;  %v3802_v54 = vld [vmem:[#allocation9 + $0x2d8] ss:$24 sps:$4 sm:$0xff]  }
 0x243   : > { %v999_v24 = vmul.f32 %v5006_v11, %v924_v16  ;;  %2002 = vmatprep.subr.bf16.mxu1 %v3798_v48  ;;  %v923_v10 = vmul.f32 %v5286_v17, %v5986_v23  ;;  %v1041_v14 = vadd.f32 %v5019_v56, %v966_v22  ;;  %v925_v26 = vmul.f32 %v3868_v61, %v5987_v18 }
 0x244   : > { %v1092_v46 = vpack.c.bf16 %v1044_v19, %v1042_v59  ;;  %v1043_v35 = vadd.f32 %v5019_v56, %v968_v12  ;;  %2003 = vmatpush1.bf16.msra.mxu1 %v3796_v38  ;;  %v1001_v30 = vmul.f32 %v5006_v11, %v926_v41  ;;  %2197 = vmatprep.subr.bf16.mxu0 %v3801_v47 }
 0x245   : > { %1954 = vmatmul.mubr.bf16.gmra.mrb[24].mxu1 %v5360_v44  ;;  %v998_v63 = vmul.f32 %v5009_v7, %v923_v10  ;;  %v1000_v17 = vmul.f32 %v5009_v7, %v925_v26  ;;  %v1074_v48 = vadd.f32 %v5013_v39, %v999_v24  ;;  %2004 = vmatprep.subr.bf16.mxu1 %v3804_v43  ;;  %v5447_v7 = vld [vmem:[#allocation11] sm:$0x3f] }
 0x246   : > { %1883 = vmatprep.mubr.bf16.mxu0 %v1092_v46  ;;  %v1091_v5 = vpack.c.bf16 %v1043_v35, %v1041_v14  ;;  %2198 = vmatpush1.bf16.msra.mxu0 %v3799_v9  ;;  %v1076_v6 = vadd.f32 %v5013_v39, %v1001_v30  ;;  %v5988_v39 = vld [vmem:[#allocation33_spill] sm:$0xff] }
 0x247   : > { %v1073_v61 = vadd.f32 %v5019_v56, %v998_v63  ;;  %v1075_v57 = vadd.f32 %v5019_v56, %v1000_v17  ;;  %v5989_v56 = vld [vmem:[#allocation48_spill] sm:$0xff] }
 0x248   : > { %2005 = vmatpush1.bf16.msra.mxu1 %v3802_v54  ;;  %v5381_v11 = vpack.c.bf16 %v1076_v6, %v1074_v48 }
 0x249   : > { %1884 = vmatmul.mubr.bf16.gmra.mrb[28].mxu0 %v1091_v5  ;;  %v5384_v51 = vpack.c.bf16 %v1075_v57, %v1073_v61 }
 0x24a   : > { %2199 = vmatprep.mubr.bf16.mxu0 %v5035_v55  ;;  %1963 = vmatprep.mubr.bf16.mxu1 %v5381_v11 }
 0x24d   : > { %1964 = vmatmul.mubr.bf16.gmra.mrb[28].mxu1 %v5384_v51 }
 0x24e   : > { %2006 = vmatprep.mubr.bf16.mxu1 %v5035_v55  ;;  %v5451_v55 = vrot.slane %v5447_v7, %v5989_v56 }
 0x251   : > { %2200 = vmatmul.mubr.bf16.vlgmr.msra.gmra.mrb[32].mxu0 %v5037_v3 }
 0x252   : > { %2209 = vmatprep.mubr.bf16.mxu0 %v5068_v28 }
 0x255   : > { %2007 = vmatmul.mubr.bf16.vlgmr.msra.gmra.mrb[32].mxu1 %v5037_v3  ;;  %v5990_v3 = vld [vmem:[#allocation47_spill] sm:$0xff] }
 0x256   : > { %2016 = vmatprep.mubr.bf16.mxu1 %v5068_v28 }
 0x259   : > { %2210 = vmatmul.mubr.bf16.gmra.mrb[36].mxu0 %v5078_v20 }
 0x25a   : > { %2219 = vmatprep.mubr.bf16.mxu0 %v5113_v60 }
 0x25d   : > { %2017 = vmatmul.mubr.bf16.gmra.mrb[36].mxu1 %v5078_v20 }
 0x25e   : > { %2026 = vmatprep.mubr.bf16.mxu1 %v5113_v60 }
 0x261   : > { %2220 = vmatmul.mubr.bf16.gmra.mrb[40].mxu0 %v5130_v29 }
 0x262   : > { %2229 = vmatprep.mubr.bf16.mxu0 %v5174_v2 }
 0x265   : > { %2027 = vmatmul.mubr.bf16.gmra.mrb[40].mxu1 %v5130_v29 }
 0x266   : > { %2036 = vmatprep.mubr.bf16.mxu1 %v5174_v2 }
 0x269   : > { %2230 = vmatmul.mubr.bf16.gmra.mrb[44].mxu0 %v5186_v13 }
 0x26a   : > { %2239 = vmatprep.mubr.bf16.mxu0 %v5227_v1 }
 0x26d   : > { %2037 = vmatmul.mubr.bf16.gmra.mrb[44].mxu1 %v5186_v13 }
 0x26e   : > { %2046 = vmatprep.mubr.bf16.mxu1 %v5227_v1 }
 0x271   : > { %2240 = vmatmul.mubr.bf16.gmra.mrb[48].mxu0 %v5246_v34 }
 0x272   : > { %2249 = vmatprep.mubr.bf16.mxu0 %v5289_v8 }
 0x275   : > { %2047 = vmatmul.mubr.bf16.gmra.mrb[48].mxu1 %v5246_v34 }
 0x276   : > { %2056 = vmatprep.mubr.bf16.mxu1 %v5289_v8 }
 0x279   : > { %2250 = vmatmul.mubr.bf16.gmra.mrb[52].mxu0 %v5294_v32 }
 0x27a   : > { %2259 = vmatprep.mubr.bf16.mxu0 %v5332_v42 }
 0x27d   : > { %2057 = vmatmul.mubr.bf16.gmra.mrb[52].mxu1 %v5294_v32 }
 0x27e   : > { %2066 = vmatprep.mubr.bf16.mxu1 %v5332_v42 }
 0x281   : > { %2260 = vmatmul.mubr.bf16.gmra.mrb[56].mxu0 %v5338_v33 }
 0x282   : > { %2269 = vmatprep.mubr.bf16.mxu0 %v1092_v46 }
 0x285   : > { %2067 = vmatmul.mubr.bf16.gmra.mrb[56].mxu1 %v5338_v33 }
 0x286   : > { %2076 = vmatprep.mubr.bf16.mxu1 %v1092_v46 }
 0x289   : > { %2270 = vmatmul.mubr.bf16.gmra.mrb[60].mxu0 %v1091_v5 }
 0x28a   : > { %2279 = vmatprep.mubr.bf16.mxu0 %v5048_v15 }
 0x28d   : > { %2077 = vmatmul.mubr.bf16.gmra.mrb[60].mxu1 %v1091_v5 }
 0x28e   : > { %2086 = vmatprep.mubr.bf16.mxu1 %v5048_v15  ;;  %v5455_v15 = vrot.slane %v5447_v7, %v5990_v3 }
 0x291   : > { %2280 = vmatmul.mubr.bf16.gmra.mrb[64].mxu0 %v5988_v39 }
 0x292   : > { %2289 = vmatprep.mubr.bf16.mxu0 %v5089_v50 }
 0x295   : > { %2087 = vmatmul.mubr.bf16.gmra.mrb[64].mxu1 %v5988_v39 }
 0x296   : > { %2096 = vmatprep.mubr.bf16.mxu1 %v5089_v50 }
 0x299   : > { %2290 = vmatmul.mubr.bf16.gmra.mrb[68].mxu0 %v5101_v4 }
 0x29a   : > { %2299 = vmatprep.mubr.bf16.mxu0 %v5145_v52 }
 0x29d   : > { %2097 = vmatmul.mubr.bf16.gmra.mrb[68].mxu1 %v5101_v4 }
 0x29e   : > { %2106 = vmatprep.mubr.bf16.mxu1 %v5145_v52 }
 0x2a1   : > { %2300 = vmatmul.mubr.bf16.gmra.mrb[72].mxu0 %v5158_v49 }
 0x2a2   : > { %2309 = vmatprep.mubr.bf16.mxu0 %v5202_v21 }
 0x2a5   : > { %2107 = vmatmul.mubr.bf16.gmra.mrb[72].mxu1 %v5158_v49 }
 0x2a6   : > { %2116 = vmatprep.mubr.bf16.mxu1 %v5202_v21 }
 0x2a9   : > { %2310 = vmatmul.mubr.bf16.gmra.mrb[76].mxu0 %v5215_v0 }
 0x2aa   : > { %2319 = vmatprep.mubr.bf16.mxu0 %v5266_v53 }
 0x2ad   : > { %2117 = vmatmul.mubr.bf16.gmra.mrb[76].mxu1 %v5215_v0 }
 0x2ae   : > { %2126 = vmatprep.mubr.bf16.mxu1 %v5266_v53 }
 0x2b1   : > { %2320 = vmatmul.mubr.bf16.gmra.mrb[80].mxu0 %v5272_v36 }
 0x2b2   : > { %2329 = vmatprep.mubr.bf16.mxu0 %v5305_v58 }
 0x2b5   : > { %2127 = vmatmul.mubr.bf16.gmra.mrb[80].mxu1 %v5272_v36 }
 0x2b6   : > { %2136 = vmatprep.mubr.bf16.mxu1 %v5305_v58 }
 0x2b9   : > { %2330 = vmatmul.mubr.bf16.gmra.mrb[84].mxu0 %v5316_v37 }
 0x2ba   : > { %2339 = vmatprep.mubr.bf16.mxu0 %v5355_v31 }
 0x2bd   : > { %2137 = vmatmul.mubr.bf16.gmra.mrb[84].mxu1 %v5316_v37 }
 0x2be   : > { %2146 = vmatprep.mubr.bf16.mxu1 %v5355_v31 }
 0x2c1   : > { %2340 = vmatmul.mubr.bf16.gmra.mrb[88].mxu0 %v5360_v44 }
 0x2c2   : > { %2349 = vmatprep.mubr.bf16.mxu0 %v5381_v11 }
 0x2c5   : > { %2147 = vmatmul.mubr.bf16.gmra.mrb[88].mxu1 %v5360_v44 }
 0x2c6   : > { %2156 = vmatprep.mubr.bf16.mxu1 %v5381_v11 }
 0x2c9   : > { %2350 = vmatmul.mubr.bf16.gmra.mrb[92].mxu0 %v5384_v51 }
 0x2cd   : > { %2157 = vmatmul.mubr.bf16.gmra.mrb[92].mxu1 %v5384_v51 }
 0x2d8   : > { %v1815_v28 = vpop.f32.mrb[0].mxu0 }
 0x2d9   : > { %v1816_v20 = vadd.f32 %v1815_v28, %v5451_v55  ;;  %v1817_v50 = vpop.f32.mrb[1].mxu0 }
 0x2da   : > { %v1818_v4 = vadd.f32 %v1817_v50, %v5455_v15  ;;  %v1819_v60 = vpop.f32.mrb[2].mxu0 }
 0x2db   : > { %v1820_v29 = vadd.f32 %v1819_v60, %v5451_v55  ;;  %v1821_v52 = vpop.f32.mrb[3].mxu0 }
 0x2dc   : > { %v3405_v49 = vpack.c.bf16 %v1818_v4, %v1816_v20  ;;  %v1822_v2 = vadd.f32 %v1821_v52, %v5455_v15 }
 0x2dd   : > { %v1895_v13 = vpop.f32.mrb[0].mxu1 }
 0x2de   : > { %2936 = vst [vmem:[%s5462_s30] sm:$0xff] %v3405_v49  ;;  %v3408_v21 = vpack.c.bf16 %v1822_v2, %v1820_v29  ;;  %v1896_v0 = vadd.f32 %v1895_v13, %v5451_v55  ;;  %v1897_v1 = vpop.f32.mrb[1].mxu1 }
 0x2df   : > { %v1898_v34 = vadd.f32 %v1897_v1, %v5455_v15  ;;  %v1899_v53 = vpop.f32.mrb[2].mxu1 }
 0x2e0   : > { %2939 = vst [vmem:[%s5462_s30 + $0x18] sm:$0xff] %v3408_v21  ;;  %v1900_v36 = vadd.f32 %v1899_v53, %v5451_v55  ;;  %v1901_v8 = vpop.f32.mrb[3].mxu1 }
 0x2e1   : > { %v3453_v32 = vpack.c.bf16 %v1898_v34, %v1896_v0  ;;  %v1902_v58 = vadd.f32 %v1901_v8, %v5455_v15 }
 0x2e3   : > { %2984 = vst [vmem:[%s5462_s30 + $0x180] sm:$0xff] %v3453_v32  ;;  %v3456_v37 = vpack.c.bf16 %v1902_v58, %v1900_v36  ;;  %v1825_v42 = vpop.f32.mrb[4].mxu0 }
 0x2e4   : > { %v1826_v33 = vadd.f32 %v1825_v42, %v5451_v55  ;;  %v1827_v45 = vpop.f32.mrb[5].mxu0 }
 0x2e5   : > { %2987 = vst [vmem:[%s5462_s30 + $0x198] sm:$0xff] %v3456_v37  ;;  %v1828_v27 = vadd.f32 %v1827_v45, %v5455_v15  ;;  %v1829_v25 = vpop.f32.mrb[6].mxu0 }
 0x2e6   : > { %v1830_v38 = vadd.f32 %v1829_v25, %v5451_v55  ;;  %v1831_v31 = vpop.f32.mrb[7].mxu0 }
 0x2e7   : > { %v3411_v59 = vpack.c.bf16 %v1828_v27, %v1826_v33  ;;  %v1832_v40 = vadd.f32 %v1831_v31, %v5455_v15 }
 0x2e8   : > { %v1905_v16 = vpop.f32.mrb[4].mxu1 }
 0x2e9   : > { %2942 = vst [vmem:[%s5462_s30 + $0x30] sm:$0xff] %v3411_v59  ;;  %v3414_v47 = vpack.c.bf16 %v1832_v40, %v1830_v38  ;;  %v1906_v44 = vadd.f32 %v1905_v16, %v5451_v55  ;;  %v1907_v19 = vpop.f32.mrb[5].mxu1 }
 0x2ea   : > { %v1908_v22 = vadd.f32 %v1907_v19, %v5455_v15  ;;  %v1909_v12 = vpop.f32.mrb[6].mxu1 }
 0x2eb   : > { %2945 = vst [vmem:[%s5462_s30 + $0x48] sm:$0xff] %v3414_v47  ;;  %v1910_v9 = vadd.f32 %v1909_v12, %v5451_v55  ;;  %v1911_v62 = vpop.f32.mrb[7].mxu1 }
 0x2ec   : > { %v3459_v41 = vpack.c.bf16 %v1908_v22, %v1906_v44  ;;  %v1912_v24 = vadd.f32 %v1911_v62, %v5455_v15 }
 0x2ee   : > { %2990 = vst [vmem:[%s5462_s30 + $0x1b0] sm:$0xff] %v3459_v41  ;;  %v3462_v23 = vpack.c.bf16 %v1912_v24, %v1910_v9  ;;  %v1835_v10 = vpop.f32.mrb[8].mxu0 }
 0x2ef   : > { %v1836_v43 = vadd.f32 %v1835_v10, %v5451_v55  ;;  %v1837_v46 = vpop.f32.mrb[9].mxu0 }
 0x2f0   : > { %2993 = vst [vmem:[%s5462_s30 + $0x1c8] sm:$0xff] %v3462_v23  ;;  %v1838_v14 = vadd.f32 %v1837_v46, %v5455_v15  ;;  %v1839_v35 = vpop.f32.mrb[10].mxu0 }
 0x2f1   : > { %v1840_v18 = vadd.f32 %v1839_v35, %v5451_v55  ;;  %v1841_v26 = vpop.f32.mrb[11].mxu0 }
 0x2f2   : > { %v3417_v54 = vpack.c.bf16 %v1838_v14, %v1836_v43  ;;  %v1842_v30 = vadd.f32 %v1841_v26, %v5455_v15 }
 0x2f3   : > { %v1915_v5 = vpop.f32.mrb[8].mxu1 }
 0x2f4   : > { %2948 = vst [vmem:[%s5462_s30 + $0x60] sm:$0xff] %v3417_v54  ;;  %v3420_v63 = vpack.c.bf16 %v1842_v30, %v1840_v18  ;;  %v1916_v17 = vadd.f32 %v1915_v5, %v5451_v55  ;;  %v1917_v48 = vpop.f32.mrb[9].mxu1 }
 0x2f5   : > { %v1918_v6 = vadd.f32 %v1917_v48, %v5455_v15  ;;  %v1919_v61 = vpop.f32.mrb[10].mxu1 }
 0x2f6   : > { %2951 = vst [vmem:[%s5462_s30 + $0x78] sm:$0xff] %v3420_v63  ;;  %v1920_v57 = vadd.f32 %v1919_v61, %v5451_v55  ;;  %v1921_v11 = vpop.f32.mrb[11].mxu1 }
 0x2f7   : > { %v3465_v51 = vpack.c.bf16 %v1918_v6, %v1916_v17  ;;  %v1922_v39 = vadd.f32 %v1921_v11, %v5455_v15 }
 0x2f9   : > { %v1845_v56 = vpop.f32.mrb[12].mxu0  ;;  %2996 = vst [vmem:[%s5462_s30 + $0x1e0] sm:$0xff] %v3465_v51  ;;  %v3468_v3 = vpack.c.bf16 %v1922_v39, %v1920_v57 }
 0x2fa   : > { %v1846_v28 = vadd.f32 %v1845_v56, %v5451_v55  ;;  %v1847_v20 = vpop.f32.mrb[13].mxu0 }
 0x2fb   : > { %v1848_v50 = vadd.f32 %v1847_v20, %v5455_v15  ;;  %v1849_v4 = vpop.f32.mrb[14].mxu0  ;;  %2999 = vst [vmem:[%s5462_s30 + $0x1f8] sm:$0xff] %v3468_v3 }
 0x2fc   : > { %v1850_v60 = vadd.f32 %v1849_v4, %v5451_v55  ;;  %v1851_v29 = vpop.f32.mrb[15].mxu0 }
 0x2fd   : > { %v3423_v52 = vpack.c.bf16 %v1848_v50, %v1846_v28  ;;  %v1852_v49 = vadd.f32 %v1851_v29, %v5455_v15 }
 0x2ff   : > { %2954 = vst [vmem:[%s5462_s30 + $0x90] sm:$0xff] %v3423_v52  ;;  %v3426_v2 = vpack.c.bf16 %v1852_v49, %v1850_v60  ;;  %v1925_v13 = vpop.f32.mrb[12].mxu1 }
 0x300   : > { %v1926_v21 = vadd.f32 %v1925_v13, %v5451_v55  ;;  %v1927_v0 = vpop.f32.mrb[13].mxu1 }
 0x301   : > { %2957 = vst [vmem:[%s5462_s30 + $0xa8] sm:$0xff] %v3426_v2  ;;  %v1928_v1 = vadd.f32 %v1927_v0, %v5455_v15  ;;  %v1929_v34 = vpop.f32.mrb[14].mxu1 }
 0x302   : > { %v1930_v53 = vadd.f32 %v1929_v34, %v5451_v55  ;;  %v1931_v36 = vpop.f32.mrb[15].mxu1 }
 0x303   : > { %v3471_v8 = vpack.c.bf16 %v1928_v1, %v1926_v21  ;;  %v1932_v32 = vadd.f32 %v1931_v36, %v5455_v15 }
 0x304   : > { %v1855_v58 = vpop.f32.mrb[16].mxu0 }
 0x305   : > { %3002 = vst [vmem:[%s5462_s30 + $0x210] sm:$0xff] %v3471_v8  ;;  %v3474_v37 = vpack.c.bf16 %v1932_v32, %v1930_v53  ;;  %v1856_v42 = vadd.f32 %v1855_v58, %v5451_v55  ;;  %v1857_v33 = vpop.f32.mrb[17].mxu0  ;;  %v5991_v58 = vld [vmem:[#allocation46_spill] sm:$0xff] }
 0x306   : > { %v1858_v45 = vadd.f32 %v1857_v33, %v5455_v15  ;;  %v1859_v27 = vpop.f32.mrb[18].mxu0 }
 0x307   : > { %3005 = vst [vmem:[%s5462_s30 + $0x228] sm:$0xff] %v3474_v37  ;;  %v1860_v25 = vadd.f32 %v1859_v27, %v5451_v55  ;;  %v1861_v38 = vpop.f32.mrb[19].mxu0  ;;  %v1289_v37 = vsub.s32 4, %v5991_v58 }
 0x308   : > { %v3429_v31 = vpack.c.bf16 %v1858_v45, %v1856_v42  ;;  %v1862_v59 = vadd.f32 %v1861_v38, %v5455_v15  ;;  %v1935_v40 = vpop.f32.mrb[16].mxu1  ;;  %v1293_v45 = vsub.s32 5, %v5991_v58 }
 0x309   : > { %v1936_v16 = vadd.f32 %v1935_v40, %v5451_v55  ;;  %v1937_v47 = vpop.f32.mrb[17].mxu1 }
 0x30a   : > { %2960 = vst [vmem:[%s5462_s30 + $0xc0] sm:$0xff] %v3429_v31  ;;  %v3432_v44 = vpack.c.bf16 %v1862_v59, %v1860_v25  ;;  %v1938_v19 = vadd.f32 %v1937_v47, %v5455_v15  ;;  %v1939_v22 = vpop.f32.mrb[18].mxu1 }
 0x30b   : > { %v1940_v12 = vadd.f32 %v1939_v22, %v5451_v55  ;;  %v1941_v9 = vpop.f32.mrb[19].mxu1 }
 0x30c   : > { %2963 = vst [vmem:[%s5462_s30 + $0xd8] sm:$0xff] %v3432_v44  ;;  %v3477_v62 = vpack.c.bf16 %v1938_v19, %v1936_v16  ;;  %v1942_v41 = vadd.f32 %v1941_v9, %v5455_v15  ;;  %v1865_v24 = vpop.f32.mrb[20].mxu0  ;;  %v1281_v44 = vsub.s32 2, %v5991_v58  ;;  %v1285_v9 = vsub.s32 3, %v5991_v58 }
 0x30d   : > { %v1866_v23 = vadd.f32 %v1865_v24, %v5451_v55  ;;  %v1867_v10 = vpop.f32.mrb[21].mxu0 }
 0x30e   : > { %3008 = vst [vmem:[%s5462_s30 + $0x240] sm:$0xff] %v3477_v62  ;;  %v3480_v43 = vpack.c.bf16 %v1942_v41, %v1940_v12  ;;  %v1868_v46 = vadd.f32 %v1867_v10, %v5455_v15  ;;  %v1869_v14 = vpop.f32.mrb[22].mxu0  ;;  %v5553_v12 = vrot.slane %v5447_v7, %v1289_v37 }
 0x30f   : > { %v1870_v35 = vadd.f32 %v1869_v14, %v5451_v55  ;;  %v1871_v18 = vpop.f32.mrb[23].mxu0 }
 0x310   : > { %3011 = vst [vmem:[%s5462_s30 + $0x258] sm:$0xff] %v3480_v43  ;;  %v3435_v26 = vpack.c.bf16 %v1868_v46, %v1866_v23  ;;  %v1872_v54 = vadd.f32 %v1871_v18, %v5455_v15  ;;  %v1945_v30 = vpop.f32.mrb[20].mxu1  ;;  %v5559_v23 = vrot.slane %v5447_v7, %v1293_v45 }
 0x311   : > { %v1946_v63 = vadd.f32 %v1945_v30, %v5451_v55  ;;  %v1947_v5 = vpop.f32.mrb[21].mxu1 }
 0x312   : > { %2966 = vst [vmem:[%s5462_s30 + $0xf0] sm:$0xff] %v3435_v26  ;;  %v3438_v17 = vpack.c.bf16 %v1872_v54, %v1870_v35  ;;  %v1948_v48 = vadd.f32 %v1947_v5, %v5455_v15  ;;  %v1949_v6 = vpop.f32.mrb[22].mxu1  ;;  %v5566_v54 = vrot.slane %v5447_v7, %v1281_v44 }
 0x313   : > { %v1950_v61 = vadd.f32 %v1949_v6, %v5451_v55  ;;  %v1951_v57 = vpop.f32.mrb[23].mxu1 }
 0x314   : > { %2969 = vst [vmem:[%s5462_s30 + $0x108] sm:$0xff] %v3438_v17  ;;  %v3483_v11 = vpack.c.bf16 %v1948_v48, %v1946_v63  ;;  %v1952_v51 = vadd.f32 %v1951_v57, %v5455_v15  ;;  %v1875_v39 = vpop.f32.mrb[24].mxu0 }
 0x315   : > { %v1876_v56 = vadd.f32 %v1875_v39, %v5451_v55  ;;  %v1877_v3 = vpop.f32.mrb[25].mxu0 }
 0x316   : > { %3014 = vst [vmem:[%s5462_s30 + $0x270] sm:$0xff] %v3483_v11  ;;  %v3486_v28 = vpack.c.bf16 %v1952_v51, %v1950_v61  ;;  %v1878_v20 = vadd.f32 %v1877_v3, %v5455_v15  ;;  %v1879_v50 = vpop.f32.mrb[26].mxu0 }
 0x317   : > { %v1880_v4 = vadd.f32 %v1879_v50, %v5451_v55  ;;  %v1881_v60 = vpop.f32.mrb[27].mxu0 }
 0x318   : > { %3017 = vst [vmem:[%s5462_s30 + $0x288] sm:$0xff] %v3486_v28  ;;  %v3441_v29 = vpack.c.bf16 %v1878_v20, %v1876_v56  ;;  %v1882_v52 = vadd.f32 %v1881_v60, %v5455_v15  ;;  %v1955_v49 = vpop.f32.mrb[24].mxu1 }
 0x319   : > { %v1956_v2 = vadd.f32 %v1955_v49, %v5451_v55  ;;  %v1957_v13 = vpop.f32.mrb[25].mxu1 }
 0x31a   : > { %2972 = vst [vmem:[%s5462_s30 + $0x120] sm:$0xff] %v3441_v29  ;;  %v3444_v21 = vpack.c.bf16 %v1882_v52, %v1880_v4  ;;  %v1958_v0 = vadd.f32 %v1957_v13, %v5455_v15  ;;  %v1959_v1 = vpop.f32.mrb[26].mxu1 }
 0x31b   : > { %v1960_v34 = vadd.f32 %v1959_v1, %v5451_v55  ;;  %v1961_v53 = vpop.f32.mrb[27].mxu1 }
 0x31c   : > { %2975 = vst [vmem:[%s5462_s30 + $0x138] sm:$0xff] %v3444_v21  ;;  %v3489_v36 = vpack.c.bf16 %v1958_v0, %v1956_v2  ;;  %v1962_v8 = vadd.f32 %v1961_v53, %v5455_v15  ;;  %v1885_v32 = vpop.f32.mrb[28].mxu0 }
 0x31d   : > { %v1886_v42 = vadd.f32 %v1885_v32, %v5451_v55  ;;  %v1887_v33 = vpop.f32.mrb[29].mxu0 }
 0x31e   : > { %3020 = vst [vmem:[%s5462_s30 + $0x2a0] sm:$0xff] %v3489_v36  ;;  %v3492_v27 = vpack.c.bf16 %v1962_v8, %v1960_v34  ;;  %v1888_v25 = vadd.f32 %v1887_v33, %v5455_v15  ;;  %v1889_v38 = vpop.f32.mrb[30].mxu0 }
 0x31f   : > { %v1890_v31 = vadd.f32 %v1889_v38, %v5451_v55  ;;  %v1891_v59 = vpop.f32.mrb[31].mxu0 }
 0x320   : > { %3023 = vst [vmem:[%s5462_s30 + $0x2b8] sm:$0xff] %v3492_v27  ;;  %v3447_v40 = vpack.c.bf16 %v1888_v25, %v1886_v42  ;;  %v1892_v16 = vadd.f32 %v1891_v59, %v5455_v15  ;;  %v1965_v47 = vpop.f32.mrb[28].mxu1 }
 0x321   : > { %v1966_v19 = vadd.f32 %v1965_v47, %v5451_v55  ;;  %v1967_v22 = vpop.f32.mrb[29].mxu1 }
 0x322   : > { %2978 = vst [vmem:[%s5462_s30 + $0x150] sm:$0xff] %v3447_v40  ;;  %v3450_v62 = vpack.c.bf16 %v1892_v16, %v1890_v31  ;;  %v1968_v41 = vadd.f32 %v1967_v22, %v5455_v15  ;;  %v1969_v24 = vpop.f32.mrb[30].mxu1 }
 0x323   : > { %v1970_v10 = vadd.f32 %v1969_v24, %v5451_v55  ;;  %v1971_v43 = vpop.f32.mrb[31].mxu1  ;;  %v5571_v55 = vrot.slane %v5447_v7, %v1285_v9 }
 0x324   : > { %2981 = vst [vmem:[%s5462_s30 + $0x168] sm:$0xff] %v3450_v62  ;;  %v3495_v46 = vpack.c.bf16 %v1968_v41, %v1966_v19  ;;  %v1972_v14 = vadd.f32 %v1971_v43, %v5455_v15  ;;  %v2201_v35 = vpop.f32.mrb[32].mxu0 }
 0x325   : > { %v2202_v18 = vadd.f32 %v2201_v35, %v5553_v12  ;;  %v2203_v26 = vpop.f32.mrb[33].mxu0 }
 0x326   : > { %3026 = vst [vmem:[%s5462_s30 + $0x2d0] sm:$0xff] %v3495_v46  ;;  %v3498_v30 = vpack.c.bf16 %v1972_v14, %v1970_v10  ;;  %v2204_v63 = vadd.f32 %v2203_v26, %v5559_v23  ;;  %v2205_v5 = vpop.f32.mrb[34].mxu0 }
 0x327   : > { %v2206_v17 = vadd.f32 %v2205_v5, %v5553_v12  ;;  %v2207_v15 = vpop.f32.mrb[35].mxu0 }
 0x328   : > { %3029 = vst [vmem:[%s5462_s30 + $0x2e8] sm:$0xff] %v3498_v30  ;;  %v3407_v48 = vpack.c.bf16 %v2204_v63, %v2202_v18  ;;  %v2208_v6 = vadd.f32 %v2207_v15, %v5559_v23  ;;  %v2008_v61 = vpop.f32.mrb[32].mxu1 }
 0x329   : > { %v2009_v57 = vadd.f32 %v2008_v61, %v5566_v54  ;;  %v2010_v11 = vpop.f32.mrb[33].mxu1 }
 0x32a   : > { %2938 = vst [vmem:[%s5462_s30 + $0x10] sm:$0xff] %v3407_v48  ;;  %v3410_v51 = vpack.c.bf16 %v2208_v6, %v2206_v17  ;;  %v2011_v39 = vadd.f32 %v2010_v11, %v5571_v55  ;;  %v2012_v56 = vpop.f32.mrb[34].mxu1 }
 0x32b   : > { %v2013_v7 = vadd.f32 %v2012_v56, %v5566_v54  ;;  %v2014_v3 = vpop.f32.mrb[35].mxu1 }
 0x32c   : > { %2941 = vst [vmem:[%s5462_s30 + $0x28] sm:$0xff] %v3410_v51  ;;  %v3406_v28 = vpack.c.bf16 %v2011_v39, %v2009_v57  ;;  %v2015_v20 = vadd.f32 %v2014_v3, %v5571_v55  ;;  %v2211_v50 = vpop.f32.mrb[36].mxu0 }
 0x32d   : > { %v2212_v4 = vadd.f32 %v2211_v50, %v5553_v12  ;;  %v2213_v60 = vpop.f32.mrb[37].mxu0 }
 0x32e   : > { %2937 = vst [vmem:[%s5462_s30 + $0x8] sm:$0xff] %v3406_v28  ;;  %v3409_v29 = vpack.c.bf16 %v2015_v20, %v2013_v7  ;;  %v2214_v52 = vadd.f32 %v2213_v60, %v5559_v23  ;;  %v2215_v49 = vpop.f32.mrb[38].mxu0 }
 0x32f   : > { %v2216_v2 = vadd.f32 %v2215_v49, %v5553_v12  ;;  %v2217_v13 = vpop.f32.mrb[39].mxu0 }
 0x330   : > { %2940 = vst [vmem:[%s5462_s30 + $0x20] sm:$0xff] %v3409_v29  ;;  %v3413_v21 = vpack.c.bf16 %v2214_v52, %v2212_v4  ;;  %v2218_v0 = vadd.f32 %v2217_v13, %v5559_v23  ;;  %v2018_v1 = vpop.f32.mrb[36].mxu1 }
 0x331   : > { %v2019_v34 = vadd.f32 %v2018_v1, %v5566_v54  ;;  %v2020_v53 = vpop.f32.mrb[37].mxu1 }
 0x332   : > { %2944 = vst [vmem:[%s5462_s30 + $0x40] sm:$0xff] %v3413_v21  ;;  %v3416_v36 = vpack.c.bf16 %v2218_v0, %v2216_v2  ;;  %v2021_v8 = vadd.f32 %v2020_v53, %v5571_v55  ;;  %v2022_v32 = vpop.f32.mrb[38].mxu1 }
 0x333   : > { %v2023_v58 = vadd.f32 %v2022_v32, %v5566_v54  ;;  %v2024_v37 = vpop.f32.mrb[39].mxu1 }
 0x334   : > { %2947 = vst [vmem:[%s5462_s30 + $0x58] sm:$0xff] %v3416_v36  ;;  %v3412_v42 = vpack.c.bf16 %v2021_v8, %v2019_v34  ;;  %v2025_v33 = vadd.f32 %v2024_v37, %v5571_v55  ;;  %v2221_v45 = vpop.f32.mrb[40].mxu0 }
 0x335   : > { %v2222_v27 = vadd.f32 %v2221_v45, %v5553_v12  ;;  %v2223_v25 = vpop.f32.mrb[41].mxu0 }
 0x336   : > { %2943 = vst [vmem:[%s5462_s30 + $0x38] sm:$0xff] %v3412_v42  ;;  %v3415_v38 = vpack.c.bf16 %v2025_v33, %v2023_v58  ;;  %v2224_v31 = vadd.f32 %v2223_v25, %v5559_v23  ;;  %v2225_v59 = vpop.f32.mrb[42].mxu0 }
 0x337   : > { %v2226_v40 = vadd.f32 %v2225_v59, %v5553_v12  ;;  %v2227_v16 = vpop.f32.mrb[43].mxu0 }
 0x338   : > { %2946 = vst [vmem:[%s5462_s30 + $0x50] sm:$0xff] %v3415_v38  ;;  %v3419_v47 = vpack.c.bf16 %v2224_v31, %v2222_v27  ;;  %v2228_v44 = vadd.f32 %v2227_v16, %v5559_v23  ;;  %v2028_v19 = vpop.f32.mrb[40].mxu1 }
 0x339   : > { %v2029_v22 = vadd.f32 %v2028_v19, %v5566_v54  ;;  %v2030_v9 = vpop.f32.mrb[41].mxu1 }
 0x33a   : > { %2950 = vst [vmem:[%s5462_s30 + $0x70] sm:$0xff] %v3419_v47  ;;  %v3422_v62 = vpack.c.bf16 %v2228_v44, %v2226_v40  ;;  %v2031_v41 = vadd.f32 %v2030_v9, %v5571_v55  ;;  %v2032_v24 = vpop.f32.mrb[42].mxu1 }
 0x33b   : > { %v2033_v10 = vadd.f32 %v2032_v24, %v5566_v54  ;;  %v2034_v43 = vpop.f32.mrb[43].mxu1 }
 0x33c   : > { %2953 = vst [vmem:[%s5462_s30 + $0x88] sm:$0xff] %v3422_v62  ;;  %v3418_v46 = vpack.c.bf16 %v2031_v41, %v2029_v22  ;;  %v2035_v14 = vadd.f32 %v2034_v43, %v5571_v55  ;;  %v2231_v35 = vpop.f32.mrb[44].mxu0 }
 0x33d   : > { %v2232_v18 = vadd.f32 %v2231_v35, %v5553_v12  ;;  %v2233_v26 = vpop.f32.mrb[45].mxu0 }
 0x33e   : > { %2949 = vst [vmem:[%s5462_s30 + $0x68] sm:$0xff] %v3418_v46  ;;  %v3421_v30 = vpack.c.bf16 %v2035_v14, %v2033_v10  ;;  %v2234_v63 = vadd.f32 %v2233_v26, %v5559_v23  ;;  %v2235_v5 = vpop.f32.mrb[46].mxu0 }
 0x33f   : > { %v2236_v17 = vadd.f32 %v2235_v5, %v5553_v12  ;;  %v2237_v15 = vpop.f32.mrb[47].mxu0 }
 0x340   : > { %2952 = vst [vmem:[%s5462_s30 + $0x80] sm:$0xff] %v3421_v30  ;;  %v3425_v48 = vpack.c.bf16 %v2234_v63, %v2232_v18  ;;  %v2238_v6 = vadd.f32 %v2237_v15, %v5559_v23  ;;  %v2038_v61 = vpop.f32.mrb[44].mxu1 }
 0x341   : > { %v2039_v57 = vadd.f32 %v2038_v61, %v5566_v54  ;;  %v2040_v11 = vpop.f32.mrb[45].mxu1 }
 0x342   : > { %2956 = vst [vmem:[%s5462_s30 + $0xa0] sm:$0xff] %v3425_v48  ;;  %v3428_v51 = vpack.c.bf16 %v2238_v6, %v2236_v17  ;;  %v2041_v39 = vadd.f32 %v2040_v11, %v5571_v55  ;;  %v2042_v56 = vpop.f32.mrb[46].mxu1 }
 0x343   : > { %v2043_v7 = vadd.f32 %v2042_v56, %v5566_v54  ;;  %v2044_v3 = vpop.f32.mrb[47].mxu1 }
 0x344   : > { %2959 = vst [vmem:[%s5462_s30 + $0xb8] sm:$0xff] %v3428_v51  ;;  %v3424_v28 = vpack.c.bf16 %v2041_v39, %v2039_v57  ;;  %v2045_v20 = vadd.f32 %v2044_v3, %v5571_v55  ;;  %v2241_v50 = vpop.f32.mrb[48].mxu0 }
 0x345   : > { %v2242_v4 = vadd.f32 %v2241_v50, %v5553_v12  ;;  %v2243_v60 = vpop.f32.mrb[49].mxu0 }
 0x346   : > { %2955 = vst [vmem:[%s5462_s30 + $0x98] sm:$0xff] %v3424_v28  ;;  %v3427_v29 = vpack.c.bf16 %v2045_v20, %v2043_v7  ;;  %v2244_v52 = vadd.f32 %v2243_v60, %v5559_v23  ;;  %v2245_v49 = vpop.f32.mrb[50].mxu0 }
 0x347   : > { %v2246_v2 = vadd.f32 %v2245_v49, %v5553_v12  ;;  %v2247_v13 = vpop.f32.mrb[51].mxu0 }
 0x348   : > { %2958 = vst [vmem:[%s5462_s30 + $0xb0] sm:$0xff] %v3427_v29  ;;  %v3431_v21 = vpack.c.bf16 %v2244_v52, %v2242_v4  ;;  %v2248_v0 = vadd.f32 %v2247_v13, %v5559_v23  ;;  %v2048_v1 = vpop.f32.mrb[48].mxu1 }
 0x349   : > { %v2049_v34 = vadd.f32 %v2048_v1, %v5566_v54  ;;  %v2050_v53 = vpop.f32.mrb[49].mxu1 }
 0x34a   : > { %2962 = vst [vmem:[%s5462_s30 + $0xd0] sm:$0xff] %v3431_v21  ;;  %v3434_v36 = vpack.c.bf16 %v2248_v0, %v2246_v2  ;;  %v2051_v8 = vadd.f32 %v2050_v53, %v5571_v55  ;;  %v2052_v32 = vpop.f32.mrb[50].mxu1 }
 0x34b   : > { %v2053_v58 = vadd.f32 %v2052_v32, %v5566_v54  ;;  %v2054_v37 = vpop.f32.mrb[51].mxu1 }
 0x34c   : > { %2965 = vst [vmem:[%s5462_s30 + $0xe8] sm:$0xff] %v3434_v36  ;;  %v3430_v42 = vpack.c.bf16 %v2051_v8, %v2049_v34  ;;  %v2055_v33 = vadd.f32 %v2054_v37, %v5571_v55  ;;  %v2251_v45 = vpop.f32.mrb[52].mxu0 }
 0x34d   : > { %v2252_v27 = vadd.f32 %v2251_v45, %v5553_v12  ;;  %v2253_v25 = vpop.f32.mrb[53].mxu0 }
 0x34e   : > { %2961 = vst [vmem:[%s5462_s30 + $0xc8] sm:$0xff] %v3430_v42  ;;  %v3433_v38 = vpack.c.bf16 %v2055_v33, %v2053_v58  ;;  %v2254_v31 = vadd.f32 %v2253_v25, %v5559_v23  ;;  %v2255_v59 = vpop.f32.mrb[54].mxu0 }
 0x34f   : > { %v2256_v40 = vadd.f32 %v2255_v59, %v5553_v12  ;;  %v2257_v16 = vpop.f32.mrb[55].mxu0 }
 0x350   : > { %2964 = vst [vmem:[%s5462_s30 + $0xe0] sm:$0xff] %v3433_v38  ;;  %v3437_v47 = vpack.c.bf16 %v2254_v31, %v2252_v27  ;;  %v2258_v44 = vadd.f32 %v2257_v16, %v5559_v23  ;;  %v2058_v19 = vpop.f32.mrb[52].mxu1 }
 0x351   : > { %v2059_v22 = vadd.f32 %v2058_v19, %v5566_v54  ;;  %v2060_v9 = vpop.f32.mrb[53].mxu1 }
 0x352   : > { %2968 = vst [vmem:[%s5462_s30 + $0x100] sm:$0xff] %v3437_v47  ;;  %v3440_v62 = vpack.c.bf16 %v2258_v44, %v2256_v40  ;;  %v2061_v41 = vadd.f32 %v2060_v9, %v5571_v55  ;;  %v2062_v24 = vpop.f32.mrb[54].mxu1 }
 0x353   : > { %v2063_v10 = vadd.f32 %v2062_v24, %v5566_v54  ;;  %v2064_v43 = vpop.f32.mrb[55].mxu1 }
 0x354   : > { %2971 = vst [vmem:[%s5462_s30 + $0x118] sm:$0xff] %v3440_v62  ;;  %v3436_v46 = vpack.c.bf16 %v2061_v41, %v2059_v22  ;;  %v2065_v14 = vadd.f32 %v2064_v43, %v5571_v55  ;;  %v2261_v35 = vpop.f32.mrb[56].mxu0 }
 0x355   : > { %v2262_v18 = vadd.f32 %v2261_v35, %v5553_v12  ;;  %v2263_v26 = vpop.f32.mrb[57].mxu0 }
 0x356   : > { %2967 = vst [vmem:[%s5462_s30 + $0xf8] sm:$0xff] %v3436_v46  ;;  %v3439_v30 = vpack.c.bf16 %v2065_v14, %v2063_v10  ;;  %v2264_v63 = vadd.f32 %v2263_v26, %v5559_v23  ;;  %v2265_v5 = vpop.f32.mrb[58].mxu0 }
 0x357   : > { %v2266_v17 = vadd.f32 %v2265_v5, %v5553_v12  ;;  %v2267_v15 = vpop.f32.mrb[59].mxu0 }
 0x358   : > { %2970 = vst [vmem:[%s5462_s30 + $0x110] sm:$0xff] %v3439_v30  ;;  %v3443_v48 = vpack.c.bf16 %v2264_v63, %v2262_v18  ;;  %v2268_v6 = vadd.f32 %v2267_v15, %v5559_v23  ;;  %v2068_v61 = vpop.f32.mrb[56].mxu1 }
 0x359   : > { %v2069_v57 = vadd.f32 %v2068_v61, %v5566_v54  ;;  %v2070_v11 = vpop.f32.mrb[57].mxu1 }
 0x35a   : > { %2974 = vst [vmem:[%s5462_s30 + $0x130] sm:$0xff] %v3443_v48  ;;  %v3446_v51 = vpack.c.bf16 %v2268_v6, %v2266_v17  ;;  %v2071_v39 = vadd.f32 %v2070_v11, %v5571_v55  ;;  %v2072_v56 = vpop.f32.mrb[58].mxu1 }
 0x35b   : > { %v2073_v7 = vadd.f32 %v2072_v56, %v5566_v54  ;;  %v2074_v3 = vpop.f32.mrb[59].mxu1 }
 0x35c   : > { %2977 = vst [vmem:[%s5462_s30 + $0x148] sm:$0xff] %v3446_v51  ;;  %v3442_v28 = vpack.c.bf16 %v2071_v39, %v2069_v57  ;;  %v2075_v20 = vadd.f32 %v2074_v3, %v5571_v55  ;;  %v2271_v50 = vpop.f32.mrb[60].mxu0 }
 0x35d   : > { %v2272_v4 = vadd.f32 %v2271_v50, %v5553_v12  ;;  %v2273_v60 = vpop.f32.mrb[61].mxu0 }
 0x35e   : > { %2973 = vst [vmem:[%s5462_s30 + $0x128] sm:$0xff] %v3442_v28  ;;  %v3445_v29 = vpack.c.bf16 %v2075_v20, %v2073_v7  ;;  %v2274_v52 = vadd.f32 %v2273_v60, %v5559_v23  ;;  %v2275_v49 = vpop.f32.mrb[62].mxu0 }
 0x35f   : > { %v2276_v2 = vadd.f32 %v2275_v49, %v5553_v12  ;;  %v2277_v13 = vpop.f32.mrb[63].mxu0 }
 0x360   : > { %2976 = vst [vmem:[%s5462_s30 + $0x140] sm:$0xff] %v3445_v29  ;;  %v3449_v21 = vpack.c.bf16 %v2274_v52, %v2272_v4  ;;  %v2278_v0 = vadd.f32 %v2277_v13, %v5559_v23  ;;  %v2078_v1 = vpop.f32.mrb[60].mxu1 }
 0x361   : > { %v2079_v34 = vadd.f32 %v2078_v1, %v5566_v54  ;;  %v2080_v53 = vpop.f32.mrb[61].mxu1 }
 0x362   : > { %2980 = vst [vmem:[%s5462_s30 + $0x160] sm:$0xff] %v3449_v21  ;;  %v3452_v36 = vpack.c.bf16 %v2278_v0, %v2276_v2  ;;  %v2081_v8 = vadd.f32 %v2080_v53, %v5571_v55  ;;  %v2082_v32 = vpop.f32.mrb[62].mxu1 }
 0x363   : > { %v2083_v58 = vadd.f32 %v2082_v32, %v5566_v54  ;;  %v2084_v37 = vpop.f32.mrb[63].mxu1 }
 0x364   : > { %2983 = vst [vmem:[%s5462_s30 + $0x178] sm:$0xff] %v3452_v36  ;;  %v3448_v42 = vpack.c.bf16 %v2081_v8, %v2079_v34  ;;  %v2085_v33 = vadd.f32 %v2084_v37, %v5571_v55  ;;  %v2281_v45 = vpop.f32.mrb[64].mxu0 }
 0x365   : > { %v2282_v27 = vadd.f32 %v2281_v45, %v5553_v12  ;;  %v2283_v25 = vpop.f32.mrb[65].mxu0 }
 0x366   : > { %2979 = vst [vmem:[%s5462_s30 + $0x158] sm:$0xff] %v3448_v42  ;;  %v3451_v38 = vpack.c.bf16 %v2085_v33, %v2083_v58  ;;  %v2284_v31 = vadd.f32 %v2283_v25, %v5559_v23  ;;  %v2285_v59 = vpop.f32.mrb[66].mxu0 }
 0x367   : > { %v2286_v40 = vadd.f32 %v2285_v59, %v5553_v12  ;;  %v2287_v16 = vpop.f32.mrb[67].mxu0 }
 0x368   : > { %2982 = vst [vmem:[%s5462_s30 + $0x170] sm:$0xff] %v3451_v38  ;;  %v3455_v47 = vpack.c.bf16 %v2284_v31, %v2282_v27  ;;  %v2288_v44 = vadd.f32 %v2287_v16, %v5559_v23  ;;  %v2088_v19 = vpop.f32.mrb[64].mxu1 }
 0x369   : > { %v2089_v22 = vadd.f32 %v2088_v19, %v5566_v54  ;;  %v2090_v9 = vpop.f32.mrb[65].mxu1 }
 0x36a   : > { %2986 = vst [vmem:[%s5462_s30 + $0x190] sm:$0xff] %v3455_v47  ;;  %v3458_v62 = vpack.c.bf16 %v2288_v44, %v2286_v40  ;;  %v2091_v41 = vadd.f32 %v2090_v9, %v5571_v55  ;;  %v2092_v24 = vpop.f32.mrb[66].mxu1 }
 0x36b   : > { %v2093_v10 = vadd.f32 %v2092_v24, %v5566_v54  ;;  %v2094_v43 = vpop.f32.mrb[67].mxu1 }
 0x36c   : > { %2989 = vst [vmem:[%s5462_s30 + $0x1a8] sm:$0xff] %v3458_v62  ;;  %v3454_v46 = vpack.c.bf16 %v2091_v41, %v2089_v22  ;;  %v2095_v14 = vadd.f32 %v2094_v43, %v5571_v55  ;;  %v2291_v35 = vpop.f32.mrb[68].mxu0 }
 0x36d   : > { %v2292_v18 = vadd.f32 %v2291_v35, %v5553_v12  ;;  %v2293_v26 = vpop.f32.mrb[69].mxu0 }
 0x36e   : > { %2985 = vst [vmem:[%s5462_s30 + $0x188] sm:$0xff] %v3454_v46  ;;  %v3457_v30 = vpack.c.bf16 %v2095_v14, %v2093_v10  ;;  %v2294_v63 = vadd.f32 %v2293_v26, %v5559_v23  ;;  %v2295_v5 = vpop.f32.mrb[70].mxu0 }
 0x36f   : > { %v2296_v17 = vadd.f32 %v2295_v5, %v5553_v12  ;;  %v2297_v15 = vpop.f32.mrb[71].mxu0 }
 0x370   : > { %2988 = vst [vmem:[%s5462_s30 + $0x1a0] sm:$0xff] %v3457_v30  ;;  %v3461_v48 = vpack.c.bf16 %v2294_v63, %v2292_v18  ;;  %v2298_v6 = vadd.f32 %v2297_v15, %v5559_v23  ;;  %v2098_v61 = vpop.f32.mrb[68].mxu1 }
 0x371   : > { %v2099_v57 = vadd.f32 %v2098_v61, %v5566_v54  ;;  %v2100_v11 = vpop.f32.mrb[69].mxu1 }
 0x372   : > { %2992 = vst [vmem:[%s5462_s30 + $0x1c0] sm:$0xff] %v3461_v48  ;;  %v3464_v51 = vpack.c.bf16 %v2298_v6, %v2296_v17  ;;  %v2101_v39 = vadd.f32 %v2100_v11, %v5571_v55  ;;  %v2102_v56 = vpop.f32.mrb[70].mxu1 }
 0x373   : > { %v2103_v7 = vadd.f32 %v2102_v56, %v5566_v54  ;;  %v2104_v3 = vpop.f32.mrb[71].mxu1 }
 0x374   : > { %2995 = vst [vmem:[%s5462_s30 + $0x1d8] sm:$0xff] %v3464_v51  ;;  %v3460_v28 = vpack.c.bf16 %v2101_v39, %v2099_v57  ;;  %v2105_v20 = vadd.f32 %v2104_v3, %v5571_v55  ;;  %v2301_v50 = vpop.f32.mrb[72].mxu0 }
 0x375   : > { %v2302_v4 = vadd.f32 %v2301_v50, %v5553_v12  ;;  %v2303_v60 = vpop.f32.mrb[73].mxu0 }
 0x376   : > { %2991 = vst [vmem:[%s5462_s30 + $0x1b8] sm:$0xff] %v3460_v28  ;;  %v3463_v29 = vpack.c.bf16 %v2105_v20, %v2103_v7  ;;  %v2304_v52 = vadd.f32 %v2303_v60, %v5559_v23  ;;  %v2305_v49 = vpop.f32.mrb[74].mxu0 }
 0x377   : > { %v2306_v2 = vadd.f32 %v2305_v49, %v5553_v12  ;;  %v2307_v13 = vpop.f32.mrb[75].mxu0 }
 0x378   : > { %2994 = vst [vmem:[%s5462_s30 + $0x1d0] sm:$0xff] %v3463_v29  ;;  %v3467_v21 = vpack.c.bf16 %v2304_v52, %v2302_v4  ;;  %v2308_v0 = vadd.f32 %v2307_v13, %v5559_v23  ;;  %v2108_v1 = vpop.f32.mrb[72].mxu1 }
 0x379   : > { %v2109_v34 = vadd.f32 %v2108_v1, %v5566_v54  ;;  %v2110_v53 = vpop.f32.mrb[73].mxu1 }
 0x37a   : > { %2998 = vst [vmem:[%s5462_s30 + $0x1f0] sm:$0xff] %v3467_v21  ;;  %v3470_v36 = vpack.c.bf16 %v2308_v0, %v2306_v2  ;;  %v2111_v8 = vadd.f32 %v2110_v53, %v5571_v55  ;;  %v2112_v32 = vpop.f32.mrb[74].mxu1 }
 0x37b   : > { %v2113_v58 = vadd.f32 %v2112_v32, %v5566_v54  ;;  %v2114_v37 = vpop.f32.mrb[75].mxu1 }
 0x37c   : > { %3001 = vst [vmem:[%s5462_s30 + $0x208] sm:$0xff] %v3470_v36  ;;  %v3466_v42 = vpack.c.bf16 %v2111_v8, %v2109_v34  ;;  %v2115_v33 = vadd.f32 %v2114_v37, %v5571_v55  ;;  %v2311_v45 = vpop.f32.mrb[76].mxu0 }
 0x37d   : > { %v2312_v27 = vadd.f32 %v2311_v45, %v5553_v12  ;;  %v2313_v25 = vpop.f32.mrb[77].mxu0 }
 0x37e   : > { %2997 = vst [vmem:[%s5462_s30 + $0x1e8] sm:$0xff] %v3466_v42  ;;  %v3469_v38 = vpack.c.bf16 %v2115_v33, %v2113_v58  ;;  %v2314_v31 = vadd.f32 %v2313_v25, %v5559_v23  ;;  %v2315_v59 = vpop.f32.mrb[78].mxu0 }
 0x37f   : > { %v2316_v40 = vadd.f32 %v2315_v59, %v5553_v12  ;;  %v2317_v16 = vpop.f32.mrb[79].mxu0 }
 0x380   : > { %3000 = vst [vmem:[%s5462_s30 + $0x200] sm:$0xff] %v3469_v38  ;;  %v3473_v47 = vpack.c.bf16 %v2314_v31, %v2312_v27  ;;  %v2318_v44 = vadd.f32 %v2317_v16, %v5559_v23  ;;  %v2118_v19 = vpop.f32.mrb[76].mxu1 }
 0x381   : > { %v2119_v22 = vadd.f32 %v2118_v19, %v5566_v54  ;;  %v2120_v9 = vpop.f32.mrb[77].mxu1 }
 0x382   : > { %3004 = vst [vmem:[%s5462_s30 + $0x220] sm:$0xff] %v3473_v47  ;;  %v3476_v62 = vpack.c.bf16 %v2318_v44, %v2316_v40  ;;  %v2121_v41 = vadd.f32 %v2120_v9, %v5571_v55  ;;  %v2122_v24 = vpop.f32.mrb[78].mxu1 }
 0x383   : > { %v2123_v10 = vadd.f32 %v2122_v24, %v5566_v54  ;;  %v2124_v43 = vpop.f32.mrb[79].mxu1 }
 0x384   : > { %3007 = vst [vmem:[%s5462_s30 + $0x238] sm:$0xff] %v3476_v62  ;;  %v3472_v46 = vpack.c.bf16 %v2121_v41, %v2119_v22  ;;  %v2125_v14 = vadd.f32 %v2124_v43, %v5571_v55  ;;  %v2321_v35 = vpop.f32.mrb[80].mxu0 }
 0x385   : > { %v2322_v18 = vadd.f32 %v2321_v35, %v5553_v12  ;;  %v2323_v26 = vpop.f32.mrb[81].mxu0 }
 0x386   : > { %3003 = vst [vmem:[%s5462_s30 + $0x218] sm:$0xff] %v3472_v46  ;;  %v3475_v30 = vpack.c.bf16 %v2125_v14, %v2123_v10  ;;  %v2324_v63 = vadd.f32 %v2323_v26, %v5559_v23  ;;  %v2325_v5 = vpop.f32.mrb[82].mxu0 }
 0x387   : > { %v2326_v17 = vadd.f32 %v2325_v5, %v5553_v12  ;;  %v2327_v15 = vpop.f32.mrb[83].mxu0 }
 0x388   : > { %3006 = vst [vmem:[%s5462_s30 + $0x230] sm:$0xff] %v3475_v30  ;;  %v3479_v48 = vpack.c.bf16 %v2324_v63, %v2322_v18  ;;  %v2328_v6 = vadd.f32 %v2327_v15, %v5559_v23  ;;  %v2128_v61 = vpop.f32.mrb[80].mxu1 }
 0x389   : > { %v2129_v57 = vadd.f32 %v2128_v61, %v5566_v54  ;;  %v2130_v11 = vpop.f32.mrb[81].mxu1 }
 0x38a   : > { %3010 = vst [vmem:[%s5462_s30 + $0x250] sm:$0xff] %v3479_v48  ;;  %v3482_v51 = vpack.c.bf16 %v2328_v6, %v2326_v17  ;;  %v2131_v39 = vadd.f32 %v2130_v11, %v5571_v55  ;;  %v2132_v56 = vpop.f32.mrb[82].mxu1 }
 0x38b   : > { %v2133_v7 = vadd.f32 %v2132_v56, %v5566_v54  ;;  %v2134_v3 = vpop.f32.mrb[83].mxu1 }
 0x38c   : > { %3013 = vst [vmem:[%s5462_s30 + $0x268] sm:$0xff] %v3482_v51  ;;  %v3478_v28 = vpack.c.bf16 %v2131_v39, %v2129_v57  ;;  %v2135_v20 = vadd.f32 %v2134_v3, %v5571_v55  ;;  %v2331_v50 = vpop.f32.mrb[84].mxu0 }
 0x38d   : > { %v2332_v4 = vadd.f32 %v2331_v50, %v5553_v12  ;;  %v2333_v60 = vpop.f32.mrb[85].mxu0 }
 0x38e   : > { %3009 = vst [vmem:[%s5462_s30 + $0x248] sm:$0xff] %v3478_v28  ;;  %v3481_v29 = vpack.c.bf16 %v2135_v20, %v2133_v7  ;;  %v2334_v52 = vadd.f32 %v2333_v60, %v5559_v23  ;;  %v2335_v49 = vpop.f32.mrb[86].mxu0 }
 0x38f   : > { %v2336_v2 = vadd.f32 %v2335_v49, %v5553_v12  ;;  %v2337_v13 = vpop.f32.mrb[87].mxu0 }
 0x390   : > { %3012 = vst [vmem:[%s5462_s30 + $0x260] sm:$0xff] %v3481_v29  ;;  %v3485_v21 = vpack.c.bf16 %v2334_v52, %v2332_v4  ;;  %v2338_v0 = vadd.f32 %v2337_v13, %v5559_v23  ;;  %v2138_v1 = vpop.f32.mrb[84].mxu1 }
 0x391   : > { %v2139_v34 = vadd.f32 %v2138_v1, %v5566_v54  ;;  %v2140_v53 = vpop.f32.mrb[85].mxu1 }
 0x392   : > { %3016 = vst [vmem:[%s5462_s30 + $0x280] sm:$0xff] %v3485_v21  ;;  %v3488_v36 = vpack.c.bf16 %v2338_v0, %v2336_v2  ;;  %v2141_v8 = vadd.f32 %v2140_v53, %v5571_v55  ;;  %v2142_v32 = vpop.f32.mrb[86].mxu1 }
 0x393   : > { %v2143_v58 = vadd.f32 %v2142_v32, %v5566_v54  ;;  %v2144_v37 = vpop.f32.mrb[87].mxu1 }
 0x394   : > { %3019 = vst [vmem:[%s5462_s30 + $0x298] sm:$0xff] %v3488_v36  ;;  %v3484_v42 = vpack.c.bf16 %v2141_v8, %v2139_v34  ;;  %v2145_v33 = vadd.f32 %v2144_v37, %v5571_v55  ;;  %v2341_v45 = vpop.f32.mrb[88].mxu0 }
 0x395   : > { %v2342_v27 = vadd.f32 %v2341_v45, %v5553_v12  ;;  %v2343_v25 = vpop.f32.mrb[89].mxu0 }
 0x396   : > { %3015 = vst [vmem:[%s5462_s30 + $0x278] sm:$0xff] %v3484_v42  ;;  %v3487_v38 = vpack.c.bf16 %v2145_v33, %v2143_v58  ;;  %v2344_v31 = vadd.f32 %v2343_v25, %v5559_v23  ;;  %v2345_v59 = vpop.f32.mrb[90].mxu0 }
 0x397   : > { %v2346_v40 = vadd.f32 %v2345_v59, %v5553_v12  ;;  %v2347_v16 = vpop.f32.mrb[91].mxu0 }
 0x398   : > { %3018 = vst [vmem:[%s5462_s30 + $0x290] sm:$0xff] %v3487_v38  ;;  %v3491_v47 = vpack.c.bf16 %v2344_v31, %v2342_v27  ;;  %v2348_v44 = vadd.f32 %v2347_v16, %v5559_v23  ;;  %v2148_v19 = vpop.f32.mrb[88].mxu1 }
 0x399   : > { %v2149_v22 = vadd.f32 %v2148_v19, %v5566_v54  ;;  %v2150_v9 = vpop.f32.mrb[89].mxu1 }
 0x39a   : > { %3022 = vst [vmem:[%s5462_s30 + $0x2b0] sm:$0xff] %v3491_v47  ;;  %v3494_v62 = vpack.c.bf16 %v2348_v44, %v2346_v40  ;;  %v2151_v41 = vadd.f32 %v2150_v9, %v5571_v55  ;;  %v2152_v24 = vpop.f32.mrb[90].mxu1 }
 0x39b   : > { %v2153_v10 = vadd.f32 %v2152_v24, %v5566_v54  ;;  %v2154_v43 = vpop.f32.mrb[91].mxu1 }
 0x39c   : > { %3025 = vst [vmem:[%s5462_s30 + $0x2c8] sm:$0xff] %v3494_v62  ;;  %v3490_v46 = vpack.c.bf16 %v2151_v41, %v2149_v22  ;;  %v2155_v14 = vadd.f32 %v2154_v43, %v5571_v55  ;;  %v2351_v35 = vpop.f32.mrb[92].mxu0 }
 0x39d   : > { %v2352_v18 = vadd.f32 %v2351_v35, %v5553_v12  ;;  %v2353_v26 = vpop.f32.mrb[93].mxu0 }
 0x39e   : > { %3021 = vst [vmem:[%s5462_s30 + $0x2a8] sm:$0xff] %v3490_v46  ;;  %v3493_v30 = vpack.c.bf16 %v2155_v14, %v2153_v10  ;;  %v2354_v63 = vadd.f32 %v2353_v26, %v5559_v23  ;;  %v2355_v5 = vpop.f32.mrb[94].mxu0 }
 0x39f   : > { %v2356_v17 = vadd.f32 %v2355_v5, %v5553_v12  ;;  %v2357_v15 = vpop.f32.mrb[95].mxu0 }
 0x3a0   : > { %3024 = vst [vmem:[%s5462_s30 + $0x2c0] sm:$0xff] %v3493_v30  ;;  %v3497_v48 = vpack.c.bf16 %v2354_v63, %v2352_v18  ;;  %v2358_v6 = vadd.f32 %v2357_v15, %v5559_v23  ;;  %v2158_v61 = vpop.f32.mrb[92].mxu1 }
 0x3a1   : > { %v2159_v57 = vadd.f32 %v2158_v61, %v5566_v54  ;;  %v2160_v11 = vpop.f32.mrb[93].mxu1 }
 0x3a2   : > { %3028 = vst [vmem:[%s5462_s30 + $0x2e0] sm:$0xff] %v3497_v48  ;;  %v3500_v51 = vpack.c.bf16 %v2358_v6, %v2356_v17  ;;  %v2161_v39 = vadd.f32 %v2160_v11, %v5571_v55  ;;  %v2162_v56 = vpop.f32.mrb[94].mxu1 }
 0x3a3   : > { %v2163_v12 = vadd.f32 %v2162_v56, %v5566_v54  ;;  %v2164_v7 = vpop.f32.mrb[95].mxu1 }
 0x3a4   : > { %3031 = vst [vmem:[%s5462_s30 + $0x2f8] sm:$0xff] %v3500_v51  ;;  %v3496_v23 = vpack.c.bf16 %v2161_v39, %v2159_v57  ;;  %v2165_v3 = vadd.f32 %v2164_v7, %v5571_v55 }
 0x3a6   : > { %3027 = vst [vmem:[%s5462_s30 + $0x2d8] sm:$0xff] %v3496_v23  ;;  %v3499_v28 = vpack.c.bf16 %v2165_v3, %v2163_v12 }
 0x3a8   : > { %3030 = vst [vmem:[%s5462_s30 + $0x2f0] sm:$0xff] %v3499_v28 }
 0x3a9   : > { %4024 = shalt.err (!%p4021_p7)
}
 0x3aa   : > { %s4025_s14 = scalar_lea.hbm %s5771_s26, 12288  ;;  %s4029_s3 = scalar_lea.hbm %s5831_s5, 49152 }
 0x3ab   : > { %p4026_p12 = scmp.ne.s32.totalorder %s5771_s26, %s4025_s14  ;;  %p4030_p5 = scmp.lt.u32.totalorder %s5771_s26, %s5831_s5 }
 0x3ac   : > { %p4031_p9 = scmp.lt.u32.totalorder %s4029_s3, %s4025_s14  ;;  %p4033_p1 = scmp.lt.u32.totalorder %s4025_s14, %s5771_s26 }
 0x3ad   : > { %p4027_p11 = pnand %p4026_p12, %p4342_p4 }
 0x3ae   : > { %p4032_p0 = por %p4031_p9, %p4030_p5 }
 0x3af   : > { %p4028_p13 = pneg %p4027_p11 }
 0x3b0   : > { %p4034_p10 = por %p4033_p1, %p4032_p0 }
 0x3b2   : > { %p4035_p2 = pnand %p4034_p10, %p4028_p13 }
 0x3b4   : > { %4038 = shalt.err (!%p4035_p2)
}
 0x3b5   : > { %s4129_s30 = smov 384   ;;  %s4130_s7 = smov 24  }
 0x3b6   : > { %3554 = dma.vmem_to_hbm [thread:$0]  (%p4342_p4), %s5765_s22, 12288, %s5771_s26, %s3033_s10, %s4129_s30, %s4129_s30, %s4130_s7  }
 0x3b7 PF: > { %s5992_s8 = sld [smem:[#allocation17_spill]]  ;;  %s5993_s21 = sld [smem:[#allocation18_spill]] }
 0x3b8   : > { %p3586_p6 = scmp.ge.s32.totalorder %s4117_s25, 2 }
 0x3bd   : > { %s3066_s29 = sand.u32 1, %s5992_s8   ;;  %p5994_p8 = scmp.ne.s32.totalorder %s5993_s21, 0 }
 0x3be   : > { %s3067_s1 = scalar_lea.sflag [#allocation5], %s3066_s29 }
 0x3bf   : > { %p3574_p3 = pnand %p3586_p6, %p5994_p8 }
 0x3c1   : > { %4084 = dma.done.wait (!%p3574_p3), %s3067_s1, 12288  }
 0x3c2   : > { %4086 = vsyncadd (!%p3574_p3), %s3067_s1, 4294955008  ;;  %s23_s25 = sadd.s32 1, %s4117_s25   ;;  %s5995_s27 = sld [smem:[#allocation19_spill]] }
 0x3c3   : > { %p20_p7 = scmp.ge.s32.totalorder %s23_s25, 6   ;;  %s5996_s18 = smov %s4093_s19 }
 0x3c4   : > { %s5997_s19 = smov %s4097_s20  ;;  %s5998_s20 = smov %s4355_s11 }
 0x3c5   : > { %s5999_s21 = smov %s4109_s23  ;;  %s6000_s22 = smov %s4113_s24 }
 0x3c6   : > { %s6002_s24 = smov %s6008_s6  ;;  %22 = sbr.rel (!%p20_p7) target bundleno = 14 (0xe), region = 107 }
 0x3c8   : > { %s6001_s23 = smov %s5995_s27 }
 0x3cd   :  { %3072 = vsyncpa [#allocation4], 1 }
 0x3ce   :  { %3074 = vsyncpa [#allocation4 + $0x1], 1 }
 0x3cf   :  { %3075 = vsyncpa [#allocation7], 1 }
 0x3d0   :  { %3076 = vsyncpa [#allocation10], 1 }
 0x3d1   :  { %3077 = vsyncpa [#allocation5], 1 }
 0x3d2   :  { %3079 = vsyncpa [#allocation5 + $0x1], 1 }

</bundles_post_ra>
